<compile_context>
chip_gen: v5e
topology: v5e:2x2
jax: 0.10.0
libtpu: 0.0.40
codegen_flags: <defaults>
</compile_context>

<pallas_src>
import jax
import jax.numpy as jnp
from jax.experimental import pallas as pl
from jax.experimental.pallas import tpu as pltpu  # noqa: F401

# ----------------------------- static geometry ------------------------------
N_BATCH = 2
C_IN, D_IN, H_IN, W_IN = 4, 1, 84, 84
C1, C2 = 16, 32
K1 = C_IN * 9          # 36  conv1 patch features, PyTorch order (c, kh, kw)
TAPS = 9               # conv2 3x3 taps
S2 = 100               # 10*10 conv2 output positions per batch
FC1_OUT = 256


# ------------------------------ Pallas kernel -------------------------------

def _fused_forward_kernel(p_ref, w1_ref, b1_ref, w2_ref, b2_ref,
                          wfc1_ref, bfc1_ref, wfc2_ref, bfc2_ref, o_ref):
    """Whole MultiCNNActor forward; every ref is a full array resident in VMEM.

    p_ref    (N, 9, 36, 100) bf16 : conv1 im2col patches grouped by conv2 tap
    w1_ref   (16, 36)        bf16 : conv1 weight (O, C*kh*kw)
    b1_ref   (16, 1)         f32
    w2_ref   (9, 32, 16)     bf16 : conv2 weight per tap (tap, O, I)
    b2_ref   (32, 1)         f32
    wfc1_ref (32, 100, 256)  bf16 : fc1 weight regrouped per conv2 channel
    bfc1_ref (1, 256)        f32
    wfc2_ref (256, ncls)     bf16
    bfc2_ref (1, ncls)       f32
    o_ref    (N, ncls)       f32  : softmax(dim=1) probabilities
    """
    w1 = w1_ref[...]
    b1 = b1_ref[...]
    b2 = b2_ref[...]

    # ---- conv1 + conv2, weight stationary: lane axis == conv2 spatial (100) ----
    z_all = []
    for n in range(N_BATCH):                       # static, unrolled
        acc2 = jnp.zeros((C2, S2), jnp.float32)
        for t in range(TAPS):                      # conv2 tap (dy, dx)
            h = jnp.dot(w1, p_ref[n, t, :, :],
                        preferred_element_type=jnp.float32) + b1         # (16, 100)
            h = jnp.maximum(h, 0.0).astype(jnp.bfloat16)                 # relu(conv1)
            acc2 = acc2 + jnp.dot(w2_ref[t, :, :], h,
                                  preferred_element_type=jnp.float32)    # (32, 100)
        z_all.append(jnp.maximum(acc2 + b2, 0.0))                        # relu(conv2)

    # ---- fc1: out[n, j] = sum_{c,s} z[n][c, s] * wfc1[c, s, j] ----
    # PyTorch's channel-major flatten is already folded into wfc1's layout, so
    # fc1 becomes 32 per-channel (N,100)@(100,256) MXU matmuls (no relayout).
    acc1 = jnp.zeros((N_BATCH, FC1_OUT), jnp.float32)
    for c in range(C2):
        zc = jnp.concatenate([z_all[n][c:c + 1, :] for n in range(N_BATCH)],
                             axis=0).astype(jnp.bfloat16)                # (N, 100)
        acc1 = acc1 + jnp.dot(zc, wfc1_ref[c, :, :],
                              preferred_element_type=jnp.float32)        # (N, 256)
    a1 = jnp.maximum(acc1 + bfc1_ref[...], 0.0).astype(jnp.bfloat16)     # relu(fc1)

    # ---- fc2 + softmax(dim=1) ----
    logits = jnp.dot(a1, wfc2_ref[...],
                     preferred_element_type=jnp.float32) + bfc2_ref[...]  # (N, ncls)
    m = jnp.max(logits, axis=-1, keepdims=True)
    e = jnp.exp(logits - m)
    o_ref[...] = e / jnp.sum(e, axis=-1, keepdims=True)


# ------------------------------- XLA glue ------------------------------------

def _conv_patches(x):
    """(N, 4, 1, 84, 84) f32 -> (N, 9, 36, 100) bf16 tap-grouped conv1 patches.

    patches[n, dy*3+dx, c*9+ph*3+pw, y*10+x] = x[n, c, 0, 8y+4dy+ph, 8x+4dx+pw],
    i.e. the conv1 im2col column that feeds conv2 tap (dy, dx) at conv2
    output position (y, x).  (conv1 stride 4, conv2 stride 2 => combined 8.)
    """
    n, cin = x.shape[0], x.shape[1]
    x2 = x[:, :, 0, :, :]                                                # (N, C, 84, 84)
    taps = []
    for dy in range(3):
        for dx in range(3):
            feats = []
            for ph in range(3):
                for pw in range(3):
                    r0, c0 = 4 * dy + ph, 4 * dx + pw
                    feats.append(x2[:, :, r0:r0 + 73:8, c0:c0 + 73:8])   # (N, C, 10, 10)
            f = jnp.stack(feats, axis=2).reshape(n, cin * 9, 100)        # (N, 36, 100)
            taps.append(f)
    return jnp.stack(taps, axis=1).astype(jnp.bfloat16)                  # (N, 9, 36, 100)


@jax.jit
def multi_cnn_actor_forward(kparams, x):
    """x: (N, 4, 1, 84, 84) f32, NCDHW (PyTorch layout) -> (N, num_classes)."""
    patches = _conv_patches(x)
    num_classes = kparams["wfc2"].shape[1]
    return pl.pallas_call(
        _fused_forward_kernel,
        out_shape=jax.ShapeDtypeStruct((x.shape[0], num_classes), jnp.float32),
    )(patches, kparams["w1"], kparams["b1"], kparams["w2"], kparams["b2"],
      kparams["wfc1"], kparams["bfc1"], kparams["wfc2"], kparams["bfc2"])


# ---------------------------- parameter handling ------------------------------

def _uniform(key, shape, bound):
    return jax.random.uniform(key, shape, jnp.float32, minval=-bound, maxval=bound)


def init_params(key, num_classes):
    """PyTorch-layout parameters (same shapes/init style as the nn.Module)."""
    ks = jax.random.split(key, 8)
    p = {}
    b = 1.0 / jnp.sqrt(4 * 1 * 3 * 3)
    p["conv1_w"] = _uniform(ks[0], (16, 4, 1, 3, 3), b)
    p["conv1_b"] = _uniform(ks[1], (16,), b)
    b = 1.0 / jnp.sqrt(16 * 1 * 3 * 3)
    p["conv2_w"] = _uniform(ks[2], (32, 16, 1, 3, 3), b)
    p["conv2_b"] = _uniform(ks[3], (32,), b)
    b = 1.0 / jnp.sqrt(3200.0)
    p["fc1_w"] = _uniform(ks[4], (256, 3200), b)      # PyTorch (out, in)
    p["fc1_b"] = _uniform(ks[5], (256,), b)
    b = 1.0 / jnp.sqrt(256.0)
    p["fc2_w"] = _uniform(ks[6], (num_classes, 256), b)
    p["fc2_b"] = _uniform(ks[7], (num_classes,), b)
    return p


def pack_params(params, dtype=jnp.bfloat16):
    """One-time repack of PyTorch-layout params into the kernel layout (bf16)."""
    w1 = params["conv1_w"].reshape(C1, K1).astype(dtype)                          # (16, 36)
    b1 = params["conv1_b"].reshape(C1, 1).astype(jnp.float32)
    # (O, I, 1, 3, 3) -> (tap = dy*3+dx, O, I)
    w2 = jnp.transpose(params["conv2_w"][:, :, 0, :, :], (2, 3, 0, 1))
    w2 = w2.reshape(TAPS, C2, C1).astype(dtype)
    b2 = params["conv2_b"].reshape(C2, 1).astype(jnp.float32)
    # fc1 (256, 3200) with feature f = c*100 + s  ->  (c, s, j) = (32, 100, 256)
    wfc1 = jnp.transpose(params["fc1_w"].reshape(FC1_OUT, C2, S2), (1, 2, 0)).astype(dtype)
    bfc1 = params["fc1_b"].reshape(1, FC1_OUT).astype(jnp.float32)
    wfc2 = params["fc2_w"].T.astype(dtype)                                        # (256, ncls)
    bfc2 = params["fc2_b"].reshape(1, -1).astype(jnp.float32)
    return dict(w1=w1, b1=b1, w2=w2, b2=b2, wfc1=wfc1, bfc1=bfc1, wfc2=wfc2, bfc2=bfc2)


# --------------------------- pure-JAX reference ------------------------------

@jax.jit
def _reference_forward(params, x):
    dn = jax.lax.conv_dimension_numbers(x.shape, params["conv1_w"].shape,
                                        ("NCDHW", "OIDHW", "NCDHW"))
    h = jax.lax.conv_general_dilated(x, params["conv1_w"], (4, 4, 4), "VALID",
                                     dimension_numbers=dn)
    h = jax.nn.relu(h + params["conv1_b"].reshape(1, -1, 1, 1, 1))
    dn2 = jax.lax.conv_dimension_numbers(h.shape, params["conv2_w"].shape,
                                         ("NCDHW", "OIDHW", "NCDHW"))
    h = jax.lax.conv_general_dilated(h, params["conv2_w"], (2, 2, 2), "VALID",
                                     dimension_numbers=dn2)
    h = jax.nn.relu(h + params["conv2_b"].reshape(1, -1, 1, 1, 1))
    h = h.reshape(h.shape[0], -1)                                   # x.view(N, -1)
    h = jax.nn.relu(h @ params["fc1_w"].T + params["fc1_b"])
    logits = h @ params["fc2_w"].T + params["fc2_b"]
    return jax.nn.softmax(logits, axis=1)


# --------------------------------- main --------------------------------------

if __name__ == "__main__":
    num_classes = 6
    key = jax.random.PRNGKey(0)
    k_param, k_x = jax.random.split(key)
    params = init_params(k_param, num_classes)
    kparams = pack_params(params)

    # Smallest input consistent with fc1's 3200 features: (N, 4, 1, 84, 84).
    x = jax.random.normal(k_x, (N_BATCH, C_IN, D_IN, H_IN, W_IN), dtype=jnp.float32)

    out = multi_cnn_actor_forward(kparams, x)
    out = jax.block_until_ready(out)

    assert out.shape == (N_BATCH, num_classes), out.shape
    # Softmax rows must sum to 1.
    assert bool(jnp.allclose(jnp.sum(out, axis=1), 1.0, atol=1e-5))
    # Match the f32 reference forward (bf16 weights => generous tolerance).
    ref = _reference_forward(params, x)
    assert bool(jnp.allclose(out, ref, atol=2e-2, rtol=2e-2)), (out, ref)
    print("KERNEL_OK")
</pallas_src>

<mosaic_0001>
module attributes {stable_mosaic.version = 11 : i64} {
  func.func @_fused_forward_kernel(%arg0: memref<2x9x36x100xbf16, #tpu.memory_space<vmem>>, %arg1: memref<16x36xbf16, #tpu.memory_space<vmem>>, %arg2: memref<16x1xf32, #tpu.memory_space<vmem>>, %arg3: memref<9x32x16xbf16, #tpu.memory_space<vmem>>, %arg4: memref<32x1xf32, #tpu.memory_space<vmem>>, %arg5: memref<32x100x256xbf16, #tpu.memory_space<vmem>>, %arg6: memref<1x256xf32, #tpu.memory_space<vmem>>, %arg7: memref<256x6xbf16, #tpu.memory_space<vmem>>, %arg8: memref<1x6xf32, #tpu.memory_space<vmem>>, %arg9: memref<2x6xf32, #tpu.memory_space<vmem>>) attributes {dimension_semantics = [], scalar_prefetch = 0 : i64, scratch_operands = 0 : i64, tpu.core_type = #tpu.core_type<tc>} {
    %c0 = arith.constant 0 : index
    %c0_0 = arith.constant 0 : index
    %0 = vector.load %arg1[%c0, %c0_0] : memref<16x36xbf16, #tpu.memory_space<vmem>>, vector<16x36xbf16>
    %c0_1 = arith.constant 0 : index
    %c0_2 = arith.constant 0 : index
    %1 = vector.load %arg2[%c0_1, %c0_2] : memref<16x1xf32, #tpu.memory_space<vmem>>, vector<16x1xf32>
    %c0_3 = arith.constant 0 : index
    %c0_4 = arith.constant 0 : index
    %2 = vector.load %arg4[%c0_3, %c0_4] : memref<32x1xf32, #tpu.memory_space<vmem>>, vector<32x1xf32>
    %cst = arith.constant 0.000000e+00 : f32
    %3 = vector.broadcast %cst : f32 to vector<32x100xf32>
    %c0_5 = arith.constant 0 : index
    %c0_6 = arith.constant 0 : index
    %c0_7 = arith.constant 0 : index
    %c0_8 = arith.constant 0 : index
    %4 = vector.load %arg0[%c0_5, %c0_6, %c0_7, %c0_8] : memref<2x9x36x100xbf16, #tpu.memory_space<vmem>>, vector<1x1x36x100xbf16>
    %5 = vector.shape_cast %4 : vector<1x1x36x100xbf16> to vector<36x100xbf16>
    %cst_9 = arith.constant dense<0.000000e+00> : vector<16x100xf32>
    %6 = tpu.matmul %0, %5, %cst_9 {dimension_numbers = #tpu.dot_dimension_numbers<[1], [0], [0], [1], [0, 0, 1, 1], [], []>} : vector<16x36xbf16>, vector<36x100xbf16>, vector<16x100xf32> -> vector<16x100xf32>
    %7 = vector.broadcast %1 : vector<16x1xf32> to vector<16x100xf32>
    %8 = arith.addf %6, %7 : vector<16x100xf32>
    %cst_10 = arith.constant 0.000000e+00 : f32
    %9 = vector.broadcast %cst_10 : f32 to vector<16x100xf32>
    %10 = arith.maximumf %8, %9 : vector<16x100xf32>
    %11 = arith.truncf %10 : vector<16x100xf32> to vector<16x100xbf16>
    %c0_11 = arith.constant 0 : index
    %c0_12 = arith.constant 0 : index
    %c0_13 = arith.constant 0 : index
    %12 = vector.load %arg3[%c0_11, %c0_12, %c0_13] : memref<9x32x16xbf16, #tpu.memory_space<vmem>>, vector<1x32x16xbf16>
    %13 = vector.shape_cast %12 : vector<1x32x16xbf16> to vector<32x16xbf16>
    %cst_14 = arith.constant dense<0.000000e+00> : vector<32x100xf32>
    %14 = tpu.matmul %13, %11, %cst_14 {dimension_numbers = #tpu.dot_dimension_numbers<[1], [0], [0], [1], [0, 0, 1, 1], [], []>} : vector<32x16xbf16>, vector<16x100xbf16>, vector<32x100xf32> -> vector<32x100xf32>
    %15 = arith.addf %3, %14 : vector<32x100xf32>
    %c0_15 = arith.constant 0 : index
    %c1 = arith.constant 1 : index
    %c0_16 = arith.constant 0 : index
    %c0_17 = arith.constant 0 : index
    %16 = vector.load %arg0[%c0_15, %c1, %c0_16, %c0_17] : memref<2x9x36x100xbf16, #tpu.memory_space<vmem>>, vector<1x1x36x100xbf16>
    %17 = vector.shape_cast %16 : vector<1x1x36x100xbf16> to vector<36x100xbf16>
    %cst_18 = arith.constant dense<0.000000e+00> : vector<16x100xf32>
    %18 = tpu.matmul %0, %17, %cst_18 {dimension_numbers = #tpu.dot_dimension_numbers<[1], [0], [0], [1], [0, 0, 1, 1], [], []>} : vector<16x36xbf16>, vector<36x100xbf16>, vector<16x100xf32> -> vector<16x100xf32>
    %19 = vector.broadcast %1 : vector<16x1xf32> to vector<16x100xf32>
    %20 = arith.addf %18, %19 : vector<16x100xf32>
    %cst_19 = arith.constant 0.000000e+00 : f32
    %21 = vector.broadcast %cst_19 : f32 to vector<16x100xf32>
    %22 = arith.maximumf %20, %21 : vector<16x100xf32>
    %23 = arith.truncf %22 : vector<16x100xf32> to vector<16x100xbf16>
    %c1_20 = arith.constant 1 : index
    %c0_21 = arith.constant 0 : index
    %c0_22 = arith.constant 0 : index
    %24 = vector.load %arg3[%c1_20, %c0_21, %c0_22] : memref<9x32x16xbf16, #tpu.memory_space<vmem>>, vector<1x32x16xbf16>
    %25 = vector.shape_cast %24 : vector<1x32x16xbf16> to vector<32x16xbf16>
    %cst_23 = arith.constant dense<0.000000e+00> : vector<32x100xf32>
    %26 = tpu.matmul %25, %23, %cst_23 {dimension_numbers = #tpu.dot_dimension_numbers<[1], [0], [0], [1], [0, 0, 1, 1], [], []>} : vector<32x16xbf16>, vector<16x100xbf16>, vector<32x100xf32> -> vector<32x100xf32>
    %27 = arith.addf %15, %26 : vector<32x100xf32>
    %c0_24 = arith.constant 0 : index
    %c2 = arith.constant 2 : index
    %c0_25 = arith.constant 0 : index
    %c0_26 = arith.constant 0 : index
    %28 = vector.load %arg0[%c0_24, %c2, %c0_25, %c0_26] : memref<2x9x36x100xbf16, #tpu.memory_space<vmem>>, vector<1x1x36x100xbf16>
    %29 = vector.shape_cast %28 : vector<1x1x36x100xbf16> to vector<36x100xbf16>
    %cst_27 = arith.constant dense<0.000000e+00> : vector<16x100xf32>
    %30 = tpu.matmul %0, %29, %cst_27 {dimension_numbers = #tpu.dot_dimension_numbers<[1], [0], [0], [1], [0, 0, 1, 1], [], []>} : vector<16x36xbf16>, vector<36x100xbf16>, vector<16x100xf32> -> vector<16x100xf32>
    %31 = vector.broadcast %1 : vector<16x1xf32> to vector<16x100xf32>
    %32 = arith.addf %30, %31 : vector<16x100xf32>
    %cst_28 = arith.constant 0.000000e+00 : f32
    %33 = vector.broadcast %cst_28 : f32 to vector<16x100xf32>
    %34 = arith.maximumf %32, %33 : vector<16x100xf32>
    %35 = arith.truncf %34 : vector<16x100xf32> to vector<16x100xbf16>
    %c2_29 = arith.constant 2 : index
    %c0_30 = arith.constant 0 : index
    %c0_31 = arith.constant 0 : index
    %36 = vector.load %arg3[%c2_29, %c0_30, %c0_31] : memref<9x32x16xbf16, #tpu.memory_space<vmem>>, vector<1x32x16xbf16>
    %37 = vector.shape_cast %36 : vector<1x32x16xbf16> to vector<32x16xbf16>
    %cst_32 = arith.constant dense<0.000000e+00> : vector<32x100xf32>
    %38 = tpu.matmul %37, %35, %cst_32 {dimension_numbers = #tpu.dot_dimension_numbers<[1], [0], [0], [1], [0, 0, 1, 1], [], []>} : vector<32x16xbf16>, vector<16x100xbf16>, vector<32x100xf32> -> vector<32x100xf32>
    %39 = arith.addf %27, %38 : vector<32x100xf32>
    %c0_33 = arith.constant 0 : index
    %c3 = arith.constant 3 : index
    %c0_34 = arith.constant 0 : index
    %c0_35 = arith.constant 0 : index
    %40 = vector.load %arg0[%c0_33, %c3, %c0_34, %c0_35] : memref<2x9x36x100xbf16, #tpu.memory_space<vmem>>, vector<1x1x36x100xbf16>
    %41 = vector.shape_cast %40 : vector<1x1x36x100xbf16> to vector<36x100xbf16>
    %cst_36 = arith.constant dense<0.000000e+00> : vector<16x100xf32>
    %42 = tpu.matmul %0, %41, %cst_36 {dimension_numbers = #tpu.dot_dimension_numbers<[1], [0], [0], [1], [0, 0, 1, 1], [], []>} : vector<16x36xbf16>, vector<36x100xbf16>, vector<16x100xf32> -> vector<16x100xf32>
    %43 = vector.broadcast %1 : vector<16x1xf32> to vector<16x100xf32>
    %44 = arith.addf %42, %43 : vector<16x100xf32>
    %cst_37 = arith.constant 0.000000e+00 : f32
    %45 = vector.broadcast %cst_37 : f32 to vector<16x100xf32>
    %46 = arith.maximumf %44, %45 : vector<16x100xf32>
    %47 = arith.truncf %46 : vector<16x100xf32> to vector<16x100xbf16>
    %c3_38 = arith.constant 3 : index
    %c0_39 = arith.constant 0 : index
    %c0_40 = arith.constant 0 : index
    %48 = vector.load %arg3[%c3_38, %c0_39, %c0_40] : memref<9x32x16xbf16, #tpu.memory_space<vmem>>, vector<1x32x16xbf16>
    %49 = vector.shape_cast %48 : vector<1x32x16xbf16> to vector<32x16xbf16>
    %cst_41 = arith.constant dense<0.000000e+00> : vector<32x100xf32>
    %50 = tpu.matmul %49, %47, %cst_41 {dimension_numbers = #tpu.dot_dimension_numbers<[1], [0], [0], [1], [0, 0, 1, 1], [], []>} : vector<32x16xbf16>, vector<16x100xbf16>, vector<32x100xf32> -> vector<32x100xf32>
    %51 = arith.addf %39, %50 : vector<32x100xf32>
    %c0_42 = arith.constant 0 : index
    %c4 = arith.constant 4 : index
    %c0_43 = arith.constant 0 : index
    %c0_44 = arith.constant 0 : index
    %52 = vector.load %arg0[%c0_42, %c4, %c0_43, %c0_44] : memref<2x9x36x100xbf16, #tpu.memory_space<vmem>>, vector<1x1x36x100xbf16>
    %53 = vector.shape_cast %52 : vector<1x1x36x100xbf16> to vector<36x100xbf16>
    %cst_45 = arith.constant dense<0.000000e+00> : vector<16x100xf32>
    %54 = tpu.matmul %0, %53, %cst_45 {dimension_numbers = #tpu.dot_dimension_numbers<[1], [0], [0], [1], [0, 0, 1, 1], [], []>} : vector<16x36xbf16>, vector<36x100xbf16>, vector<16x100xf32> -> vector<16x100xf32>
    %55 = vector.broadcast %1 : vector<16x1xf32> to vector<16x100xf32>
    %56 = arith.addf %54, %55 : vector<16x100xf32>
    %cst_46 = arith.constant 0.000000e+00 : f32
    %57 = vector.broadcast %cst_46 : f32 to vector<16x100xf32>
    %58 = arith.maximumf %56, %57 : vector<16x100xf32>
    %59 = arith.truncf %58 : vector<16x100xf32> to vector<16x100xbf16>
    %c4_47 = arith.constant 4 : index
    %c0_48 = arith.constant 0 : index
    %c0_49 = arith.constant 0 : index
    %60 = vector.load %arg3[%c4_47, %c0_48, %c0_49] : memref<9x32x16xbf16, #tpu.memory_space<vmem>>, vector<1x32x16xbf16>
    %61 = vector.shape_cast %60 : vector<1x32x16xbf16> to vector<32x16xbf16>
    %cst_50 = arith.constant dense<0.000000e+00> : vector<32x100xf32>
    %62 = tpu.matmul %61, %59, %cst_50 {dimension_numbers = #tpu.dot_dimension_numbers<[1], [0], [0], [1], [0, 0, 1, 1], [], []>} : vector<32x16xbf16>, vector<16x100xbf16>, vector<32x100xf32> -> vector<32x100xf32>
    %63 = arith.addf %51, %62 : vector<32x100xf32>
    %c0_51 = arith.constant 0 : index
    %c5 = arith.constant 5 : index
    %c0_52 = arith.constant 0 : index
    %c0_53 = arith.constant 0 : index
    %64 = vector.load %arg0[%c0_51, %c5, %c0_52, %c0_53] : memref<2x9x36x100xbf16, #tpu.memory_space<vmem>>, vector<1x1x36x100xbf16>
    %65 = vector.shape_cast %64 : vector<1x1x36x100xbf16> to vector<36x100xbf16>
    %cst_54 = arith.constant dense<0.000000e+00> : vector<16x100xf32>
    %66 = tpu.matmul %0, %65, %cst_54 {dimension_numbers = #tpu.dot_dimension_numbers<[1], [0], [0], [1], [0, 0, 1, 1], [], []>} : vector<16x36xbf16>, vector<36x100xbf16>, vector<16x100xf32> -> vector<16x100xf32>
    %67 = vector.broadcast %1 : vector<16x1xf32> to vector<16x100xf32>
    %68 = arith.addf %66, %67 : vector<16x100xf32>
    %cst_55 = arith.constant 0.000000e+00 : f32
    %69 = vector.broadcast %cst_55 : f32 to vector<16x100xf32>
    %70 = arith.maximumf %68, %69 : vector<16x100xf32>
    %71 = arith.truncf %70 : vector<16x100xf32> to vector<16x100xbf16>
    %c5_56 = arith.constant 5 : index
    %c0_57 = arith.constant 0 : index
    %c0_58 = arith.constant 0 : index
    %72 = vector.load %arg3[%c5_56, %c0_57, %c0_58] : memref<9x32x16xbf16, #tpu.memory_space<vmem>>, vector<1x32x16xbf16>
    %73 = vector.shape_cast %72 : vector<1x32x16xbf16> to vector<32x16xbf16>
    %cst_59 = arith.constant dense<0.000000e+00> : vector<32x100xf32>
    %74 = tpu.matmul %73, %71, %cst_59 {dimension_numbers = #tpu.dot_dimension_numbers<[1], [0], [0], [1], [0, 0, 1, 1], [], []>} : vector<32x16xbf16>, vector<16x100xbf16>, vector<32x100xf32> -> vector<32x100xf32>
    %75 = arith.addf %63, %74 : vector<32x100xf32>
    %c0_60 = arith.constant 0 : index
    %c6 = arith.constant 6 : index
    %c0_61 = arith.constant 0 : index
    %c0_62 = arith.constant 0 : index
    %76 = vector.load %arg0[%c0_60, %c6, %c0_61, %c0_62] : memref<2x9x36x100xbf16, #tpu.memory_space<vmem>>, vector<1x1x36x100xbf16>
    %77 = vector.shape_cast %76 : vector<1x1x36x100xbf16> to vector<36x100xbf16>
    %cst_63 = arith.constant dense<0.000000e+00> : vector<16x100xf32>
    %78 = tpu.matmul %0, %77, %cst_63 {dimension_numbers = #tpu.dot_dimension_numbers<[1], [0], [0], [1], [0, 0, 1, 1], [], []>} : vector<16x36xbf16>, vector<36x100xbf16>, vector<16x100xf32> -> vector<16x100xf32>
    %79 = vector.broadcast %1 : vector<16x1xf32> to vector<16x100xf32>
    %80 = arith.addf %78, %79 : vector<16x100xf32>
    %cst_64 = arith.constant 0.000000e+00 : f32
    %81 = vector.broadcast %cst_64 : f32 to vector<16x100xf32>
    %82 = arith.maximumf %80, %81 : vector<16x100xf32>
    %83 = arith.truncf %82 : vector<16x100xf32> to vector<16x100xbf16>
    %c6_65 = arith.constant 6 : index
    %c0_66 = arith.constant 0 : index
    %c0_67 = arith.constant 0 : index
    %84 = vector.load %arg3[%c6_65, %c0_66, %c0_67] : memref<9x32x16xbf16, #tpu.memory_space<vmem>>, vector<1x32x16xbf16>
    %85 = vector.shape_cast %84 : vector<1x32x16xbf16> to vector<32x16xbf16>
    %cst_68 = arith.constant dense<0.000000e+00> : vector<32x100xf32>
    %86 = tpu.matmul %85, %83, %cst_68 {dimension_numbers = #tpu.dot_dimension_numbers<[1], [0], [0], [1], [0, 0, 1, 1], [], []>} : vector<32x16xbf16>, vector<16x100xbf16>, vector<32x100xf32> -> vector<32x100xf32>
    %87 = arith.addf %75, %86 : vector<32x100xf32>
    %c0_69 = arith.constant 0 : index
    %c7 = arith.constant 7 : index
    %c0_70 = arith.constant 0 : index
    %c0_71 = arith.constant 0 : index
    %88 = vector.load %arg0[%c0_69, %c7, %c0_70, %c0_71] : memref<2x9x36x100xbf16, #tpu.memory_space<vmem>>, vector<1x1x36x100xbf16>
    %89 = vector.shape_cast %88 : vector<1x1x36x100xbf16> to vector<36x100xbf16>
    %cst_72 = arith.constant dense<0.000000e+00> : vector<16x100xf32>
    %90 = tpu.matmul %0, %89, %cst_72 {dimension_numbers = #tpu.dot_dimension_numbers<[1], [0], [0], [1], [0, 0, 1, 1], [], []>} : vector<16x36xbf16>, vector<36x100xbf16>, vector<16x100xf32> -> vector<16x100xf32>
    %91 = vector.broadcast %1 : vector<16x1xf32> to vector<16x100xf32>
    %92 = arith.addf %90, %91 : vector<16x100xf32>
    %cst_73 = arith.constant 0.000000e+00 : f32
    %93 = vector.broadcast %cst_73 : f32 to vector<16x100xf32>
    %94 = arith.maximumf %92, %93 : vector<16x100xf32>
    %95 = arith.truncf %94 : vector<16x100xf32> to vector<16x100xbf16>
    %c7_74 = arith.constant 7 : index
    %c0_75 = arith.constant 0 : index
    %c0_76 = arith.constant 0 : index
    %96 = vector.load %arg3[%c7_74, %c0_75, %c0_76] : memref<9x32x16xbf16, #tpu.memory_space<vmem>>, vector<1x32x16xbf16>
    %97 = vector.shape_cast %96 : vector<1x32x16xbf16> to vector<32x16xbf16>
    %cst_77 = arith.constant dense<0.000000e+00> : vector<32x100xf32>
    %98 = tpu.matmul %97, %95, %cst_77 {dimension_numbers = #tpu.dot_dimension_numbers<[1], [0], [0], [1], [0, 0, 1, 1], [], []>} : vector<32x16xbf16>, vector<16x100xbf16>, vector<32x100xf32> -> vector<32x100xf32>
    %99 = arith.addf %87, %98 : vector<32x100xf32>
    %c0_78 = arith.constant 0 : index
    %c8 = arith.constant 8 : index
    %c0_79 = arith.constant 0 : index
    %c0_80 = arith.constant 0 : index
    %100 = vector.load %arg0[%c0_78, %c8, %c0_79, %c0_80] : memref<2x9x36x100xbf16, #tpu.memory_space<vmem>>, vector<1x1x36x100xbf16>
    %101 = vector.shape_cast %100 : vector<1x1x36x100xbf16> to vector<36x100xbf16>
    %cst_81 = arith.constant dense<0.000000e+00> : vector<16x100xf32>
    %102 = tpu.matmul %0, %101, %cst_81 {dimension_numbers = #tpu.dot_dimension_numbers<[1], [0], [0], [1], [0, 0, 1, 1], [], []>} : vector<16x36xbf16>, vector<36x100xbf16>, vector<16x100xf32> -> vector<16x100xf32>
    %103 = vector.broadcast %1 : vector<16x1xf32> to vector<16x100xf32>
    %104 = arith.addf %102, %103 : vector<16x100xf32>
    %cst_82 = arith.constant 0.000000e+00 : f32
    %105 = vector.broadcast %cst_82 : f32 to vector<16x100xf32>
    %106 = arith.maximumf %104, %105 : vector<16x100xf32>
    %107 = arith.truncf %106 : vector<16x100xf32> to vector<16x100xbf16>
    %c8_83 = arith.constant 8 : index
    %c0_84 = arith.constant 0 : index
    %c0_85 = arith.constant 0 : index
    %108 = vector.load %arg3[%c8_83, %c0_84, %c0_85] : memref<9x32x16xbf16, #tpu.memory_space<vmem>>, vector<1x32x16xbf16>
    %109 = vector.shape_cast %108 : vector<1x32x16xbf16> to vector<32x16xbf16>
    %cst_86 = arith.constant dense<0.000000e+00> : vector<32x100xf32>
    %110 = tpu.matmul %109, %107, %cst_86 {dimension_numbers = #tpu.dot_dimension_numbers<[1], [0], [0], [1], [0, 0, 1, 1], [], []>} : vector<32x16xbf16>, vector<16x100xbf16>, vector<32x100xf32> -> vector<32x100xf32>
    %111 = arith.addf %99, %110 : vector<32x100xf32>
    %112 = vector.broadcast %2 : vector<32x1xf32> to vector<32x100xf32>
    %113 = arith.addf %111, %112 : vector<32x100xf32>
    %cst_87 = arith.constant 0.000000e+00 : f32
    %114 = vector.broadcast %cst_87 : f32 to vector<32x100xf32>
    %115 = arith.maximumf %113, %114 : vector<32x100xf32>
    %cst_88 = arith.constant 0.000000e+00 : f32
    %116 = vector.broadcast %cst_88 : f32 to vector<32x100xf32>
    %c1_89 = arith.constant 1 : index
    %c0_90 = arith.constant 0 : index
    %c0_91 = arith.constant 0 : index
    %c0_92 = arith.constant 0 : index
    %117 = vector.load %arg0[%c1_89, %c0_90, %c0_91, %c0_92] : memref<2x9x36x100xbf16, #tpu.memory_space<vmem>>, vector<1x1x36x100xbf16>
    %118 = vector.shape_cast %117 : vector<1x1x36x100xbf16> to vector<36x100xbf16>
    %cst_93 = arith.constant dense<0.000000e+00> : vector<16x100xf32>
    %119 = tpu.matmul %0, %118, %cst_93 {dimension_numbers = #tpu.dot_dimension_numbers<[1], [0], [0], [1], [0, 0, 1, 1], [], []>} : vector<16x36xbf16>, vector<36x100xbf16>, vector<16x100xf32> -> vector<16x100xf32>
    %120 = vector.broadcast %1 : vector<16x1xf32> to vector<16x100xf32>
    %121 = arith.addf %119, %120 : vector<16x100xf32>
    %cst_94 = arith.constant 0.000000e+00 : f32
    %122 = vector.broadcast %cst_94 : f32 to vector<16x100xf32>
    %123 = arith.maximumf %121, %122 : vector<16x100xf32>
    %124 = arith.truncf %123 : vector<16x100xf32> to vector<16x100xbf16>
    %c0_95 = arith.constant 0 : index
    %c0_96 = arith.constant 0 : index
    %c0_97 = arith.constant 0 : index
    %125 = vector.load %arg3[%c0_95, %c0_96, %c0_97] : memref<9x32x16xbf16, #tpu.memory_space<vmem>>, vector<1x32x16xbf16>
    %126 = vector.shape_cast %125 : vector<1x32x16xbf16> to vector<32x16xbf16>
    %cst_98 = arith.constant dense<0.000000e+00> : vector<32x100xf32>
    %127 = tpu.matmul %126, %124, %cst_98 {dimension_numbers = #tpu.dot_dimension_numbers<[1], [0], [0], [1], [0, 0, 1, 1], [], []>} : vector<32x16xbf16>, vector<16x100xbf16>, vector<32x100xf32> -> vector<32x100xf32>
    %128 = arith.addf %116, %127 : vector<32x100xf32>
    %c1_99 = arith.constant 1 : index
    %c1_100 = arith.constant 1 : index
    %c0_101 = arith.constant 0 : index
    %c0_102 = arith.constant 0 : index
    %129 = vector.load %arg0[%c1_99, %c1_100, %c0_101, %c0_102] : memref<2x9x36x100xbf16, #tpu.memory_space<vmem>>, vector<1x1x36x100xbf16>
    %130 = vector.shape_cast %129 : vector<1x1x36x100xbf16> to vector<36x100xbf16>
    %cst_103 = arith.constant dense<0.000000e+00> : vector<16x100xf32>
    %131 = tpu.matmul %0, %130, %cst_103 {dimension_numbers = #tpu.dot_dimension_numbers<[1], [0], [0], [1], [0, 0, 1, 1], [], []>} : vector<16x36xbf16>, vector<36x100xbf16>, vector<16x100xf32> -> vector<16x100xf32>
    %132 = vector.broadcast %1 : vector<16x1xf32> to vector<16x100xf32>
    %133 = arith.addf %131, %132 : vector<16x100xf32>
    %cst_104 = arith.constant 0.000000e+00 : f32
    %134 = vector.broadcast %cst_104 : f32 to vector<16x100xf32>
    %135 = arith.maximumf %133, %134 : vector<16x100xf32>
    %136 = arith.truncf %135 : vector<16x100xf32> to vector<16x100xbf16>
    %c1_105 = arith.constant 1 : index
    %c0_106 = arith.constant 0 : index
    %c0_107 = arith.constant 0 : index
    %137 = vector.load %arg3[%c1_105, %c0_106, %c0_107] : memref<9x32x16xbf16, #tpu.memory_space<vmem>>, vector<1x32x16xbf16>
    %138 = vector.shape_cast %137 : vector<1x32x16xbf16> to vector<32x16xbf16>
    %cst_108 = arith.constant dense<0.000000e+00> : vector<32x100xf32>
    %139 = tpu.matmul %138, %136, %cst_108 {dimension_numbers = #tpu.dot_dimension_numbers<[1], [0], [0], [1], [0, 0, 1, 1], [], []>} : vector<32x16xbf16>, vector<16x100xbf16>, vector<32x100xf32> -> vector<32x100xf32>
    %140 = arith.addf %128, %139 : vector<32x100xf32>
    %c1_109 = arith.constant 1 : index
    %c2_110 = arith.constant 2 : index
    %c0_111 = arith.constant 0 : index
    %c0_112 = arith.constant 0 : index
    %141 = vector.load %arg0[%c1_109, %c2_110, %c0_111, %c0_112] : memref<2x9x36x100xbf16, #tpu.memory_space<vmem>>, vector<1x1x36x100xbf16>
    %142 = vector.shape_cast %141 : vector<1x1x36x100xbf16> to vector<36x100xbf16>
    %cst_113 = arith.constant dense<0.000000e+00> : vector<16x100xf32>
    %143 = tpu.matmul %0, %142, %cst_113 {dimension_numbers = #tpu.dot_dimension_numbers<[1], [0], [0], [1], [0, 0, 1, 1], [], []>} : vector<16x36xbf16>, vector<36x100xbf16>, vector<16x100xf32> -> vector<16x100xf32>
    %144 = vector.broadcast %1 : vector<16x1xf32> to vector<16x100xf32>
    %145 = arith.addf %143, %144 : vector<16x100xf32>
    %cst_114 = arith.constant 0.000000e+00 : f32
    %146 = vector.broadcast %cst_114 : f32 to vector<16x100xf32>
    %147 = arith.maximumf %145, %146 : vector<16x100xf32>
    %148 = arith.truncf %147 : vector<16x100xf32> to vector<16x100xbf16>
    %c2_115 = arith.constant 2 : index
    %c0_116 = arith.constant 0 : index
    %c0_117 = arith.constant 0 : index
    %149 = vector.load %arg3[%c2_115, %c0_116, %c0_117] : memref<9x32x16xbf16, #tpu.memory_space<vmem>>, vector<1x32x16xbf16>
    %150 = vector.shape_cast %149 : vector<1x32x16xbf16> to vector<32x16xbf16>
    %cst_118 = arith.constant dense<0.000000e+00> : vector<32x100xf32>
    %151 = tpu.matmul %150, %148, %cst_118 {dimension_numbers = #tpu.dot_dimension_numbers<[1], [0], [0], [1], [0, 0, 1, 1], [], []>} : vector<32x16xbf16>, vector<16x100xbf16>, vector<32x100xf32> -> vector<32x100xf32>
    %152 = arith.addf %140, %151 : vector<32x100xf32>
    %c1_119 = arith.constant 1 : index
    %c3_120 = arith.constant 3 : index
    %c0_121 = arith.constant 0 : index
    %c0_122 = arith.constant 0 : index
    %153 = vector.load %arg0[%c1_119, %c3_120, %c0_121, %c0_122] : memref<2x9x36x100xbf16, #tpu.memory_space<vmem>>, vector<1x1x36x100xbf16>
    %154 = vector.shape_cast %153 : vector<1x1x36x100xbf16> to vector<36x100xbf16>
    %cst_123 = arith.constant dense<0.000000e+00> : vector<16x100xf32>
    %155 = tpu.matmul %0, %154, %cst_123 {dimension_numbers = #tpu.dot_dimension_numbers<[1], [0], [0], [1], [0, 0, 1, 1], [], []>} : vector<16x36xbf16>, vector<36x100xbf16>, vector<16x100xf32> -> vector<16x100xf32>
    %156 = vector.broadcast %1 : vector<16x1xf32> to vector<16x100xf32>
    %157 = arith.addf %155, %156 : vector<16x100xf32>
    %cst_124 = arith.constant 0.000000e+00 : f32
    %158 = vector.broadcast %cst_124 : f32 to vector<16x100xf32>
    %159 = arith.maximumf %157, %158 : vector<16x100xf32>
    %160 = arith.truncf %159 : vector<16x100xf32> to vector<16x100xbf16>
    %c3_125 = arith.constant 3 : index
    %c0_126 = arith.constant 0 : index
    %c0_127 = arith.constant 0 : index
    %161 = vector.load %arg3[%c3_125, %c0_126, %c0_127] : memref<9x32x16xbf16, #tpu.memory_space<vmem>>, vector<1x32x16xbf16>
    %162 = vector.shape_cast %161 : vector<1x32x16xbf16> to vector<32x16xbf16>
    %cst_128 = arith.constant dense<0.000000e+00> : vector<32x100xf32>
    %163 = tpu.matmul %162, %160, %cst_128 {dimension_numbers = #tpu.dot_dimension_numbers<[1], [0], [0], [1], [0, 0, 1, 1], [], []>} : vector<32x16xbf16>, vector<16x100xbf16>, vector<32x100xf32> -> vector<32x100xf32>
    %164 = arith.addf %152, %163 : vector<32x100xf32>
    %c1_129 = arith.constant 1 : index
    %c4_130 = arith.constant 4 : index
    %c0_131 = arith.constant 0 : index
    %c0_132 = arith.constant 0 : index
    %165 = vector.load %arg0[%c1_129, %c4_130, %c0_131, %c0_132] : memref<2x9x36x100xbf16, #tpu.memory_space<vmem>>, vector<1x1x36x100xbf16>
    %166 = vector.shape_cast %165 : vector<1x1x36x100xbf16> to vector<36x100xbf16>
    %cst_133 = arith.constant dense<0.000000e+00> : vector<16x100xf32>
    %167 = tpu.matmul %0, %166, %cst_133 {dimension_numbers = #tpu.dot_dimension_numbers<[1], [0], [0], [1], [0, 0, 1, 1], [], []>} : vector<16x36xbf16>, vector<36x100xbf16>, vector<16x100xf32> -> vector<16x100xf32>
    %168 = vector.broadcast %1 : vector<16x1xf32> to vector<16x100xf32>
    %169 = arith.addf %167, %168 : vector<16x100xf32>
    %cst_134 = arith.constant 0.000000e+00 : f32
    %170 = vector.broadcast %cst_134 : f32 to vector<16x100xf32>
    %171 = arith.maximumf %169, %170 : vector<16x100xf32>
    %172 = arith.truncf %171 : vector<16x100xf32> to vector<16x100xbf16>
    %c4_135 = arith.constant 4 : index
    %c0_136 = arith.constant 0 : index
    %c0_137 = arith.constant 0 : index
    %173 = vector.load %arg3[%c4_135, %c0_136, %c0_137] : memref<9x32x16xbf16, #tpu.memory_space<vmem>>, vector<1x32x16xbf16>
    %174 = vector.shape_cast %173 : vector<1x32x16xbf16> to vector<32x16xbf16>
    %cst_138 = arith.constant dense<0.000000e+00> : vector<32x100xf32>
    %175 = tpu.matmul %174, %172, %cst_138 {dimension_numbers = #tpu.dot_dimension_numbers<[1], [0], [0], [1], [0, 0, 1, 1], [], []>} : vector<32x16xbf16>, vector<16x100xbf16>, vector<32x100xf32> -> vector<32x100xf32>
    %176 = arith.addf %164, %175 : vector<32x100xf32>
    %c1_139 = arith.constant 1 : index
    %c5_140 = arith.constant 5 : index
    %c0_141 = arith.constant 0 : index
    %c0_142 = arith.constant 0 : index
    %177 = vector.load %arg0[%c1_139, %c5_140, %c0_141, %c0_142] : memref<2x9x36x100xbf16, #tpu.memory_space<vmem>>, vector<1x1x36x100xbf16>
    %178 = vector.shape_cast %177 : vector<1x1x36x100xbf16> to vector<36x100xbf16>
    %cst_143 = arith.constant dense<0.000000e+00> : vector<16x100xf32>
    %179 = tpu.matmul %0, %178, %cst_143 {dimension_numbers = #tpu.dot_dimension_numbers<[1], [0], [0], [1], [0, 0, 1, 1], [], []>} : vector<16x36xbf16>, vector<36x100xbf16>, vector<16x100xf32> -> vector<16x100xf32>
    %180 = vector.broadcast %1 : vector<16x1xf32> to vector<16x100xf32>
    %181 = arith.addf %179, %180 : vector<16x100xf32>
    %cst_144 = arith.constant 0.000000e+00 : f32
    %182 = vector.broadcast %cst_144 : f32 to vector<16x100xf32>
    %183 = arith.maximumf %181, %182 : vector<16x100xf32>
    %184 = arith.truncf %183 : vector<16x100xf32> to vector<16x100xbf16>
    %c5_145 = arith.constant 5 : index
    %c0_146 = arith.constant 0 : index
    %c0_147 = arith.constant 0 : index
    %185 = vector.load %arg3[%c5_145, %c0_146, %c0_147] : memref<9x32x16xbf16, #tpu.memory_space<vmem>>, vector<1x32x16xbf16>
    %186 = vector.shape_cast %185 : vector<1x32x16xbf16> to vector<32x16xbf16>
    %cst_148 = arith.constant dense<0.000000e+00> : vector<32x100xf32>
    %187 = tpu.matmul %186, %184, %cst_148 {dimension_numbers = #tpu.dot_dimension_numbers<[1], [0], [0], [1], [0, 0, 1, 1], [], []>} : vector<32x16xbf16>, vector<16x100xbf16>, vector<32x100xf32> -> vector<32x100xf32>
    %188 = arith.addf %176, %187 : vector<32x100xf32>
    %c1_149 = arith.constant 1 : index
    %c6_150 = arith.constant 6 : index
    %c0_151 = arith.constant 0 : index
    %c0_152 = arith.constant 0 : index
    %189 = vector.load %arg0[%c1_149, %c6_150, %c0_151, %c0_152] : memref<2x9x36x100xbf16, #tpu.memory_space<vmem>>, vector<1x1x36x100xbf16>
    %190 = vector.shape_cast %189 : vector<1x1x36x100xbf16> to vector<36x100xbf16>
    %cst_153 = arith.constant dense<0.000000e+00> : vector<16x100xf32>
    %191 = tpu.matmul %0, %190, %cst_153 {dimension_numbers = #tpu.dot_dimension_numbers<[1], [0], [0], [1], [0, 0, 1, 1], [], []>} : vector<16x36xbf16>, vector<36x100xbf16>, vector<16x100xf32> -> vector<16x100xf32>
    %192 = vector.broadcast %1 : vector<16x1xf32> to vector<16x100xf32>
    %193 = arith.addf %191, %192 : vector<16x100xf32>
    %cst_154 = arith.constant 0.000000e+00 : f32
    %194 = vector.broadcast %cst_154 : f32 to vector<16x100xf32>
    %195 = arith.maximumf %193, %194 : vector<16x100xf32>
    %196 = arith.truncf %195 : vector<16x100xf32> to vector<16x100xbf16>
    %c6_155 = arith.constant 6 : index
    %c0_156 = arith.constant 0 : index
    %c0_157 = arith.constant 0 : index
    %197 = vector.load %arg3[%c6_155, %c0_156, %c0_157] : memref<9x32x16xbf16, #tpu.memory_space<vmem>>, vector<1x32x16xbf16>
    %198 = vector.shape_cast %197 : vector<1x32x16xbf16> to vector<32x16xbf16>
    %cst_158 = arith.constant dense<0.000000e+00> : vector<32x100xf32>
    %199 = tpu.matmul %198, %196, %cst_158 {dimension_numbers = #tpu.dot_dimension_numbers<[1], [0], [0], [1], [0, 0, 1, 1], [], []>} : vector<32x16xbf16>, vector<16x100xbf16>, vector<32x100xf32> -> vector<32x100xf32>
    %200 = arith.addf %188, %199 : vector<32x100xf32>
    %c1_159 = arith.constant 1 : index
    %c7_160 = arith.constant 7 : index
    %c0_161 = arith.constant 0 : index
    %c0_162 = arith.constant 0 : index
    %201 = vector.load %arg0[%c1_159, %c7_160, %c0_161, %c0_162] : memref<2x9x36x100xbf16, #tpu.memory_space<vmem>>, vector<1x1x36x100xbf16>
    %202 = vector.shape_cast %201 : vector<1x1x36x100xbf16> to vector<36x100xbf16>
    %cst_163 = arith.constant dense<0.000000e+00> : vector<16x100xf32>
    %203 = tpu.matmul %0, %202, %cst_163 {dimension_numbers = #tpu.dot_dimension_numbers<[1], [0], [0], [1], [0, 0, 1, 1], [], []>} : vector<16x36xbf16>, vector<36x100xbf16>, vector<16x100xf32> -> vector<16x100xf32>
    %204 = vector.broadcast %1 : vector<16x1xf32> to vector<16x100xf32>
    %205 = arith.addf %203, %204 : vector<16x100xf32>
    %cst_164 = arith.constant 0.000000e+00 : f32
    %206 = vector.broadcast %cst_164 : f32 to vector<16x100xf32>
    %207 = arith.maximumf %205, %206 : vector<16x100xf32>
    %208 = arith.truncf %207 : vector<16x100xf32> to vector<16x100xbf16>
    %c7_165 = arith.constant 7 : index
    %c0_166 = arith.constant 0 : index
    %c0_167 = arith.constant 0 : index
    %209 = vector.load %arg3[%c7_165, %c0_166, %c0_167] : memref<9x32x16xbf16, #tpu.memory_space<vmem>>, vector<1x32x16xbf16>
    %210 = vector.shape_cast %209 : vector<1x32x16xbf16> to vector<32x16xbf16>
    %cst_168 = arith.constant dense<0.000000e+00> : vector<32x100xf32>
    %211 = tpu.matmul %210, %208, %cst_168 {dimension_numbers = #tpu.dot_dimension_numbers<[1], [0], [0], [1], [0, 0, 1, 1], [], []>} : vector<32x16xbf16>, vector<16x100xbf16>, vector<32x100xf32> -> vector<32x100xf32>
    %212 = arith.addf %200, %211 : vector<32x100xf32>
    %c1_169 = arith.constant 1 : index
    %c8_170 = arith.constant 8 : index
    %c0_171 = arith.constant 0 : index
    %c0_172 = arith.constant 0 : index
    %213 = vector.load %arg0[%c1_169, %c8_170, %c0_171, %c0_172] : memref<2x9x36x100xbf16, #tpu.memory_space<vmem>>, vector<1x1x36x100xbf16>
    %214 = vector.shape_cast %213 : vector<1x1x36x100xbf16> to vector<36x100xbf16>
    %cst_173 = arith.constant dense<0.000000e+00> : vector<16x100xf32>
    %215 = tpu.matmul %0, %214, %cst_173 {dimension_numbers = #tpu.dot_dimension_numbers<[1], [0], [0], [1], [0, 0, 1, 1], [], []>} : vector<16x36xbf16>, vector<36x100xbf16>, vector<16x100xf32> -> vector<16x100xf32>
    %216 = vector.broadcast %1 : vector<16x1xf32> to vector<16x100xf32>
    %217 = arith.addf %215, %216 : vector<16x100xf32>
    %cst_174 = arith.constant 0.000000e+00 : f32
    %218 = vector.broadcast %cst_174 : f32 to vector<16x100xf32>
    %219 = arith.maximumf %217, %218 : vector<16x100xf32>
    %220 = arith.truncf %219 : vector<16x100xf32> to vector<16x100xbf16>
    %c8_175 = arith.constant 8 : index
    %c0_176 = arith.constant 0 : index
    %c0_177 = arith.constant 0 : index
    %221 = vector.load %arg3[%c8_175, %c0_176, %c0_177] : memref<9x32x16xbf16, #tpu.memory_space<vmem>>, vector<1x32x16xbf16>
    %222 = vector.shape_cast %221 : vector<1x32x16xbf16> to vector<32x16xbf16>
    %cst_178 = arith.constant dense<0.000000e+00> : vector<32x100xf32>
    %223 = tpu.matmul %222, %220, %cst_178 {dimension_numbers = #tpu.dot_dimension_numbers<[1], [0], [0], [1], [0, 0, 1, 1], [], []>} : vector<32x16xbf16>, vector<16x100xbf16>, vector<32x100xf32> -> vector<32x100xf32>
    %224 = arith.addf %212, %223 : vector<32x100xf32>
    %225 = vector.broadcast %2 : vector<32x1xf32> to vector<32x100xf32>
    %226 = arith.addf %224, %225 : vector<32x100xf32>
    %cst_179 = arith.constant 0.000000e+00 : f32
    %227 = vector.broadcast %cst_179 : f32 to vector<32x100xf32>
    %228 = arith.maximumf %226, %227 : vector<32x100xf32>
    %cst_180 = arith.constant 0.000000e+00 : f32
    %229 = vector.broadcast %cst_180 : f32 to vector<2x256xf32>
    %230 = vector.extract_strided_slice %115 {offsets = [0, 0], sizes = [1, 100], strides = [1, 1]} : vector<32x100xf32> to vector<1x100xf32>
    %231 = vector.extract_strided_slice %228 {offsets = [0, 0], sizes = [1, 100], strides = [1, 1]} : vector<32x100xf32> to vector<1x100xf32>
    %232 = tpu.concatenate %230, %231 in 0 : vector<1x100xf32>, vector<1x100xf32> -> vector<2x100xf32>
    %233 = arith.truncf %232 : vector<2x100xf32> to vector<2x100xbf16>
    %c0_181 = arith.constant 0 : index
    %c0_182 = arith.constant 0 : index
    %c0_183 = arith.constant 0 : index
    %234 = vector.load %arg5[%c0_181, %c0_182, %c0_183] : memref<32x100x256xbf16, #tpu.memory_space<vmem>>, vector<1x100x256xbf16>
    %235 = vector.shape_cast %234 : vector<1x100x256xbf16> to vector<100x256xbf16>
    %cst_184 = arith.constant dense<0.000000e+00> : vector<2x256xf32>
    %236 = tpu.matmul %233, %235, %cst_184 {dimension_numbers = #tpu.dot_dimension_numbers<[1], [0], [0], [1], [0, 0, 1, 1], [], []>} : vector<2x100xbf16>, vector<100x256xbf16>, vector<2x256xf32> -> vector<2x256xf32>
    %237 = arith.addf %229, %236 : vector<2x256xf32>
    %238 = vector.extract_strided_slice %115 {offsets = [1, 0], sizes = [1, 100], strides = [1, 1]} : vector<32x100xf32> to vector<1x100xf32>
    %239 = vector.extract_strided_slice %228 {offsets = [1, 0], sizes = [1, 100], strides = [1, 1]} : vector<32x100xf32> to vector<1x100xf32>
    %240 = tpu.concatenate %238, %239 in 0 : vector<1x100xf32>, vector<1x100xf32> -> vector<2x100xf32>
    %241 = arith.truncf %240 : vector<2x100xf32> to vector<2x100xbf16>
    %c1_185 = arith.constant 1 : index
    %c0_186 = arith.constant 0 : index
    %c0_187 = arith.constant 0 : index
    %242 = vector.load %arg5[%c1_185, %c0_186, %c0_187] : memref<32x100x256xbf16, #tpu.memory_space<vmem>>, vector<1x100x256xbf16>
    %243 = vector.shape_cast %242 : vector<1x100x256xbf16> to vector<100x256xbf16>
    %cst_188 = arith.constant dense<0.000000e+00> : vector<2x256xf32>
    %244 = tpu.matmul %241, %243, %cst_188 {dimension_numbers = #tpu.dot_dimension_numbers<[1], [0], [0], [1], [0, 0, 1, 1], [], []>} : vector<2x100xbf16>, vector<100x256xbf16>, vector<2x256xf32> -> vector<2x256xf32>
    %245 = arith.addf %237, %244 : vector<2x256xf32>
    %246 = vector.extract_strided_slice %115 {offsets = [2, 0], sizes = [1, 100], strides = [1, 1]} : vector<32x100xf32> to vector<1x100xf32>
    %247 = vector.extract_strided_slice %228 {offsets = [2, 0], sizes = [1, 100], strides = [1, 1]} : vector<32x100xf32> to vector<1x100xf32>
    %248 = tpu.concatenate %246, %247 in 0 : vector<1x100xf32>, vector<1x100xf32> -> vector<2x100xf32>
    %249 = arith.truncf %248 : vector<2x100xf32> to vector<2x100xbf16>
    %c2_189 = arith.constant 2 : index
    %c0_190 = arith.constant 0 : index
    %c0_191 = arith.constant 0 : index
    %250 = vector.load %arg5[%c2_189, %c0_190, %c0_191] : memref<32x100x256xbf16, #tpu.memory_space<vmem>>, vector<1x100x256xbf16>
    %251 = vector.shape_cast %250 : vector<1x100x256xbf16> to vector<100x256xbf16>
    %cst_192 = arith.constant dense<0.000000e+00> : vector<2x256xf32>
    %252 = tpu.matmul %249, %251, %cst_192 {dimension_numbers = #tpu.dot_dimension_numbers<[1], [0], [0], [1], [0, 0, 1, 1], [], []>} : vector<2x100xbf16>, vector<100x256xbf16>, vector<2x256xf32> -> vector<2x256xf32>
    %253 = arith.addf %245, %252 : vector<2x256xf32>
    %254 = vector.extract_strided_slice %115 {offsets = [3, 0], sizes = [1, 100], strides = [1, 1]} : vector<32x100xf32> to vector<1x100xf32>
    %255 = vector.extract_strided_slice %228 {offsets = [3, 0], sizes = [1, 100], strides = [1, 1]} : vector<32x100xf32> to vector<1x100xf32>
    %256 = tpu.concatenate %254, %255 in 0 : vector<1x100xf32>, vector<1x100xf32> -> vector<2x100xf32>
    %257 = arith.truncf %256 : vector<2x100xf32> to vector<2x100xbf16>
    %c3_193 = arith.constant 3 : index
    %c0_194 = arith.constant 0 : index
    %c0_195 = arith.constant 0 : index
    %258 = vector.load %arg5[%c3_193, %c0_194, %c0_195] : memref<32x100x256xbf16, #tpu.memory_space<vmem>>, vector<1x100x256xbf16>
    %259 = vector.shape_cast %258 : vector<1x100x256xbf16> to vector<100x256xbf16>
    %cst_196 = arith.constant dense<0.000000e+00> : vector<2x256xf32>
    %260 = tpu.matmul %257, %259, %cst_196 {dimension_numbers = #tpu.dot_dimension_numbers<[1], [0], [0], [1], [0, 0, 1, 1], [], []>} : vector<2x100xbf16>, vector<100x256xbf16>, vector<2x256xf32> -> vector<2x256xf32>
    %261 = arith.addf %253, %260 : vector<2x256xf32>
    %262 = vector.extract_strided_slice %115 {offsets = [4, 0], sizes = [1, 100], strides = [1, 1]} : vector<32x100xf32> to vector<1x100xf32>
    %263 = vector.extract_strided_slice %228 {offsets = [4, 0], sizes = [1, 100], strides = [1, 1]} : vector<32x100xf32> to vector<1x100xf32>
    %264 = tpu.concatenate %262, %263 in 0 : vector<1x100xf32>, vector<1x100xf32> -> vector<2x100xf32>
    %265 = arith.truncf %264 : vector<2x100xf32> to vector<2x100xbf16>
    %c4_197 = arith.constant 4 : index
    %c0_198 = arith.constant 0 : index
    %c0_199 = arith.constant 0 : index
    %266 = vector.load %arg5[%c4_197, %c0_198, %c0_199] : memref<32x100x256xbf16, #tpu.memory_space<vmem>>, vector<1x100x256xbf16>
    %267 = vector.shape_cast %266 : vector<1x100x256xbf16> to vector<100x256xbf16>
    %cst_200 = arith.constant dense<0.000000e+00> : vector<2x256xf32>
    %268 = tpu.matmul %265, %267, %cst_200 {dimension_numbers = #tpu.dot_dimension_numbers<[1], [0], [0], [1], [0, 0, 1, 1], [], []>} : vector<2x100xbf16>, vector<100x256xbf16>, vector<2x256xf32> -> vector<2x256xf32>
    %269 = arith.addf %261, %268 : vector<2x256xf32>
    %270 = vector.extract_strided_slice %115 {offsets = [5, 0], sizes = [1, 100], strides = [1, 1]} : vector<32x100xf32> to vector<1x100xf32>
    %271 = vector.extract_strided_slice %228 {offsets = [5, 0], sizes = [1, 100], strides = [1, 1]} : vector<32x100xf32> to vector<1x100xf32>
    %272 = tpu.concatenate %270, %271 in 0 : vector<1x100xf32>, vector<1x100xf32> -> vector<2x100xf32>
    %273 = arith.truncf %272 : vector<2x100xf32> to vector<2x100xbf16>
    %c5_201 = arith.constant 5 : index
    %c0_202 = arith.constant 0 : index
    %c0_203 = arith.constant 0 : index
    %274 = vector.load %arg5[%c5_201, %c0_202, %c0_203] : memref<32x100x256xbf16, #tpu.memory_space<vmem>>, vector<1x100x256xbf16>
    %275 = vector.shape_cast %274 : vector<1x100x256xbf16> to vector<100x256xbf16>
    %cst_204 = arith.constant dense<0.000000e+00> : vector<2x256xf32>
    %276 = tpu.matmul %273, %275, %cst_204 {dimension_numbers = #tpu.dot_dimension_numbers<[1], [0], [0], [1], [0, 0, 1, 1], [], []>} : vector<2x100xbf16>, vector<100x256xbf16>, vector<2x256xf32> -> vector<2x256xf32>
    %277 = arith.addf %269, %276 : vector<2x256xf32>
    %278 = vector.extract_strided_slice %115 {offsets = [6, 0], sizes = [1, 100], strides = [1, 1]} : vector<32x100xf32> to vector<1x100xf32>
    %279 = vector.extract_strided_slice %228 {offsets = [6, 0], sizes = [1, 100], strides = [1, 1]} : vector<32x100xf32> to vector<1x100xf32>
    %280 = tpu.concatenate %278, %279 in 0 : vector<1x100xf32>, vector<1x100xf32> -> vector<2x100xf32>
    %281 = arith.truncf %280 : vector<2x100xf32> to vector<2x100xbf16>
    %c6_205 = arith.constant 6 : index
    %c0_206 = arith.constant 0 : index
    %c0_207 = arith.constant 0 : index
    %282 = vector.load %arg5[%c6_205, %c0_206, %c0_207] : memref<32x100x256xbf16, #tpu.memory_space<vmem>>, vector<1x100x256xbf16>
    %283 = vector.shape_cast %282 : vector<1x100x256xbf16> to vector<100x256xbf16>
    %cst_208 = arith.constant dense<0.000000e+00> : vector<2x256xf32>
    %284 = tpu.matmul %281, %283, %cst_208 {dimension_numbers = #tpu.dot_dimension_numbers<[1], [0], [0], [1], [0, 0, 1, 1], [], []>} : vector<2x100xbf16>, vector<100x256xbf16>, vector<2x256xf32> -> vector<2x256xf32>
    %285 = arith.addf %277, %284 : vector<2x256xf32>
    %286 = vector.extract_strided_slice %115 {offsets = [7, 0], sizes = [1, 100], strides = [1, 1]} : vector<32x100xf32> to vector<1x100xf32>
    %287 = vector.extract_strided_slice %228 {offsets = [7, 0], sizes = [1, 100], strides = [1, 1]} : vector<32x100xf32> to vector<1x100xf32>
    %288 = tpu.concatenate %286, %287 in 0 : vector<1x100xf32>, vector<1x100xf32> -> vector<2x100xf32>
    %289 = arith.truncf %288 : vector<2x100xf32> to vector<2x100xbf16>
    %c7_209 = arith.constant 7 : index
    %c0_210 = arith.constant 0 : index
    %c0_211 = arith.constant 0 : index
    %290 = vector.load %arg5[%c7_209, %c0_210, %c0_211] : memref<32x100x256xbf16, #tpu.memory_space<vmem>>, vector<1x100x256xbf16>
    %291 = vector.shape_cast %290 : vector<1x100x256xbf16> to vector<100x256xbf16>
    %cst_212 = arith.constant dense<0.000000e+00> : vector<2x256xf32>
    %292 = tpu.matmul %289, %291, %cst_212 {dimension_numbers = #tpu.dot_dimension_numbers<[1], [0], [0], [1], [0, 0, 1, 1], [], []>} : vector<2x100xbf16>, vector<100x256xbf16>, vector<2x256xf32> -> vector<2x256xf32>
    %293 = arith.addf %285, %292 : vector<2x256xf32>
    %294 = vector.extract_strided_slice %115 {offsets = [8, 0], sizes = [1, 100], strides = [1, 1]} : vector<32x100xf32> to vector<1x100xf32>
    %295 = vector.extract_strided_slice %228 {offsets = [8, 0], sizes = [1, 100], strides = [1, 1]} : vector<32x100xf32> to vector<1x100xf32>
    %296 = tpu.concatenate %294, %295 in 0 : vector<1x100xf32>, vector<1x100xf32> -> vector<2x100xf32>
    %297 = arith.truncf %296 : vector<2x100xf32> to vector<2x100xbf16>
    %c8_213 = arith.constant 8 : index
    %c0_214 = arith.constant 0 : index
    %c0_215 = arith.constant 0 : index
    %298 = vector.load %arg5[%c8_213, %c0_214, %c0_215] : memref<32x100x256xbf16, #tpu.memory_space<vmem>>, vector<1x100x256xbf16>
    %299 = vector.shape_cast %298 : vector<1x100x256xbf16> to vector<100x256xbf16>
    %cst_216 = arith.constant dense<0.000000e+00> : vector<2x256xf32>
    %300 = tpu.matmul %297, %299, %cst_216 {dimension_numbers = #tpu.dot_dimension_numbers<[1], [0], [0], [1], [0, 0, 1, 1], [], []>} : vector<2x100xbf16>, vector<100x256xbf16>, vector<2x256xf32> -> vector<2x256xf32>
    %301 = arith.addf %293, %300 : vector<2x256xf32>
    %302 = vector.extract_strided_slice %115 {offsets = [9, 0], sizes = [1, 100], strides = [1, 1]} : vector<32x100xf32> to vector<1x100xf32>
    %303 = vector.extract_strided_slice %228 {offsets = [9, 0], sizes = [1, 100], strides = [1, 1]} : vector<32x100xf32> to vector<1x100xf32>
    %304 = tpu.concatenate %302, %303 in 0 : vector<1x100xf32>, vector<1x100xf32> -> vector<2x100xf32>
    %305 = arith.truncf %304 : vector<2x100xf32> to vector<2x100xbf16>
    %c9 = arith.constant 9 : index
    %c0_217 = arith.constant 0 : index
    %c0_218 = arith.constant 0 : index
    %306 = vector.load %arg5[%c9, %c0_217, %c0_218] : memref<32x100x256xbf16, #tpu.memory_space<vmem>>, vector<1x100x256xbf16>
    %307 = vector.shape_cast %306 : vector<1x100x256xbf16> to vector<100x256xbf16>
    %cst_219 = arith.constant dense<0.000000e+00> : vector<2x256xf32>
    %308 = tpu.matmul %305, %307, %cst_219 {dimension_numbers = #tpu.dot_dimension_numbers<[1], [0], [0], [1], [0, 0, 1, 1], [], []>} : vector<2x100xbf16>, vector<100x256xbf16>, vector<2x256xf32> -> vector<2x256xf32>
    %309 = arith.addf %301, %308 : vector<2x256xf32>
    %310 = vector.extract_strided_slice %115 {offsets = [10, 0], sizes = [1, 100], strides = [1, 1]} : vector<32x100xf32> to vector<1x100xf32>
    %311 = vector.extract_strided_slice %228 {offsets = [10, 0], sizes = [1, 100], strides = [1, 1]} : vector<32x100xf32> to vector<1x100xf32>
    %312 = tpu.concatenate %310, %311 in 0 : vector<1x100xf32>, vector<1x100xf32> -> vector<2x100xf32>
    %313 = arith.truncf %312 : vector<2x100xf32> to vector<2x100xbf16>
    %c10 = arith.constant 10 : index
    %c0_220 = arith.constant 0 : index
    %c0_221 = arith.constant 0 : index
    %314 = vector.load %arg5[%c10, %c0_220, %c0_221] : memref<32x100x256xbf16, #tpu.memory_space<vmem>>, vector<1x100x256xbf16>
    %315 = vector.shape_cast %314 : vector<1x100x256xbf16> to vector<100x256xbf16>
    %cst_222 = arith.constant dense<0.000000e+00> : vector<2x256xf32>
    %316 = tpu.matmul %313, %315, %cst_222 {dimension_numbers = #tpu.dot_dimension_numbers<[1], [0], [0], [1], [0, 0, 1, 1], [], []>} : vector<2x100xbf16>, vector<100x256xbf16>, vector<2x256xf32> -> vector<2x256xf32>
    %317 = arith.addf %309, %316 : vector<2x256xf32>
    %318 = vector.extract_strided_slice %115 {offsets = [11, 0], sizes = [1, 100], strides = [1, 1]} : vector<32x100xf32> to vector<1x100xf32>
    %319 = vector.extract_strided_slice %228 {offsets = [11, 0], sizes = [1, 100], strides = [1, 1]} : vector<32x100xf32> to vector<1x100xf32>
    %320 = tpu.concatenate %318, %319 in 0 : vector<1x100xf32>, vector<1x100xf32> -> vector<2x100xf32>
    %321 = arith.truncf %320 : vector<2x100xf32> to vector<2x100xbf16>
    %c11 = arith.constant 11 : index
    %c0_223 = arith.constant 0 : index
    %c0_224 = arith.constant 0 : index
    %322 = vector.load %arg5[%c11, %c0_223, %c0_224] : memref<32x100x256xbf16, #tpu.memory_space<vmem>>, vector<1x100x256xbf16>
    %323 = vector.shape_cast %322 : vector<1x100x256xbf16> to vector<100x256xbf16>
    %cst_225 = arith.constant dense<0.000000e+00> : vector<2x256xf32>
    %324 = tpu.matmul %321, %323, %cst_225 {dimension_numbers = #tpu.dot_dimension_numbers<[1], [0], [0], [1], [0, 0, 1, 1], [], []>} : vector<2x100xbf16>, vector<100x256xbf16>, vector<2x256xf32> -> vector<2x256xf32>
    %325 = arith.addf %317, %324 : vector<2x256xf32>
    %326 = vector.extract_strided_slice %115 {offsets = [12, 0], sizes = [1, 100], strides = [1, 1]} : vector<32x100xf32> to vector<1x100xf32>
    %327 = vector.extract_strided_slice %228 {offsets = [12, 0], sizes = [1, 100], strides = [1, 1]} : vector<32x100xf32> to vector<1x100xf32>
    %328 = tpu.concatenate %326, %327 in 0 : vector<1x100xf32>, vector<1x100xf32> -> vector<2x100xf32>
    %329 = arith.truncf %328 : vector<2x100xf32> to vector<2x100xbf16>
    %c12 = arith.constant 12 : index
    %c0_226 = arith.constant 0 : index
    %c0_227 = arith.constant 0 : index
    %330 = vector.load %arg5[%c12, %c0_226, %c0_227] : memref<32x100x256xbf16, #tpu.memory_space<vmem>>, vector<1x100x256xbf16>
    %331 = vector.shape_cast %330 : vector<1x100x256xbf16> to vector<100x256xbf16>
    %cst_228 = arith.constant dense<0.000000e+00> : vector<2x256xf32>
    %332 = tpu.matmul %329, %331, %cst_228 {dimension_numbers = #tpu.dot_dimension_numbers<[1], [0], [0], [1], [0, 0, 1, 1], [], []>} : vector<2x100xbf16>, vector<100x256xbf16>, vector<2x256xf32> -> vector<2x256xf32>
    %333 = arith.addf %325, %332 : vector<2x256xf32>
    %334 = vector.extract_strided_slice %115 {offsets = [13, 0], sizes = [1, 100], strides = [1, 1]} : vector<32x100xf32> to vector<1x100xf32>
    %335 = vector.extract_strided_slice %228 {offsets = [13, 0], sizes = [1, 100], strides = [1, 1]} : vector<32x100xf32> to vector<1x100xf32>
    %336 = tpu.concatenate %334, %335 in 0 : vector<1x100xf32>, vector<1x100xf32> -> vector<2x100xf32>
    %337 = arith.truncf %336 : vector<2x100xf32> to vector<2x100xbf16>
    %c13 = arith.constant 13 : index
    %c0_229 = arith.constant 0 : index
    %c0_230 = arith.constant 0 : index
    %338 = vector.load %arg5[%c13, %c0_229, %c0_230] : memref<32x100x256xbf16, #tpu.memory_space<vmem>>, vector<1x100x256xbf16>
    %339 = vector.shape_cast %338 : vector<1x100x256xbf16> to vector<100x256xbf16>
    %cst_231 = arith.constant dense<0.000000e+00> : vector<2x256xf32>
    %340 = tpu.matmul %337, %339, %cst_231 {dimension_numbers = #tpu.dot_dimension_numbers<[1], [0], [0], [1], [0, 0, 1, 1], [], []>} : vector<2x100xbf16>, vector<100x256xbf16>, vector<2x256xf32> -> vector<2x256xf32>
    %341 = arith.addf %333, %340 : vector<2x256xf32>
    %342 = vector.extract_strided_slice %115 {offsets = [14, 0], sizes = [1, 100], strides = [1, 1]} : vector<32x100xf32> to vector<1x100xf32>
    %343 = vector.extract_strided_slice %228 {offsets = [14, 0], sizes = [1, 100], strides = [1, 1]} : vector<32x100xf32> to vector<1x100xf32>
    %344 = tpu.concatenate %342, %343 in 0 : vector<1x100xf32>, vector<1x100xf32> -> vector<2x100xf32>
    %345 = arith.truncf %344 : vector<2x100xf32> to vector<2x100xbf16>
    %c14 = arith.constant 14 : index
    %c0_232 = arith.constant 0 : index
    %c0_233 = arith.constant 0 : index
    %346 = vector.load %arg5[%c14, %c0_232, %c0_233] : memref<32x100x256xbf16, #tpu.memory_space<vmem>>, vector<1x100x256xbf16>
    %347 = vector.shape_cast %346 : vector<1x100x256xbf16> to vector<100x256xbf16>
    %cst_234 = arith.constant dense<0.000000e+00> : vector<2x256xf32>
    %348 = tpu.matmul %345, %347, %cst_234 {dimension_numbers = #tpu.dot_dimension_numbers<[1], [0], [0], [1], [0, 0, 1, 1], [], []>} : vector<2x100xbf16>, vector<100x256xbf16>, vector<2x256xf32> -> vector<2x256xf32>
    %349 = arith.addf %341, %348 : vector<2x256xf32>
    %350 = vector.extract_strided_slice %115 {offsets = [15, 0], sizes = [1, 100], strides = [1, 1]} : vector<32x100xf32> to vector<1x100xf32>
    %351 = vector.extract_strided_slice %228 {offsets = [15, 0], sizes = [1, 100], strides = [1, 1]} : vector<32x100xf32> to vector<1x100xf32>
    %352 = tpu.concatenate %350, %351 in 0 : vector<1x100xf32>, vector<1x100xf32> -> vector<2x100xf32>
    %353 = arith.truncf %352 : vector<2x100xf32> to vector<2x100xbf16>
    %c15 = arith.constant 15 : index
    %c0_235 = arith.constant 0 : index
    %c0_236 = arith.constant 0 : index
    %354 = vector.load %arg5[%c15, %c0_235, %c0_236] : memref<32x100x256xbf16, #tpu.memory_space<vmem>>, vector<1x100x256xbf16>
    %355 = vector.shape_cast %354 : vector<1x100x256xbf16> to vector<100x256xbf16>
    %cst_237 = arith.constant dense<0.000000e+00> : vector<2x256xf32>
    %356 = tpu.matmul %353, %355, %cst_237 {dimension_numbers = #tpu.dot_dimension_numbers<[1], [0], [0], [1], [0, 0, 1, 1], [], []>} : vector<2x100xbf16>, vector<100x256xbf16>, vector<2x256xf32> -> vector<2x256xf32>
    %357 = arith.addf %349, %356 : vector<2x256xf32>
    %358 = vector.extract_strided_slice %115 {offsets = [16, 0], sizes = [1, 100], strides = [1, 1]} : vector<32x100xf32> to vector<1x100xf32>
    %359 = vector.extract_strided_slice %228 {offsets = [16, 0], sizes = [1, 100], strides = [1, 1]} : vector<32x100xf32> to vector<1x100xf32>
    %360 = tpu.concatenate %358, %359 in 0 : vector<1x100xf32>, vector<1x100xf32> -> vector<2x100xf32>
    %361 = arith.truncf %360 : vector<2x100xf32> to vector<2x100xbf16>
    %c16 = arith.constant 16 : index
    %c0_238 = arith.constant 0 : index
    %c0_239 = arith.constant 0 : index
    %362 = vector.load %arg5[%c16, %c0_238, %c0_239] : memref<32x100x256xbf16, #tpu.memory_space<vmem>>, vector<1x100x256xbf16>
    %363 = vector.shape_cast %362 : vector<1x100x256xbf16> to vector<100x256xbf16>
    %cst_240 = arith.constant dense<0.000000e+00> : vector<2x256xf32>
    %364 = tpu.matmul %361, %363, %cst_240 {dimension_numbers = #tpu.dot_dimension_numbers<[1], [0], [0], [1], [0, 0, 1, 1], [], []>} : vector<2x100xbf16>, vector<100x256xbf16>, vector<2x256xf32> -> vector<2x256xf32>
    %365 = arith.addf %357, %364 : vector<2x256xf32>
    %366 = vector.extract_strided_slice %115 {offsets = [17, 0], sizes = [1, 100], strides = [1, 1]} : vector<32x100xf32> to vector<1x100xf32>
    %367 = vector.extract_strided_slice %228 {offsets = [17, 0], sizes = [1, 100], strides = [1, 1]} : vector<32x100xf32> to vector<1x100xf32>
    %368 = tpu.concatenate %366, %367 in 0 : vector<1x100xf32>, vector<1x100xf32> -> vector<2x100xf32>
    %369 = arith.truncf %368 : vector<2x100xf32> to vector<2x100xbf16>
    %c17 = arith.constant 17 : index
    %c0_241 = arith.constant 0 : index
    %c0_242 = arith.constant 0 : index
    %370 = vector.load %arg5[%c17, %c0_241, %c0_242] : memref<32x100x256xbf16, #tpu.memory_space<vmem>>, vector<1x100x256xbf16>
    %371 = vector.shape_cast %370 : vector<1x100x256xbf16> to vector<100x256xbf16>
    %cst_243 = arith.constant dense<0.000000e+00> : vector<2x256xf32>
    %372 = tpu.matmul %369, %371, %cst_243 {dimension_numbers = #tpu.dot_dimension_numbers<[1], [0], [0], [1], [0, 0, 1, 1], [], []>} : vector<2x100xbf16>, vector<100x256xbf16>, vector<2x256xf32> -> vector<2x256xf32>
    %373 = arith.addf %365, %372 : vector<2x256xf32>
    %374 = vector.extract_strided_slice %115 {offsets = [18, 0], sizes = [1, 100], strides = [1, 1]} : vector<32x100xf32> to vector<1x100xf32>
    %375 = vector.extract_strided_slice %228 {offsets = [18, 0], sizes = [1, 100], strides = [1, 1]} : vector<32x100xf32> to vector<1x100xf32>
    %376 = tpu.concatenate %374, %375 in 0 : vector<1x100xf32>, vector<1x100xf32> -> vector<2x100xf32>
    %377 = arith.truncf %376 : vector<2x100xf32> to vector<2x100xbf16>
    %c18 = arith.constant 18 : index
    %c0_244 = arith.constant 0 : index
    %c0_245 = arith.constant 0 : index
    %378 = vector.load %arg5[%c18, %c0_244, %c0_245] : memref<32x100x256xbf16, #tpu.memory_space<vmem>>, vector<1x100x256xbf16>
    %379 = vector.shape_cast %378 : vector<1x100x256xbf16> to vector<100x256xbf16>
    %cst_246 = arith.constant dense<0.000000e+00> : vector<2x256xf32>
    %380 = tpu.matmul %377, %379, %cst_246 {dimension_numbers = #tpu.dot_dimension_numbers<[1], [0], [0], [1], [0, 0, 1, 1], [], []>} : vector<2x100xbf16>, vector<100x256xbf16>, vector<2x256xf32> -> vector<2x256xf32>
    %381 = arith.addf %373, %380 : vector<2x256xf32>
    %382 = vector.extract_strided_slice %115 {offsets = [19, 0], sizes = [1, 100], strides = [1, 1]} : vector<32x100xf32> to vector<1x100xf32>
    %383 = vector.extract_strided_slice %228 {offsets = [19, 0], sizes = [1, 100], strides = [1, 1]} : vector<32x100xf32> to vector<1x100xf32>
    %384 = tpu.concatenate %382, %383 in 0 : vector<1x100xf32>, vector<1x100xf32> -> vector<2x100xf32>
    %385 = arith.truncf %384 : vector<2x100xf32> to vector<2x100xbf16>
    %c19 = arith.constant 19 : index
    %c0_247 = arith.constant 0 : index
    %c0_248 = arith.constant 0 : index
    %386 = vector.load %arg5[%c19, %c0_247, %c0_248] : memref<32x100x256xbf16, #tpu.memory_space<vmem>>, vector<1x100x256xbf16>
    %387 = vector.shape_cast %386 : vector<1x100x256xbf16> to vector<100x256xbf16>
    %cst_249 = arith.constant dense<0.000000e+00> : vector<2x256xf32>
    %388 = tpu.matmul %385, %387, %cst_249 {dimension_numbers = #tpu.dot_dimension_numbers<[1], [0], [0], [1], [0, 0, 1, 1], [], []>} : vector<2x100xbf16>, vector<100x256xbf16>, vector<2x256xf32> -> vector<2x256xf32>
    %389 = arith.addf %381, %388 : vector<2x256xf32>
    %390 = vector.extract_strided_slice %115 {offsets = [20, 0], sizes = [1, 100], strides = [1, 1]} : vector<32x100xf32> to vector<1x100xf32>
    %391 = vector.extract_strided_slice %228 {offsets = [20, 0], sizes = [1, 100], strides = [1, 1]} : vector<32x100xf32> to vector<1x100xf32>
    %392 = tpu.concatenate %390, %391 in 0 : vector<1x100xf32>, vector<1x100xf32> -> vector<2x100xf32>
    %393 = arith.truncf %392 : vector<2x100xf32> to vector<2x100xbf16>
    %c20 = arith.constant 20 : index
    %c0_250 = arith.constant 0 : index
    %c0_251 = arith.constant 0 : index
    %394 = vector.load %arg5[%c20, %c0_250, %c0_251] : memref<32x100x256xbf16, #tpu.memory_space<vmem>>, vector<1x100x256xbf16>
    %395 = vector.shape_cast %394 : vector<1x100x256xbf16> to vector<100x256xbf16>
    %cst_252 = arith.constant dense<0.000000e+00> : vector<2x256xf32>
    %396 = tpu.matmul %393, %395, %cst_252 {dimension_numbers = #tpu.dot_dimension_numbers<[1], [0], [0], [1], [0, 0, 1, 1], [], []>} : vector<2x100xbf16>, vector<100x256xbf16>, vector<2x256xf32> -> vector<2x256xf32>
    %397 = arith.addf %389, %396 : vector<2x256xf32>
    %398 = vector.extract_strided_slice %115 {offsets = [21, 0], sizes = [1, 100], strides = [1, 1]} : vector<32x100xf32> to vector<1x100xf32>
    %399 = vector.extract_strided_slice %228 {offsets = [21, 0], sizes = [1, 100], strides = [1, 1]} : vector<32x100xf32> to vector<1x100xf32>
    %400 = tpu.concatenate %398, %399 in 0 : vector<1x100xf32>, vector<1x100xf32> -> vector<2x100xf32>
    %401 = arith.truncf %400 : vector<2x100xf32> to vector<2x100xbf16>
    %c21 = arith.constant 21 : index
    %c0_253 = arith.constant 0 : index
    %c0_254 = arith.constant 0 : index
    %402 = vector.load %arg5[%c21, %c0_253, %c0_254] : memref<32x100x256xbf16, #tpu.memory_space<vmem>>, vector<1x100x256xbf16>
    %403 = vector.shape_cast %402 : vector<1x100x256xbf16> to vector<100x256xbf16>
    %cst_255 = arith.constant dense<0.000000e+00> : vector<2x256xf32>
    %404 = tpu.matmul %401, %403, %cst_255 {dimension_numbers = #tpu.dot_dimension_numbers<[1], [0], [0], [1], [0, 0, 1, 1], [], []>} : vector<2x100xbf16>, vector<100x256xbf16>, vector<2x256xf32> -> vector<2x256xf32>
    %405 = arith.addf %397, %404 : vector<2x256xf32>
    %406 = vector.extract_strided_slice %115 {offsets = [22, 0], sizes = [1, 100], strides = [1, 1]} : vector<32x100xf32> to vector<1x100xf32>
    %407 = vector.extract_strided_slice %228 {offsets = [22, 0], sizes = [1, 100], strides = [1, 1]} : vector<32x100xf32> to vector<1x100xf32>
    %408 = tpu.concatenate %406, %407 in 0 : vector<1x100xf32>, vector<1x100xf32> -> vector<2x100xf32>
    %409 = arith.truncf %408 : vector<2x100xf32> to vector<2x100xbf16>
    %c22 = arith.constant 22 : index
    %c0_256 = arith.constant 0 : index
    %c0_257 = arith.constant 0 : index
    %410 = vector.load %arg5[%c22, %c0_256, %c0_257] : memref<32x100x256xbf16, #tpu.memory_space<vmem>>, vector<1x100x256xbf16>
    %411 = vector.shape_cast %410 : vector<1x100x256xbf16> to vector<100x256xbf16>
    %cst_258 = arith.constant dense<0.000000e+00> : vector<2x256xf32>
    %412 = tpu.matmul %409, %411, %cst_258 {dimension_numbers = #tpu.dot_dimension_numbers<[1], [0], [0], [1], [0, 0, 1, 1], [], []>} : vector<2x100xbf16>, vector<100x256xbf16>, vector<2x256xf32> -> vector<2x256xf32>
    %413 = arith.addf %405, %412 : vector<2x256xf32>
    %414 = vector.extract_strided_slice %115 {offsets = [23, 0], sizes = [1, 100], strides = [1, 1]} : vector<32x100xf32> to vector<1x100xf32>
    %415 = vector.extract_strided_slice %228 {offsets = [23, 0], sizes = [1, 100], strides = [1, 1]} : vector<32x100xf32> to vector<1x100xf32>
    %416 = tpu.concatenate %414, %415 in 0 : vector<1x100xf32>, vector<1x100xf32> -> vector<2x100xf32>
    %417 = arith.truncf %416 : vector<2x100xf32> to vector<2x100xbf16>
    %c23 = arith.constant 23 : index
    %c0_259 = arith.constant 0 : index
    %c0_260 = arith.constant 0 : index
    %418 = vector.load %arg5[%c23, %c0_259, %c0_260] : memref<32x100x256xbf16, #tpu.memory_space<vmem>>, vector<1x100x256xbf16>
    %419 = vector.shape_cast %418 : vector<1x100x256xbf16> to vector<100x256xbf16>
    %cst_261 = arith.constant dense<0.000000e+00> : vector<2x256xf32>
    %420 = tpu.matmul %417, %419, %cst_261 {dimension_numbers = #tpu.dot_dimension_numbers<[1], [0], [0], [1], [0, 0, 1, 1], [], []>} : vector<2x100xbf16>, vector<100x256xbf16>, vector<2x256xf32> -> vector<2x256xf32>
    %421 = arith.addf %413, %420 : vector<2x256xf32>
    %422 = vector.extract_strided_slice %115 {offsets = [24, 0], sizes = [1, 100], strides = [1, 1]} : vector<32x100xf32> to vector<1x100xf32>
    %423 = vector.extract_strided_slice %228 {offsets = [24, 0], sizes = [1, 100], strides = [1, 1]} : vector<32x100xf32> to vector<1x100xf32>
    %424 = tpu.concatenate %422, %423 in 0 : vector<1x100xf32>, vector<1x100xf32> -> vector<2x100xf32>
    %425 = arith.truncf %424 : vector<2x100xf32> to vector<2x100xbf16>
    %c24 = arith.constant 24 : index
    %c0_262 = arith.constant 0 : index
    %c0_263 = arith.constant 0 : index
    %426 = vector.load %arg5[%c24, %c0_262, %c0_263] : memref<32x100x256xbf16, #tpu.memory_space<vmem>>, vector<1x100x256xbf16>
    %427 = vector.shape_cast %426 : vector<1x100x256xbf16> to vector<100x256xbf16>
    %cst_264 = arith.constant dense<0.000000e+00> : vector<2x256xf32>
    %428 = tpu.matmul %425, %427, %cst_264 {dimension_numbers = #tpu.dot_dimension_numbers<[1], [0], [0], [1], [0, 0, 1, 1], [], []>} : vector<2x100xbf16>, vector<100x256xbf16>, vector<2x256xf32> -> vector<2x256xf32>
    %429 = arith.addf %421, %428 : vector<2x256xf32>
    %430 = vector.extract_strided_slice %115 {offsets = [25, 0], sizes = [1, 100], strides = [1, 1]} : vector<32x100xf32> to vector<1x100xf32>
    %431 = vector.extract_strided_slice %228 {offsets = [25, 0], sizes = [1, 100], strides = [1, 1]} : vector<32x100xf32> to vector<1x100xf32>
    %432 = tpu.concatenate %430, %431 in 0 : vector<1x100xf32>, vector<1x100xf32> -> vector<2x100xf32>
    %433 = arith.truncf %432 : vector<2x100xf32> to vector<2x100xbf16>
    %c25 = arith.constant 25 : index
    %c0_265 = arith.constant 0 : index
    %c0_266 = arith.constant 0 : index
    %434 = vector.load %arg5[%c25, %c0_265, %c0_266] : memref<32x100x256xbf16, #tpu.memory_space<vmem>>, vector<1x100x256xbf16>
    %435 = vector.shape_cast %434 : vector<1x100x256xbf16> to vector<100x256xbf16>
    %cst_267 = arith.constant dense<0.000000e+00> : vector<2x256xf32>
    %436 = tpu.matmul %433, %435, %cst_267 {dimension_numbers = #tpu.dot_dimension_numbers<[1], [0], [0], [1], [0, 0, 1, 1], [], []>} : vector<2x100xbf16>, vector<100x256xbf16>, vector<2x256xf32> -> vector<2x256xf32>
    %437 = arith.addf %429, %436 : vector<2x256xf32>
    %438 = vector.extract_strided_slice %115 {offsets = [26, 0], sizes = [1, 100], strides = [1, 1]} : vector<32x100xf32> to vector<1x100xf32>
    %439 = vector.extract_strided_slice %228 {offsets = [26, 0], sizes = [1, 100], strides = [1, 1]} : vector<32x100xf32> to vector<1x100xf32>
    %440 = tpu.concatenate %438, %439 in 0 : vector<1x100xf32>, vector<1x100xf32> -> vector<2x100xf32>
    %441 = arith.truncf %440 : vector<2x100xf32> to vector<2x100xbf16>
    %c26 = arith.constant 26 : index
    %c0_268 = arith.constant 0 : index
    %c0_269 = arith.constant 0 : index
    %442 = vector.load %arg5[%c26, %c0_268, %c0_269] : memref<32x100x256xbf16, #tpu.memory_space<vmem>>, vector<1x100x256xbf16>
    %443 = vector.shape_cast %442 : vector<1x100x256xbf16> to vector<100x256xbf16>
    %cst_270 = arith.constant dense<0.000000e+00> : vector<2x256xf32>
    %444 = tpu.matmul %441, %443, %cst_270 {dimension_numbers = #tpu.dot_dimension_numbers<[1], [0], [0], [1], [0, 0, 1, 1], [], []>} : vector<2x100xbf16>, vector<100x256xbf16>, vector<2x256xf32> -> vector<2x256xf32>
    %445 = arith.addf %437, %444 : vector<2x256xf32>
    %446 = vector.extract_strided_slice %115 {offsets = [27, 0], sizes = [1, 100], strides = [1, 1]} : vector<32x100xf32> to vector<1x100xf32>
    %447 = vector.extract_strided_slice %228 {offsets = [27, 0], sizes = [1, 100], strides = [1, 1]} : vector<32x100xf32> to vector<1x100xf32>
    %448 = tpu.concatenate %446, %447 in 0 : vector<1x100xf32>, vector<1x100xf32> -> vector<2x100xf32>
    %449 = arith.truncf %448 : vector<2x100xf32> to vector<2x100xbf16>
    %c27 = arith.constant 27 : index
    %c0_271 = arith.constant 0 : index
    %c0_272 = arith.constant 0 : index
    %450 = vector.load %arg5[%c27, %c0_271, %c0_272] : memref<32x100x256xbf16, #tpu.memory_space<vmem>>, vector<1x100x256xbf16>
    %451 = vector.shape_cast %450 : vector<1x100x256xbf16> to vector<100x256xbf16>
    %cst_273 = arith.constant dense<0.000000e+00> : vector<2x256xf32>
    %452 = tpu.matmul %449, %451, %cst_273 {dimension_numbers = #tpu.dot_dimension_numbers<[1], [0], [0], [1], [0, 0, 1, 1], [], []>} : vector<2x100xbf16>, vector<100x256xbf16>, vector<2x256xf32> -> vector<2x256xf32>
    %453 = arith.addf %445, %452 : vector<2x256xf32>
    %454 = vector.extract_strided_slice %115 {offsets = [28, 0], sizes = [1, 100], strides = [1, 1]} : vector<32x100xf32> to vector<1x100xf32>
    %455 = vector.extract_strided_slice %228 {offsets = [28, 0], sizes = [1, 100], strides = [1, 1]} : vector<32x100xf32> to vector<1x100xf32>
    %456 = tpu.concatenate %454, %455 in 0 : vector<1x100xf32>, vector<1x100xf32> -> vector<2x100xf32>
    %457 = arith.truncf %456 : vector<2x100xf32> to vector<2x100xbf16>
    %c28 = arith.constant 28 : index
    %c0_274 = arith.constant 0 : index
    %c0_275 = arith.constant 0 : index
    %458 = vector.load %arg5[%c28, %c0_274, %c0_275] : memref<32x100x256xbf16, #tpu.memory_space<vmem>>, vector<1x100x256xbf16>
    %459 = vector.shape_cast %458 : vector<1x100x256xbf16> to vector<100x256xbf16>
    %cst_276 = arith.constant dense<0.000000e+00> : vector<2x256xf32>
    %460 = tpu.matmul %457, %459, %cst_276 {dimension_numbers = #tpu.dot_dimension_numbers<[1], [0], [0], [1], [0, 0, 1, 1], [], []>} : vector<2x100xbf16>, vector<100x256xbf16>, vector<2x256xf32> -> vector<2x256xf32>
    %461 = arith.addf %453, %460 : vector<2x256xf32>
    %462 = vector.extract_strided_slice %115 {offsets = [29, 0], sizes = [1, 100], strides = [1, 1]} : vector<32x100xf32> to vector<1x100xf32>
    %463 = vector.extract_strided_slice %228 {offsets = [29, 0], sizes = [1, 100], strides = [1, 1]} : vector<32x100xf32> to vector<1x100xf32>
    %464 = tpu.concatenate %462, %463 in 0 : vector<1x100xf32>, vector<1x100xf32> -> vector<2x100xf32>
    %465 = arith.truncf %464 : vector<2x100xf32> to vector<2x100xbf16>
    %c29 = arith.constant 29 : index
    %c0_277 = arith.constant 0 : index
    %c0_278 = arith.constant 0 : index
    %466 = vector.load %arg5[%c29, %c0_277, %c0_278] : memref<32x100x256xbf16, #tpu.memory_space<vmem>>, vector<1x100x256xbf16>
    %467 = vector.shape_cast %466 : vector<1x100x256xbf16> to vector<100x256xbf16>
    %cst_279 = arith.constant dense<0.000000e+00> : vector<2x256xf32>
    %468 = tpu.matmul %465, %467, %cst_279 {dimension_numbers = #tpu.dot_dimension_numbers<[1], [0], [0], [1], [0, 0, 1, 1], [], []>} : vector<2x100xbf16>, vector<100x256xbf16>, vector<2x256xf32> -> vector<2x256xf32>
    %469 = arith.addf %461, %468 : vector<2x256xf32>
    %470 = vector.extract_strided_slice %115 {offsets = [30, 0], sizes = [1, 100], strides = [1, 1]} : vector<32x100xf32> to vector<1x100xf32>
    %471 = vector.extract_strided_slice %228 {offsets = [30, 0], sizes = [1, 100], strides = [1, 1]} : vector<32x100xf32> to vector<1x100xf32>
    %472 = tpu.concatenate %470, %471 in 0 : vector<1x100xf32>, vector<1x100xf32> -> vector<2x100xf32>
    %473 = arith.truncf %472 : vector<2x100xf32> to vector<2x100xbf16>
    %c30 = arith.constant 30 : index
    %c0_280 = arith.constant 0 : index
    %c0_281 = arith.constant 0 : index
    %474 = vector.load %arg5[%c30, %c0_280, %c0_281] : memref<32x100x256xbf16, #tpu.memory_space<vmem>>, vector<1x100x256xbf16>
    %475 = vector.shape_cast %474 : vector<1x100x256xbf16> to vector<100x256xbf16>
    %cst_282 = arith.constant dense<0.000000e+00> : vector<2x256xf32>
    %476 = tpu.matmul %473, %475, %cst_282 {dimension_numbers = #tpu.dot_dimension_numbers<[1], [0], [0], [1], [0, 0, 1, 1], [], []>} : vector<2x100xbf16>, vector<100x256xbf16>, vector<2x256xf32> -> vector<2x256xf32>
    %477 = arith.addf %469, %476 : vector<2x256xf32>
    %478 = vector.extract_strided_slice %115 {offsets = [31, 0], sizes = [1, 100], strides = [1, 1]} : vector<32x100xf32> to vector<1x100xf32>
    %479 = vector.extract_strided_slice %228 {offsets = [31, 0], sizes = [1, 100], strides = [1, 1]} : vector<32x100xf32> to vector<1x100xf32>
    %480 = tpu.concatenate %478, %479 in 0 : vector<1x100xf32>, vector<1x100xf32> -> vector<2x100xf32>
    %481 = arith.truncf %480 : vector<2x100xf32> to vector<2x100xbf16>
    %c31 = arith.constant 31 : index
    %c0_283 = arith.constant 0 : index
    %c0_284 = arith.constant 0 : index
    %482 = vector.load %arg5[%c31, %c0_283, %c0_284] : memref<32x100x256xbf16, #tpu.memory_space<vmem>>, vector<1x100x256xbf16>
    %483 = vector.shape_cast %482 : vector<1x100x256xbf16> to vector<100x256xbf16>
    %cst_285 = arith.constant dense<0.000000e+00> : vector<2x256xf32>
    %484 = tpu.matmul %481, %483, %cst_285 {dimension_numbers = #tpu.dot_dimension_numbers<[1], [0], [0], [1], [0, 0, 1, 1], [], []>} : vector<2x100xbf16>, vector<100x256xbf16>, vector<2x256xf32> -> vector<2x256xf32>
    %485 = arith.addf %477, %484 : vector<2x256xf32>
    %c0_286 = arith.constant 0 : index
    %c0_287 = arith.constant 0 : index
    %486 = vector.load %arg6[%c0_286, %c0_287] : memref<1x256xf32, #tpu.memory_space<vmem>>, vector<1x256xf32>
    %487 = vector.broadcast %486 : vector<1x256xf32> to vector<2x256xf32>
    %488 = arith.addf %485, %487 : vector<2x256xf32>
    %cst_288 = arith.constant 0.000000e+00 : f32
    %489 = vector.broadcast %cst_288 : f32 to vector<2x256xf32>
    %490 = arith.maximumf %488, %489 : vector<2x256xf32>
    %491 = arith.truncf %490 : vector<2x256xf32> to vector<2x256xbf16>
    %c0_289 = arith.constant 0 : index
    %c0_290 = arith.constant 0 : index
    %492 = vector.load %arg7[%c0_289, %c0_290] : memref<256x6xbf16, #tpu.memory_space<vmem>>, vector<256x6xbf16>
    %cst_291 = arith.constant dense<0.000000e+00> : vector<2x6xf32>
    %493 = tpu.matmul %491, %492, %cst_291 {dimension_numbers = #tpu.dot_dimension_numbers<[1], [0], [0], [1], [0, 0, 1, 1], [], []>} : vector<2x256xbf16>, vector<256x6xbf16>, vector<2x6xf32> -> vector<2x6xf32>
    %c0_292 = arith.constant 0 : index
    %c0_293 = arith.constant 0 : index
    %494 = vector.load %arg8[%c0_292, %c0_293] : memref<1x6xf32, #tpu.memory_space<vmem>>, vector<1x6xf32>
    %495 = vector.broadcast %494 : vector<1x6xf32> to vector<2x6xf32>
    %496 = arith.addf %493, %495 : vector<2x6xf32>
    %cst_294 = arith.constant dense<0xFF800000> : vector<2xf32>
    %497 = vector.multi_reduction <maximumf>, %496, %cst_294 [1] : vector<2x6xf32> to vector<2xf32>
    %498 = vector.shape_cast %497 : vector<2xf32> to vector<2x1xf32>
    %499 = vector.broadcast %498 : vector<2x1xf32> to vector<2x6xf32>
    %500 = arith.subf %496, %499 : vector<2x6xf32>
    %501 = math.exp %500 : vector<2x6xf32>
    %cst_295 = arith.constant dense<0.000000e+00> : vector<2xf32>
    %502 = vector.multi_reduction <add>, %501, %cst_295 [1] : vector<2x6xf32> to vector<2xf32>
    %503 = vector.shape_cast %502 : vector<2xf32> to vector<2x1xf32>
    %504 = vector.broadcast %503 : vector<2x1xf32> to vector<2x6xf32>
    %505 = arith.divf %501, %504 : vector<2x6xf32>
    %c0_296 = arith.constant 0 : index
    %c0_297 = arith.constant 0 : index
    %506 = vector.load %arg9[%c0_296, %c0_297] : memref<2x6xf32, #tpu.memory_space<vmem>>, vector<2x6xf32>
    tpu.vector_store %arg9[%c0_296, %c0_297], %505 {strides = array<i32>} : memref<2x6xf32, #tpu.memory_space<vmem>>, vector<2x6xf32>,
    return
  }
}

</mosaic_0001>

<bundles_post_ra>
// kernel: multi_cnn_actor_forward.1
= control target key start
LH: loop header
LB: loop body
LE: loop exit
PB: predicated region body
PF: predicated region fallthrough
CT: control target
= control target key end

     0   :  { %vm81_vm0 = vcmask 1041408   ;;  %v8477_v4 = vmov 0   ;;  %s11946_s0 = inlined_call_operand.vmem [shape: bf16[2,9,36,100], index: 0, kind: input, shape index: {}]   ;;  %s11947_s1 = inlined_call_operand.vmem [shape: bf16[16,36], index: 1, kind: input, shape index: {}]   ;;  %s11948_s2 = inlined_call_operand.vmem [shape: f32[16,1], index: 2, kind: input, shape index: {}]   ;;  %s11949_s3 = inlined_call_operand.vmem [shape: bf16[9,32,16], index: 3, kind: input, shape index: {}]   ;;  %s11950_s4 = inlined_call_operand.vmem [shape: f32[32,1], index: 4, kind: input, shape index: {}]   ;;  %s11951_s5 = inlined_call_operand.vmem [shape: bf16[32,100,256], index: 5, kind: input, shape index: {}]   ;;  %s11952_s6 = inlined_call_operand.vmem [shape: f32[1,256], index: 6, kind: input, shape index: {}]   ;;  %s11953_s7 = inlined_call_operand.vmem [shape: bf16[256,6], index: 7, kind: input, shape index: {}]   ;;  %s11954_s8 = inlined_call_operand.vmem [shape: f32[1,6], index: 8, kind: input, shape index: {}]   ;;  %s11955_s9 = inlined_call_operand.hbm [shape: f32[2,6], index: 9, kind: output, shape index: {}]  }
   0x1   :  { %v46_v0 = vld [vmem:[%s11946_s0 + $0x10] sm:$0x3]  ;;  %v5544_v1 = vld [vmem:[%s11946_s0 + $0x24] sm:$0x3]  ;;  %8443 = vset.pattern.permute.xlu0 %v8477_v4  ;;  %8444 = vset.pattern.permute.xlu1 %v8477_v4 }
   0x2   :  { %v71_v2 = vunpack.c.l.b16 %v46_v0  ;;  %v121_v3 = vunpack.c.l.b16 %v5544_v1  ;;  %v36_v5 = vld [vmem:[%s11948_s2] sm:$0xff]  ;;  %8445 = vset.pattern.permute.xlu2 %v8477_v4 }
   0x3   :  { %49 = vperm.xlu0 %8443, %v36_v5  }
   0x4   :  { %v74_v6 = vpack.c.b16 %v71_v2, %v71_v2  ;;  %v124_v7 = vpack.c.b16 %v121_v3, %v121_v3 }
   0x5   :  { %14 = vsyncpa [#allocation3], 0  ;;  %v7987_v10 = vld [vmem:[%s11946_s0 + $0x8] sm:$0xff]  ;;  %v7991_v11 = vld [vmem:[%s11946_s0 + $0x1c] sm:$0xff]  ;;  %vm77_vm1 = vcmask 293888   ;;  %vm162_vm2 = vcmask 130048  }
   0x6   :  { %v83_v8 = vsel %vm81_vm0, %v74_v6, 0  ;;  %v128_v9 = vsel %vm81_vm0, %v124_v7, 0  ;;  %v37_v12 = vld [vmem:[%s11948_s2 + $0x8] sm:$0xff]  ;;  %v7986_v13 = vld [vmem:[%s11946_s0] sm:$0xff]  ;;  %v7990_v14 = vld [vmem:[%s11946_s0 + $0x14] sm:$0xff]  ;;  %vm1425_vm3 = vcmask 1040384  }
   0x7   :  { %90 = vmatpush.bf16.msra.mxu0 %v83_v8  ;;  %135 = vmatpush.bf16.msra.mxu1 %v128_v9  ;;  %v8558_v15 = vld [vmem:[%s11947_s1] sm:$0xff]  ;;  %v5582_v19 = vld [vmem:[%s11946_s0 + $0x38] sm:$0x3]  ;;  %v5610_v20 = vld [vmem:[%s11946_s0 + $0x4c] sm:$0x3]  ;;  %vm1525_vm4 = vcmask 818176  }
   0x8   :  { %v238_v21 = vunpack.c.l.b16 %v5582_v19  ;;  %v323_v22 = vunpack.c.l.b16 %v5610_v20  ;;  %v5638_v36 = vld [vmem:[%s11946_s0 + $0x60] sm:$0x3]  ;;  %v8585_v40 = vld [vmem:[%s11949_s3 + $0x10] sm:$0xff]  ;;  %v8590_v41 = vld [vmem:[%s11949_s3 + $0x18] sm:$0xff]  ;;  %vm5485_vm5 = vcmask 41984   ;;  %s5518_s23 = sshll.u32 %s11955_s9, 4  ;;  %s5519_s23 = int_to_ptr.hbm [resolvable:$true] %s5518_s23 }
   0x9   :  { %v408_v43 = vunpack.c.l.b16 %v5638_v36  ;;  %v8596_v44 = vld [vmem:[%s11949_s3] sm:$0xff]  ;;  %v7995_v45 = vld [vmem:[%s11946_s0 + $0x30] sm:$0xff]  ;;  %v7994_v48 = vld [vmem:[%s11946_s0 + $0x28] sm:$0xff] }
   0xa   :  { %v241_v30 = vpack.c.b16 %v238_v21, %v238_v21  ;;  %v326_v31 = vpack.c.b16 %v323_v22, %v323_v22  ;;  %v7999_v46 = vld [vmem:[%s11946_s0 + $0x44] sm:$0xff]  ;;  %v7998_v49 = vld [vmem:[%s11946_s0 + $0x3c] sm:$0xff]  ;;  %v5666_v50 = vld [vmem:[%s11946_s0 + $0x74] sm:$0x3] }
   0xb   :  { %91 = vmatpush.bf16.msra.mxu0 %v7987_v10  ;;  %136 = vmatpush.bf16.msra.mxu1 %v7991_v11  ;;  %v411_v47 = vpack.c.b16 %v408_v43, %v408_v43  ;;  %v493_v52 = vunpack.c.l.b16 %v5666_v50  ;;  %v8003_v53 = vld [vmem:[%s11946_s0 + $0x58] sm:$0xff]  ;;  %v8002_v55 = vld [vmem:[%s11946_s0 + $0x50] sm:$0xff]  ;;  %v8629_v56 = vld [vmem:[%s11949_s3 + $0x8] sm:$0xff] }
   0xc   :  { %54 = vperm.xlu0 %8443, %v37_v12   ;;  %v245_v39 = vsel %vm81_vm0, %v241_v30, 0  ;;  %v330_v42 = vsel %vm81_vm0, %v326_v31, 0  ;;  %v8007_v58 = vld [vmem:[%s11946_s0 + $0x6c] sm:$0xff]  ;;  %v8006_v59 = vld [vmem:[%s11946_s0 + $0x64] sm:$0xff]  ;;  %v8010_v36 = vld [vmem:[%s11946_s0 + $0x78] sm:$0xff] }
   0xd   :  { %v415_v51 = vsel %vm81_vm0, %v411_v47, 0  ;;  %v496_v54 = vpack.c.b16 %v493_v52, %v493_v52  ;;  %v5694_v9 = vld [vmem:[%s11946_s0 + $0x88] sm:$0x3]  ;;  %v8667_v19 = vld [vmem:[%s11949_s3 + $0x20] sm:$0xff]  ;;  %v8015_v47 = vld [vmem:[%s11946_s0 + $0x94] sm:$0xff] }
   0xe   :  { %v8011_v31 = vld [vmem:[%s11946_s0 + $0x80] sm:$0xff]  ;;  %v8695_v43 = vld [vmem:[%s11949_s3 + $0x28] sm:$0xff] }
   0xf   :  { %92 = vmatpush.bf16.msra.mxu0 %v7986_v13  ;;  %137 = vmatpush.bf16.msra.mxu1 %v7990_v14  ;;  %v500_v57 = vsel %vm81_vm0, %v496_v54, 0  ;;  %v578_v13 = vunpack.c.l.b16 %v5694_v9  ;;  %v8014_v50 = vld [vmem:[%s11946_s0 + $0x8c] sm:$0xff] }
  0x11   :  { %v581_v21 = vpack.c.b16 %v578_v13, %v578_v13  ;;  %v5810_v13 = vld [vmem:[%s11946_s0 + $0xec] sm:$0x3] }
  0x12   :  { %5539 = vmatmul.msk.bf16.vlgmr.msra.gmra.mxu0 %vm77_vm1, %v8558_v15  ;;  %5553 = vmatmul.msk.bf16.vlgmr.msra.gmra.mxu1 %vm77_vm1, %v8558_v15 }
  0x75   :  { %v8564_v16 = vpop.permute.xlu0 %49 }
  0x7e   :  { %v8572_v23 = vpop.permute.xlu0 %54 }
  0x8f   :  { %v94_v17 = vpop.f32.mrf.mxu0  ;;  %v139_v18 = vpop.f32.mrf.mxu1 }
  0x90   :  { %v95_v24 = vadd.f32 %v94_v17, %v8564_v16  ;;  %v140_v25 = vadd.f32 %v139_v18, %v8564_v16 }
  0x92   :  { %v99_v32 = vmax.f32 %v95_v24, 0.0  ;;  %v144_v33 = vmax.f32 %v140_v25, 0.0 }
  0x97   :  { %v96_v26 = vpop.f32.mrf.mxu0  ;;  %v141_v27 = vpop.f32.mrf.mxu1 }
  0x98   :  { %v97_v28 = vadd.f32 %v96_v26, %v8572_v23  ;;  %v142_v29 = vadd.f32 %v141_v27, %v8572_v23  ;;  %v5722_v26 = vld [vmem:[%s11946_s0 + $0x9c] sm:$0x3] }
  0x99   :  { %v663_v30 = vunpack.c.l.b16 %v5722_v26 }
  0x9a   :  { %v145_v34 = vmax.f32 %v142_v29, 0.0  ;;  %v100_v35 = vmax.f32 %v97_v28, 0.0  ;;  %v585_v28 = vsel %vm81_vm0, %v581_v21, 0  ;;  %v8679_v29 = vld [vmem:[%s11949_s3 + $0x30] sm:$0xff]  ;;  %v5826_v21 = vld [vmem:[%s11946_s0 + $0x100] sm:$0x3] }
  0x9c   :  { %v146_v37 = vpack.c.bf16 %v145_v34, %v144_v33  ;;  %v101_v38 = vpack.c.bf16 %v100_v35, %v99_v32  ;;  %v666_v35 = vpack.c.b16 %v663_v30, %v663_v30 }
  0x9e   :  { %176 = vmatpush.bf16.msrb.mxu0 %v146_v37  ;;  %8440 = vmatpush.bf16.msra.mxu2 %v146_v37 }
  0x9f   :  { %211 = vmatpush.bf16.msra.mxu3 %v101_v38 }
  0xa1   :  { %5566 = vmatmul.msk.bf16.vlgmr.msrb.gmra.mxu0 %vm162_vm2, %v8585_v40  ;;  %5567 = vmatmul.msk.bf16.vlgmr.msra.gmra.mxu2 %vm162_vm2, %v8590_v41 }
  0xa2   :  { %252 = vmatpush.bf16.msra.mxu0 %v245_v39  ;;  %337 = vmatpush.bf16.msrb.mxu2 %v330_v42  ;;  %v670_v42 = vsel %vm81_vm0, %v666_v35, 0 }
  0xa3   :  { %5576 = vmatmul.msk.bf16.vlgmr.msra.gmra.mxu3 %vm162_vm2, %v8596_v44 }
  0xa6   :  { %253 = vmatpush.bf16.msra.mxu0 %v7995_v45  ;;  %338 = vmatpush.bf16.msrb.mxu2 %v7999_v46  ;;  %v8700_v45 = vld [vmem:[%s11949_s3 + $0x40] sm:$0xff] }
  0xaa   :  { %254 = vmatpush.bf16.msra.mxu0 %v7994_v48  ;;  %339 = vmatpush.bf16.msrb.mxu2 %v7998_v49  ;;  %v5750_v48 = vld [vmem:[%s11946_s0 + $0xb0] sm:$0x3]  ;;  %v8715_v49 = vld [vmem:[%s11949_s3 + $0x38] sm:$0xff] }
  0xae   :  { %422 = vmatpush.bf16.msrb.mxu0 %v415_v51  ;;  %v748_v51 = vunpack.c.l.b16 %v5750_v48 }
  0xb1   :  { %5591 = vmatmul.msk.bf16.vlgmr.msra.gmra.mxu0 %vm77_vm1, %v8558_v15  ;;  %5619 = vmatmul.msk.bf16.vlgmr.msrb.gmra.mxu2 %vm77_vm1, %v8558_v15 }
  0xb2   :  { %423 = vmatpush.bf16.msrb.mxu0 %v8003_v53 }
  0xb3   :  { %5577 = vmatmul.msk.bf16.gmra.mxu3 %vm162_vm2, %v8629_v56 }
  0xb6   :  { %424 = vmatpush.bf16.msrb.mxu0 %v8002_v55  ;;  %v751_v55 = vpack.c.b16 %v748_v51, %v748_v51 }
  0xba   :  { %507 = vmatpush.bf16.msra.mxu0 %v500_v57 }
  0xbe   :  { %508 = vmatpush.bf16.msra.mxu0 %v8007_v58 }
  0xc1   :  { %5647 = vmatmul.msk.bf16.vlgmr.msrb.gmra.mxu0 %vm77_vm1, %v8558_v15 }
  0xc2   :  { %509 = vmatpush.bf16.msra.mxu0 %v8006_v59 }
  0xd1   :  { %5675 = vmatmul.msk.bf16.vlgmr.msra.gmra.mxu0 %vm77_vm1, %v8558_v15 }
 0x11e   :  { %v178_v60 = vpop.f32.mrf.mxu0 }
 0x124   :  { %v183_v61 = vpop.f32.mrf.mxu2 }
 0x126   :  { %v213_v62 = vpop.f32.mrf.mxu3  ;;  %v8650_v0 = vpop.f32.mrf.mxu0 }
 0x127   :  { %v8648_v63 = vadd.f32 %v213_v62, %v178_v60  ;;  %v755_v60 = vsel %vm81_vm0, %v751_v55, 0  ;;  %v8733_v62 = vld [vmem:[%s11949_s3 + $0x50] sm:$0xff] }
 0x12c   :  { %v8652_v1 = vpop.f32.mrf.mxu2 }
 0x12e   :  { %v8654_v2 = vpop.f32.mrf.mxu3  ;;  %v256_v3 = vpop.f32.mrf.mxu0 }
 0x12f   :  { %v257_v5 = vadd.f32 %v256_v3, %v8564_v16  ;;  %v8019_v3 = vld [vmem:[%s11946_s0 + $0xa8] sm:$0xff] }
 0x131   :  { %v261_v11 = vmax.f32 %v257_v5, 0.0 }
 0x134   :  { %v341_v4 = vpop.f32.mrf.mxu2 }
 0x135   :  { %v342_v14 = vadd.f32 %v341_v4, %v8564_v16  ;;  %v5792_v4 = vld [vmem:[%s11946_s0 + $0xd8] sm:$0x3] }
 0x136   :  { %v218_v6 = vpop.f32.mrf.mxu3  ;;  %v258_v8 = vpop.f32.mrf.mxu0  ;;  %v902_v5 = vunpack.c.l.b16 %v5792_v4 }
 0x137   :  { %v8657_v7 = vadd.f32 %v218_v6, %v183_v61  ;;  %v259_v10 = vadd.f32 %v258_v8, %v8572_v23  ;;  %v346_v24 = vmax.f32 %v342_v14, 0.0  ;;  %v8728_v61 = vld [vmem:[%s11949_s3 + $0x48] sm:$0xff]  ;;  %v8018_v6 = vld [vmem:[%s11946_s0 + $0xa0] sm:$0xff]  ;;  %v981_v14 = vunpack.c.l.b16 %v5810_v13 }
 0x138   :  { %v905_v8 = vpack.c.b16 %v902_v5, %v902_v5 }
 0x139   :  { %v262_v12 = vmax.f32 %v259_v10, 0.0  ;;  %v8025_v10 = vld [vmem:[%s11946_s0 + $0xd0] sm:$0xff] }
 0x13a   :  { %v909_v9 = vsel %vm81_vm0, %v905_v8, 0 }
 0x13b   :  { %v263_v17 = vpack.c.bf16 %v262_v12, %v261_v11  ;;  %v8024_v11 = vld [vmem:[%s11946_s0 + $0xc8] sm:$0xff]  ;;  %v8760_v12 = vld [vmem:[%s11949_s3 + $0x58] sm:$0xff] }
 0x13c   :  { %v343_v18 = vpop.f32.mrf.mxu2 }
 0x13d   :  { %v344_v20 = vadd.f32 %v343_v18, %v8572_v23  ;;  %292 = vmatpush.bf16.msrb.mxu1 %v263_v17  ;;  %v984_v17 = vpack.c.b16 %v981_v14, %v981_v14 }
 0x13e   :  { %v426_v22 = vpop.f32.mrf.mxu0 }
 0x13f   :  { %v347_v25 = vmax.f32 %v344_v20, 0.0  ;;  %v427_v32 = vadd.f32 %v426_v22, %v8564_v16  ;;  %v988_v18 = vsel %vm81_vm0, %v984_v17, 0  ;;  %v8027_v20 = vld [vmem:[%s11946_s0 + $0xe4] sm:$0xff]  ;;  %v8026_v22 = vld [vmem:[%s11946_s0 + $0xdc] sm:$0xff] }
 0x140   :  { %5604 = vmatmul.msk.bf16.vlgmr.msrb.gmra.mxu1 %vm162_vm2, %v8667_v19 }
 0x141   :  { %v348_v27 = vpack.c.bf16 %v347_v25, %v346_v24  ;;  %v431_v37 = vmax.f32 %v427_v32, 0.0  ;;  %v1045_v24 = vunpack.c.l.b16 %v5826_v21  ;;  %v8795_v32 = vpop.f32.mrf.mxu3 }
 0x143   :  { %377 = vmatpush.bf16.msrb.mxu3 %v348_v27  ;;  %v1048_v25 = vpack.c.b16 %v1045_v24, %v1045_v24  ;;  %v8029_v27 = vld [vmem:[%s11946_s0 + $0xf8] sm:$0xff] }
 0x145   :  { %v1052_v26 = vsel %vm81_vm0, %v1048_v25, 0 }
 0x146   :  { %5632 = vmatmul.msk.bf16.vlgmr.msrb.gmra.mxu3 %vm162_vm2, %v8679_v29  ;;  %v428_v33 = vpop.f32.mrf.mxu0 }
 0x147   :  { %592 = vmatpush.bf16.msra.mxu3 %v585_v28  ;;  %v429_v34 = vadd.f32 %v428_v33, %v8572_v23  ;;  %v8028_v28 = vld [vmem:[%s11946_s0 + $0xf0] sm:$0xff] }
 0x149   :  { %v432_v38 = vmax.f32 %v429_v34, 0.0 }
 0x14b   :  { %593 = vmatpush.bf16.msra.mxu3 %v8011_v31  ;;  %v433_v39 = vpack.c.bf16 %v432_v38, %v431_v37 }
 0x14d   :  { %462 = vmatpush.bf16.msra.mxu2 %v433_v39 }
 0x14e   :  { %v511_v46 = vpop.f32.mrf.mxu0 }
 0x14f   :  { %594 = vmatpush.bf16.msra.mxu3 %v8010_v36  ;;  %v512_v52 = vadd.f32 %v511_v46, %v8564_v16 }
 0x150   :  { %5605 = vmatmul.msk.bf16.gmra.mxu1 %vm162_vm2, %v8695_v43  ;;  %5660 = vmatmul.msk.bf16.vlgmr.msra.gmra.mxu2 %vm162_vm2, %v8700_v45 }
 0x151   :  { %677 = vmatpush.bf16.msrb.mxu2 %v670_v42  ;;  %v516_v57 = vmax.f32 %v512_v52, 0.0 }
 0x155   :  { %678 = vmatpush.bf16.msrb.mxu2 %v8015_v47 }
 0x156   :  { %5633 = vmatmul.msk.bf16.gmra.mxu3 %vm162_vm2, %v8715_v49  ;;  %v513_v53 = vpop.f32.mrf.mxu0 }
 0x157   :  { %v514_v54 = vadd.f32 %v513_v53, %v8572_v23 }
 0x159   :  { %679 = vmatpush.bf16.msrb.mxu2 %v8014_v50  ;;  %v517_v58 = vmax.f32 %v514_v54, 0.0 }
 0x15b   :  { %v518_v59 = vpack.c.bf16 %v517_v58, %v516_v57  ;;  %v5778_v58 = vld [vmem:[%s11946_s0 + $0xc4] sm:$0x3] }
 0x15d   :  { %547 = vmatpush.bf16.msra.mxu1 %v518_v59 }
 0x160   :  { %5661 = vmatmul.msk.bf16.gmra.mxu2 %vm162_vm2, %v8728_v61  ;;  %5688 = vmatmul.msk.bf16.vlgmr.msra.gmra.mxu1 %vm162_vm2, %v8733_v62 }
 0x161   :  { %762 = vmatpush.bf16.msrb.mxu1 %v755_v60 }
 0x165   :  { %763 = vmatpush.bf16.msrb.mxu1 %v8019_v3  ;;  %v861_v3 = vunpack.c.l.b16 %v5778_v58 }
 0x166   :  { %5703 = vmatmul.msk.bf16.vlgmr.msra.gmra.mxu3 %vm77_vm1, %v8558_v15 }
 0x167   :  { %v864_v8 = vpack.c.b16 %v861_v3, %v861_v3 }
 0x169   :  { %764 = vmatpush.bf16.msrb.mxu1 %v8018_v6  ;;  %v868_v17 = vsel %vm81_vm0, %v864_v8, 0  ;;  %v8882_v8 = vld [vmem:[%s11949_s3 + $0x88] sm:$0xff] }
 0x16d   :  { %916 = vmatpush.bf16.msra.mxu1 %v909_v9 }
 0x170   :  { %5689 = vmatmul.msk.bf16.gmra.mxu1 %vm162_vm2, %v8760_v12  ;;  %5731 = vmatmul.msk.bf16.vlgmr.msrb.gmra.mxu2 %vm77_vm1, %v8558_v15 }
 0x171   :  { %917 = vmatpush.bf16.msra.mxu1 %v8025_v10 }
 0x175   :  { %918 = vmatpush.bf16.msra.mxu1 %v8024_v11 }
 0x180   :  { %5759 = vmatmul.msk.bf16.vlgmr.msrb.gmra.mxu1 %vm77_vm1, %v8558_v15 }
 0x181   :  { %995 = vmatpush.bf16.msrb.mxu1 %v988_v18  ;;  %v8827_v18 = vld [vmem:[%s11949_s3 + $0x60] sm:$0xff] }
 0x185   :  { %996 = vmatpush.bf16.msrb.mxu1 %v8027_v20  ;;  %v8023_v20 = vld [vmem:[%s11946_s0 + $0xbc] sm:$0xff] }
 0x189   :  { %997 = vmatpush.bf16.msrb.mxu1 %v8026_v22 }
 0x190   :  { %5801 = vmatmul.msk.bf16.vlgmr.msra.gmra.mxu1 %vm77_vm1, %v8558_v15 }
 0x191   :  { %1059 = vmatpush.bf16.msra.mxu1 %v1052_v26  ;;  %v8022_v26 = vld [vmem:[%s11946_s0 + $0xb4] sm:$0xff] }
 0x195   :  { %1060 = vmatpush.bf16.msra.mxu1 %v8029_v27 }
 0x199   :  { %1061 = vmatpush.bf16.msra.mxu1 %v8028_v28 }
 0x1a0   :  { %5819 = vmatmul.msk.bf16.vlgmr.msrb.gmra.mxu1 %vm77_vm1, %v8558_v15 }
 0x1b0   :  { %5835 = vmatmul.msk.bf16.vlgmr.msra.gmra.mxu1 %vm77_vm1, %v8558_v15 }
 0x1bd   :  { %v294_v30 = vpop.f32.mrf.mxu1 }
 0x1be   :  { %v304_v31 = vadd.f32 %v294_v30, %v8648_v63 }
 0x1c5   :  { %v8797_v33 = vpop.f32.mrf.mxu1 }
 0x1c9   :  { %v379_v34 = vpop.f32.mrf.mxu3 }
 0x1ca   :  { %v389_v35 = vadd.f32 %v379_v34, %v304_v31  ;;  %v38_v31 = vld [vmem:[%s11950_s4] sm:$0xff]  ;;  %v8845_v34 = vld [vmem:[%s11949_s3 + $0x70] sm:$0xff] }
 0x1cb   :  { %820 = vperm.xlu1 %8444, %v38_v31   ;;  %v5874_v31 = vld [vmem:[%s11946_s0 + $0x13c] sm:$0x3] }
 0x1cd   :  { %v299_v36 = vpop.f32.mrf.mxu1 }
 0x1ce   :  { %v306_v37 = vadd.f32 %v299_v36, %v8657_v7 }
 0x1d1   :  { %v8800_v38 = vpop.f32.mrf.mxu3 }
 0x1d3   :  { %v464_v39 = vpop.f32.mrf.mxu2 }
 0x1d4   :  { %v474_v42 = vadd.f32 %v464_v39, %v389_v35  ;;  %v8854_v39 = vld [vmem:[%s11949_s3 + $0x68] sm:$0xff] }
 0x1d5   :  { %v8802_v46 = vpop.f32.mrf.mxu1 }
 0x1d9   :  { %v384_v47 = vpop.f32.mrf.mxu3 }
 0x1da   :  { %v391_v48 = vadd.f32 %v384_v47, %v306_v37 }
 0x1db   :  { %v8804_v50 = vpop.f32.mrf.mxu2 }
 0x1dd   :  { %v549_v63 = vpop.f32.mrf.mxu1 }
 0x1de   :  { %v8806_v51 = vadd.f32 %v549_v63, %v474_v42  ;;  %v39_v63 = vld [vmem:[%s11950_s4 + $0x8] sm:$0xff] }
 0x1df   :  { %825 = vperm.xlu1 %8444, %v39_v63   ;;  %v8035_v63 = vld [vmem:[%s11946_s0 + $0x134] sm:$0xff] }
 0x1e1   :  { %v8808_v52 = vpop.f32.mrf.mxu3 }
 0x1e3   :  { %v469_v53 = vpop.f32.mrf.mxu2 }
 0x1e4   :  { %v476_v54 = vadd.f32 %v469_v53, %v391_v48  ;;  %v8864_v53 = vld [vmem:[%s11949_s3 + $0x80] sm:$0xff] }
 0x1e5   :  { %v8810_v55 = vpop.f32.mrf.mxu1 }
 0x1e9   :  { %v596_v7 = vpop.f32.mrf.mxu3 }
 0x1ea   :  { %v597_v4 = vadd.f32 %v596_v7, %v8564_v16  ;;  %v8871_v7 = vld [vmem:[%s11949_s3 + $0x78] sm:$0xff] }
 0x1eb   :  { %v8812_v57 = vpop.f32.mrf.mxu2 }
 0x1ec   :  { %v601_v10 = vmax.f32 %v597_v4, 0.0 }
 0x1ed   :  { %v554_v59 = vpop.f32.mrf.mxu1 }
 0x1ee   :  { %v8817_v60 = vadd.f32 %v554_v59, %v476_v54 }
 0x1f1   :  { %v598_v5 = vpop.f32.mrf.mxu3 }
 0x1f2   :  { %v599_v6 = vadd.f32 %v598_v5, %v8572_v23 }
 0x1f3   :  { %v681_v9 = vpop.f32.mrf.mxu2 }
 0x1f4   :  { %v602_v11 = vmax.f32 %v599_v6, 0.0  ;;  %v682_v21 = vadd.f32 %v681_v9, %v8564_v16 }
 0x1f5   :  { %v8821_v13 = vpop.f32.mrf.mxu1 }
 0x1f6   :  { %v603_v14 = vpack.c.bf16 %v602_v11, %v601_v10  ;;  %v686_v27 = vmax.f32 %v682_v21, 0.0  ;;  %v5858_v10 = vld [vmem:[%s11946_s0 + $0x128] sm:$0x3]  ;;  %v40_v11 = vld [vmem:[%s11950_s4 + $0x10] sm:$0xff] }
 0x1f7   :  { %830 = vperm.xlu2 %8445, %v40_v11  }
 0x1f8   :  { %632 = vmatpush.bf16.msrb.mxu0 %v603_v14  ;;  %v1173_v14 = vunpack.c.l.b16 %v5858_v10 }
 0x1fb   :  { %5716 = vmatmul.msk.bf16.vlgmr.msrb.gmra.mxu0 %vm162_vm2, %v8827_v18  ;;  %v683_v22 = vpop.f32.mrf.mxu2 }
 0x1fc   :  { %875 = vmatpush.bf16.msra.mxu0 %v868_v17  ;;  %v684_v24 = vadd.f32 %v683_v22, %v8572_v23  ;;  %v1176_v22 = vpack.c.b16 %v1173_v14, %v1173_v14 }
 0x1fd   :  { %v766_v25 = vpop.f32.mrf.mxu1 }
 0x1fe   :  { %v687_v28 = vmax.f32 %v684_v24, 0.0  ;;  %v767_v35 = vadd.f32 %v766_v25, %v8564_v16 }
 0x200   :  { %876 = vmatpush.bf16.msra.mxu0 %v8023_v20  ;;  %v688_v30 = vpack.c.bf16 %v687_v28, %v686_v27  ;;  %v771_v42 = vmax.f32 %v767_v35, 0.0  ;;  %v1180_v27 = vsel %vm81_vm0, %v1176_v22, 0  ;;  %v1237_v35 = vunpack.c.l.b16 %v5874_v31 }
 0x202   :  { %717 = vmatpush.bf16.msrb.mxu3 %v688_v30  ;;  %v8033_v30 = vld [vmem:[%s11946_s0 + $0x120] sm:$0xff] }
 0x204   :  { %877 = vmatpush.bf16.msra.mxu0 %v8022_v26 }
 0x205   :  { %5744 = vmatmul.msk.bf16.vlgmr.msrb.gmra.mxu3 %vm162_vm2, %v8845_v34  ;;  %v768_v36 = vpop.f32.mrf.mxu1 }
 0x206   :  { %v769_v37 = vadd.f32 %v768_v36, %v8572_v23  ;;  %v8032_v36 = vld [vmem:[%s11946_s0 + $0x118] sm:$0xff] }
 0x208   :  { %v772_v47 = vmax.f32 %v769_v37, 0.0  ;;  %v1240_v37 = vpack.c.b16 %v1237_v35, %v1237_v35 }
 0x20a   :  { %v773_v48 = vpack.c.bf16 %v772_v47, %v771_v42 }
 0x20b   :  { %5717 = vmatmul.msk.bf16.gmra.mxu0 %vm162_vm2, %v8854_v39 }
 0x20c   :  { %802 = vmatpush.bf16.msra.mxu2 %v773_v48 }
 0x20d   :  { %v920_v54 = vpop.f32.mrf.mxu1 }
 0x20e   :  { %v921_v58 = vadd.f32 %v920_v54, %v8564_v16 }
 0x20f   :  { %5772 = vmatmul.msk.bf16.vlgmr.msra.gmra.mxu2 %vm162_vm2, %v8864_v53 }
 0x210   :  { %v925_v4 = vmax.f32 %v921_v58, 0.0 }
 0x215   :  { %5745 = vmatmul.msk.bf16.gmra.mxu3 %vm162_vm2, %v8871_v7  ;;  %v922_v59 = vpop.f32.mrf.mxu1 }
 0x216   :  { %v923_v3 = vadd.f32 %v922_v59, %v8572_v23 }
 0x218   :  { %v926_v5 = vmax.f32 %v923_v3, 0.0  ;;  %v8034_v3 = vld [vmem:[%s11946_s0 + $0x12c] sm:$0xff] }
 0x21a   :  { %v927_v6 = vpack.c.bf16 %v926_v5, %v925_v4 }
 0x21b   :  { %5787 = vmatmul.msk.bf16.vlgmr.msra.gmra.mxu0 %vm77_vm1, %v8558_v15 }
 0x21c   :  { %935 = vmatpush.bf16.msra.mxu3 %v927_v6 }
 0x21d   :  { %v999_v9 = vpop.f32.mrf.mxu1 }
 0x21e   :  { %v1000_v17 = vadd.f32 %v999_v9, %v8564_v16 }
 0x21f   :  { %5773 = vmatmul.msk.bf16.gmra.mxu2 %vm162_vm2, %v8882_v8 }
 0x220   :  { %v1004_v24 = vmax.f32 %v1000_v17, 0.0 }
 0x225   :  { %v1001_v20 = vpop.f32.mrf.mxu1  ;;  %5802 = vmatmul.msk.bf16.vlgmr.msra.gmra.mxu3 %vm162_vm2, %v8585_v40  ;;  %v41_v40 = vld [vmem:[%s11950_s4 + $0x18] sm:$0xff] }
 0x226   :  { %v1002_v21 = vadd.f32 %v1001_v20, %v8572_v23  ;;  %835 = vperm.xlu2 %8445, %v41_v40  }
 0x228   :  { %v1005_v25 = vmax.f32 %v1002_v21, 0.0 }
 0x22a   :  { %v1006_v26 = vpack.c.bf16 %v1005_v25, %v1004_v24 }
 0x22c   :  { %1014 = vmatpush.bf16.msrb.mxu2 %v1006_v26 }
 0x22d   :  { %v1063_v28 = vpop.f32.mrf.mxu1 }
 0x22e   :  { %v1064_v42 = vadd.f32 %v1063_v28, %v8564_v16 }
 0x22f   :  { %5820 = vmatmul.msk.bf16.vlgmr.msrb.gmra.mxu2 %vm162_vm2, %v8667_v19  ;;  %v1244_v19 = vsel %vm81_vm0, %v1240_v37, 0  ;;  %v8031_v37 = vld [vmem:[%s11946_s0 + $0x10c] sm:$0xff] }
 0x230   :  { %1187 = vmatpush.bf16.msra.mxu2 %v1180_v27  ;;  %v1068_v54 = vmax.f32 %v1064_v42, 0.0 }
 0x234   :  { %1188 = vmatpush.bf16.msra.mxu2 %v8033_v30 }
 0x235   :  { %v1065_v47 = vpop.f32.mrf.mxu1  ;;  %5803 = vmatmul.msk.bf16.gmra.mxu3 %vm162_vm2, %v8590_v41 }
 0x236   :  { %v1066_v48 = vadd.f32 %v1065_v47, %v8572_v23 }
 0x238   :  { %1189 = vmatpush.bf16.msra.mxu2 %v8032_v36  ;;  %v1069_v58 = vmax.f32 %v1066_v48, 0.0 }
 0x23a   :  { %v1070_v59 = vpack.c.bf16 %v1069_v58, %v1068_v54  ;;  %v5906_v58 = vld [vmem:[%s11946_s0 + $0x164] sm:$0x3] }
 0x23c   :  { %1251 = vmatpush.bf16.msrb.mxu2 %v1244_v19  ;;  %1078 = vmatpush.bf16.msrb.mxu3 %v1070_v59  ;;  %v8030_v19 = vld [vmem:[%s11946_s0 + $0x104] sm:$0xff]  ;;  %v1365_v59 = vunpack.c.l.b16 %v5906_v58 }
 0x23f   :  { %5821 = vmatmul.msk.bf16.gmra.mxu2 %vm162_vm2, %v8695_v43 }
 0x240   :  { %1252 = vmatpush.bf16.msrb.mxu2 %v8035_v63 }
 0x244   :  { %1253 = vmatpush.bf16.msrb.mxu2 %v8034_v3 }
 0x245   :  { %5836 = vmatmul.msk.bf16.vlgmr.msrb.gmra.mxu3 %vm162_vm2, %v8679_v29 }
 0x24f   :  { %5867 = vmatmul.msk.bf16.vlgmr.msra.gmra.mxu2 %vm77_vm1, %v8558_v15 }
 0x255   :  { %5837 = vmatmul.msk.bf16.gmra.mxu3 %vm162_vm2, %v8715_v49 }
 0x25f   :  { %5883 = vmatmul.msk.bf16.vlgmr.msrb.gmra.mxu2 %vm77_vm1, %v8558_v15 }
 0x278   :  { %v634_v41 = vpop.f32.mrf.mxu0 }
 0x279   :  { %v644_v4 = vadd.f32 %v634_v41, %v8806_v51  ;;  %v5842_v51 = vld [vmem:[%s11946_s0 + $0x114] sm:$0x3] }
 0x27a   :  { %v1109_v24 = vunpack.c.l.b16 %v5842_v51 }
 0x27c   :  { %v1112_v27 = vpack.c.b16 %v1109_v24, %v1109_v24 }
 0x27e   :  { %v1116_v36 = vsel %vm81_vm0, %v1112_v27, 0 }
 0x280   :  { %v8933_v5 = vpop.f32.mrf.mxu0 }
 0x288   :  { %v639_v6 = vpop.f32.mrf.mxu0  ;;  %v719_v9 = vpop.f32.mrf.mxu3 }
 0x289   :  { %v646_v43 = vadd.f32 %v639_v6, %v8817_v60  ;;  %v729_v10 = vadd.f32 %v719_v9, %v644_v4 }
 0x290   :  { %v8936_v29 = vpop.f32.mrf.mxu0  ;;  %v8938_v11 = vpop.f32.mrf.mxu3 }
 0x292   :  { %v804_v14 = vpop.f32.mrf.mxu2 }
 0x293   :  { %v8940_v17 = vadd.f32 %v804_v14, %v729_v10 }
 0x298   :  { %v724_v49 = vpop.f32.mrf.mxu3  ;;  %v879_v20 = vpop.f32.mrf.mxu0 }
 0x299   :  { %v731_v21 = vadd.f32 %v724_v49, %v646_v43  ;;  %v880_v60 = vadd.f32 %v879_v20, %v8564_v16  ;;  %v8039_v49 = vld [vmem:[%s11946_s0 + $0x15c] sm:$0xff]  ;;  %v8038_v20 = vld [vmem:[%s11946_s0 + $0x154] sm:$0xff] }
 0x29a   :  { %v8942_v22 = vpop.f32.mrf.mxu2 }
 0x29b   :  { %v884_v30 = vmax.f32 %v880_v60, 0.0 }
 0x2a0   :  { %v881_v25 = vpop.f32.mrf.mxu0 }
 0x2a1   :  { %v882_v26 = vadd.f32 %v881_v25, %v8572_v23 }
 0x2a2   :  { %v809_v28 = vpop.f32.mrf.mxu2 }
 0x2a3   :  { %v885_v40 = vmax.f32 %v882_v26, 0.0  ;;  %v8949_v31 = vadd.f32 %v809_v28, %v731_v21 }
 0x2a5   :  { %v886_v35 = vpack.c.bf16 %v885_v40, %v884_v30 }
 0x2a7   :  { %954 = vmatpush.bf16.msrb.mxu0 %v886_v35 }
 0x2aa   :  { %v8955_v42 = vpop.f32.mrf.mxu2  ;;  %5804 = vmatmul.msk.bf16.vlgmr.msrb.gmra.mxu0 %vm162_vm2, %v8596_v44 }
 0x2ab   :  { %1123 = vmatpush.bf16.msra.mxu0 %v1116_v36 }
 0x2af   :  { %1124 = vmatpush.bf16.msra.mxu0 %v8031_v37 }
 0x2b2   :  { %v8962_v47 = vpop.f32.mrf.mxu2 }
 0x2b3   :  { %1125 = vmatpush.bf16.msra.mxu0 %v8030_v19 }
 0x2ba   :  { %5805 = vmatmul.msk.bf16.gmra.mxu0 %vm162_vm2, %v8629_v56  ;;  %v8966_v48 = vpop.f32.mrf.mxu2  ;;  %v1368_v56 = vpack.c.b16 %v1365_v59, %v1365_v59 }
 0x2bc   :  { %v1372_v10 = vsel %vm81_vm0, %v1368_v56, 0 }
 0x2c2   :  { %v1021_v63 = vpop.f32.mrf.mxu2 }
 0x2ca   :  { %v8968_v54 = vpop.f32.mrf.mxu2  ;;  %5851 = vmatmul.msk.bf16.vlgmr.msra.gmra.mxu0 %vm77_vm1, %v8558_v15 }
 0x2d2   :  { %v1191_v44 = vpop.f32.mrf.mxu2 }
 0x2d3   :  { %v1192_v3 = vadd.f32 %v1191_v44, %v8564_v16 }
 0x2d5   :  { %v1196_v6 = vmax.f32 %v1192_v3, 0.0 }
 0x2da   :  { %v1193_v41 = vpop.f32.mrf.mxu2 }
 0x2db   :  { %v1194_v4 = vadd.f32 %v1193_v41, %v8572_v23 }
 0x2dd   :  { %v1197_v9 = vmax.f32 %v1194_v4, 0.0 }
 0x2df   :  { %v1198_v43 = vpack.c.bf16 %v1197_v9, %v1196_v6 }
 0x2e1   :  { %1206 = vmatpush.bf16.msrb.mxu0 %v1198_v43 }
 0x2e2   :  { %v1255_v14 = vpop.f32.mrf.mxu2 }
 0x2e3   :  { %v1256_v21 = vadd.f32 %v1255_v14, %v8564_v16 }
 0x2e4   :  { %5868 = vmatmul.msk.bf16.vlgmr.msrb.gmra.mxu0 %vm162_vm2, %v8733_v62  ;;  %v8992_v62 = vpop.f32.mrf.mxu3 }
 0x2e5   :  { %1379 = vmatpush.bf16.msra.mxu0 %v1372_v10  ;;  %v1260_v60 = vmax.f32 %v1256_v21, 0.0  ;;  %v8036_v21 = vld [vmem:[%s11946_s0 + $0x140] sm:$0xff] }
 0x2e9   :  { %1380 = vmatpush.bf16.msra.mxu0 %v8039_v49 }
 0x2ea   :  { %v1257_v51 = vpop.f32.mrf.mxu2 }
 0x2eb   :  { %v1258_v24 = vadd.f32 %v1257_v51, %v8572_v23 }
 0x2ec   :  { %v937_v27 = vpop.f32.mrf.mxu3 }
 0x2ed   :  { %1381 = vmatpush.bf16.msra.mxu0 %v8038_v20  ;;  %v1261_v25 = vmax.f32 %v1258_v24, 0.0  ;;  %v8037_v20 = vld [vmem:[%s11946_s0 + $0x148] sm:$0xff] }
 0x2ef   :  { %v1262_v26 = vpack.c.bf16 %v1261_v25, %v1260_v60 }
 0x2f1   :  { %1270 = vmatpush.bf16.msra.mxu3 %v1262_v26 }
 0x2f4   :  { %5869 = vmatmul.msk.bf16.gmra.mxu0 %vm162_vm2, %v8760_v12  ;;  %5884 = vmatmul.msk.bf16.vlgmr.msra.gmra.mxu3 %vm162_vm2, %v8827_v18  ;;  %v8998_v28 = vpop.f32.mrf.mxu3 }
 0x2fc   :  { %v942_v30 = vpop.f32.mrf.mxu3 }
 0x304   :  { %5915 = vmatmul.msk.bf16.vlgmr.msra.gmra.mxu0 %vm77_vm1, %v8558_v15  ;;  %5885 = vmatmul.msk.bf16.gmra.mxu3 %vm162_vm2, %v8854_v39  ;;  %v9000_v40 = vpop.f32.mrf.mxu3  ;;  %v5890_v39 = vld [vmem:[%s11946_s0 + $0x150] sm:$0x3] }
 0x305   :  { %v1301_v4 = vunpack.c.l.b16 %v5890_v39 }
 0x307   :  { %v1304_v43 = vpack.c.b16 %v1301_v4, %v1301_v4 }
 0x30c   :  { %v1080_v35 = vpop.f32.mrf.mxu3 }
 0x314   :  { %v9004_v37 = vpop.f32.mrf.mxu3 }
 0x31c   :  { %v1085_v44 = vpop.f32.mrf.mxu3 }
 0x327   :  { %v956_v36 = vpop.f32.mrf.mxu0 }
 0x32f   :  { %v9002_v12 = vpop.f32.mrf.mxu0 }
 0x337   :  { %v961_v18 = vpop.f32.mrf.mxu0 }
 0x338   :  { %v962_v19 = vadd.f32 %v961_v18, %v942_v30 }
 0x33a   :  { %v1028_v58 = vadd.f32 %v1021_v63, %v962_v19  ;;  %v1308_v63 = vsel %vm81_vm0, %v1304_v43, 0 }
 0x33c   :  { %v1092_v59 = vadd.f32 %v1085_v44, %v1028_v58 }
 0x33f   :  { %v9006_v3 = vpop.f32.mrf.mxu0 }
 0x347   :  { %v1127_v41 = vpop.f32.mrf.mxu0 }
 0x348   :  { %v1128_v56 = vadd.f32 %v1127_v41, %v8564_v16 }
 0x34a   :  { %v1132_v10 = vmax.f32 %v1128_v56, 0.0 }
 0x34f   :  { %v1129_v6 = vpop.f32.mrf.mxu0 }
 0x350   :  { %v1130_v9 = vadd.f32 %v1129_v6, %v8572_v23 }
 0x352   :  { %v1133_v14 = vmax.f32 %v1130_v9, 0.0 }
 0x354   :  { %v1134_v49 = vpack.c.bf16 %v1133_v14, %v1132_v10 }
 0x356   :  { %1142 = vmatpush.bf16.msrb.mxu1 %v1134_v49 }
 0x359   :  { %5852 = vmatmul.msk.bf16.vlgmr.msrb.gmra.mxu1 %vm162_vm2, %v8700_v45 }
 0x35a   :  { %1315 = vmatpush.bf16.msra.mxu1 %v1308_v63  ;;  %v8063_v63 = vld [vmem:[%s11951_s5 + $0xbc] sm:$0xf0] }
 0x35e   :  { %1316 = vmatpush.bf16.msra.mxu1 %v8037_v20  ;;  %v6023_v20 = vld [vmem:[%s11951_s5 + $0x50] sm:$0xf] }
 0x361   :  { %v9022_v51 = vpop.f32.mrf.mxu0 }
 0x362   :  { %1317 = vmatpush.bf16.msra.mxu1 %v8036_v21  ;;  %v8051_v21 = vld [vmem:[%s11951_s5 + $0x54] sm:$0xf0] }
 0x369   :  { %5853 = vmatmul.msk.bf16.gmra.mxu1 %vm162_vm2, %v8728_v61  ;;  %v9026_v24 = vpop.f32.mrf.mxu0  ;;  %v957_v61 = vadd.f32 %v956_v36, %v937_v27 }
 0x36b   :  { %v1026_v41 = vadd.f32 %v8962_v47, %v957_v61 }
 0x371   :  { %v9028_v60 = vpop.f32.mrf.mxu0 }
 0x379   :  { %v9030_v25 = vpop.f32.mrf.mxu0  ;;  %5899 = vmatmul.msk.bf16.vlgmr.msra.gmra.mxu1 %vm77_vm1, %v8558_v15  ;;  %v1090_v15 = vadd.f32 %v1080_v35, %v1026_v41 }
 0x381   :  { %v1383_v45 = vpop.f32.mrf.mxu0 }
 0x382   :  { %v1384_v26 = vadd.f32 %v1383_v45, %v8564_v16 }
 0x384   :  { %v1388_v19 = vmax.f32 %v1384_v26, 0.0  ;;  %v8050_v26 = vld [vmem:[%s11951_s5 + $0x54] sm:$0xf] }
 0x389   :  { %v1385_v30 = vpop.f32.mrf.mxu0 }
 0x38a   :  { %v1386_v18 = vadd.f32 %v1385_v30, %v8572_v23  ;;  %v6025_v30 = vld [vmem:[%s11951_s5 + $0x58] sm:$0xf0] }
 0x38c   :  { %v1389_v44 = vmax.f32 %v1386_v18, 0.0 }
 0x38e   :  { %v1390_v58 = vpack.c.bf16 %v1389_v44, %v1388_v19 }
 0x390   :  { %1398 = vmatpush.bf16.msrb.mxu1 %v1390_v58 }
 0x393   :  { %5916 = vmatmul.msk.bf16.vlgmr.msrb.gmra.mxu1 %vm162_vm2, %v8864_v53  ;;  %v5930_v53 = vld [vmem:[%s11951_s5 + $0xc8] sm:$0x33] }
 0x394   :  { %v1497_v47 = vunpack.c.l.b16 %v5930_v53  ;;  %v1498_v35 = vunpack.c.h.b16 %v5930_v53  ;;  %v6028_v53 = vor.u32 %v8050_v26, %v6025_v30  ;;  %v5957_v26 = vld [vmem:[%s11951_s5 + $0x98] sm:$0xf]  ;;  %v8059_v30 = vld [vmem:[%s11951_s5 + $0x9c] sm:$0xf0] }
 0x396   :  { %v1511_v14 = vpack.c.b16 %v1497_v47, %v1497_v47  ;;  %v1512_v61 = vpack.c.b16 %v1498_v35, %v1498_v35  ;;  %v8049_v47 = vld [vmem:[%s11951_s5 + $0x44] sm:$0xf0] }
 0x398   :  { %v1530_v19 = vsel %vm81_vm0, %v1511_v14, 0  ;;  %v8062_v14 = vld [vmem:[%s11951_s5 + $0xbc] sm:$0xf] }
 0x399   :  { %1536 = vmatpush.bf16.msrb.mxu3 %v1530_v19  ;;  %v8047_v19 = vld [vmem:[%s11951_s5 + $0x34] sm:$0xf0] }
 0x3a3   :  { %5917 = vmatmul.msk.bf16.gmra.mxu1 %vm162_vm2, %v8882_v8  ;;  %v1440_v8 = vld [vmem:[%s11951_s5 + $0x60] sm:$0x33] }
 0x3a4   :  { %v1598_v27 = vunpack.c.l.b16 %v1440_v8  ;;  %v1599_v36 = vunpack.c.h.b16 %v1440_v8  ;;  %v6015_v8 = vld [vmem:[%s11951_s5 + $0x40] sm:$0xf] }
 0x3a6   :  { %v1612_v49 = vpack.c.b16 %v1598_v27, %v1598_v27  ;;  %v1613_v45 = vpack.c.b16 %v1599_v36, %v1599_v36  ;;  %v6017_v27 = vld [vmem:[%s11951_s5 + $0x48] sm:$0xf0] }
 0x3a8   :  { %v1630_v44 = vsel %vm81_vm0, %v1612_v49, 0  ;;  %v1633_v41 = vsel %vm81_vm0, %v1613_v45, 0  ;;  %v5975_v49 = vld [vmem:[%s11951_s5 + $0xc0] sm:$0xf0] }
 0x3a9   :  { %1636 = vmatpush.bf16.msrb.mxu0 %v1630_v44  ;;  %1649 = vmatpush.bf16.msra.mxu1 %v1633_v41  ;;  %v8046_v44 = vld [vmem:[%s11951_s5 + $0x34] sm:$0xf]  ;;  %v8060_v41 = vld [vmem:[%s11951_s5 + $0xac] sm:$0xf] }
 0x3ad   :  { %1650 = vmatpush.bf16.msra.mxu1 %v6028_v53 }
 0x3d6   :  { %v1144_v39 = vpop.f32.mrf.mxu1 }
 0x3d7   :  { %v9041_v4 = vadd.f32 %v1144_v39, %v1090_v15  ;;  %v6024_v39 = vor.u32 %v8051_v21, %v6023_v20  ;;  %v6016_v21 = vor.u32 %v8049_v47, %v6015_v8  ;;  %v5999_v8 = vld [vmem:[%s11951_s5 + $0x20] sm:$0xf]  ;;  %v8045_v47 = vld [vmem:[%s11951_s5 + $0x24] sm:$0xf0] }
 0x3d9   :  { %1637 = vmatpush.bf16.msrb.mxu0 %v6024_v39  ;;  %v5958_v39 = vor.u32 %v8059_v30, %v5957_v26  ;;  %v6106_v26 = vld [vmem:[%s11951_s5 + $0x198] sm:$0x33] }
 0x3da   :  { %v8043_v30 = vld [vmem:[%s11951_s5 + $0x14] sm:$0xf0] }
 0x3dd   :  { %1638 = vmatpush.bf16.msrb.mxu0 %v6016_v21  ;;  %v8055_v21 = vld [vmem:[%s11951_s5 + $0x7c] sm:$0xf0] }
 0x3de   :  { %v9043_v56 = vpop.f32.mrf.mxu1 }
 0x3e6   :  { %v1149_v6 = vpop.f32.mrf.mxu1 }
 0x3e7   :  { %v9045_v9 = vadd.f32 %v1149_v6, %v1092_v59  ;;  %v5973_v59 = vld [vmem:[%s11951_s5 + $0xb8] sm:$0xf] }
 0x3e8   :  { %v5974_v15 = vor.u32 %v8063_v63, %v5973_v59  ;;  %v1533_v59 = vsel %vm81_vm0, %v1512_v61, 0  ;;  %v5978_v61 = vor.u32 %v8062_v14, %v5975_v49  ;;  %v5941_v49 = vld [vmem:[%s11951_s5 + $0x78] sm:$0xf] }
 0x3ea   :  { %1537 = vmatpush.bf16.msrb.mxu3 %v5974_v15  ;;  %v5967_v15 = vld [vmem:[%s11951_s5 + $0xb0] sm:$0xf0] }
 0x3ee   :  { %v9047_v43 = vpop.f32.mrf.mxu1 }
 0x3f6   :  { %v1319_v10 = vpop.f32.mrf.mxu1 }
 0x3f7   :  { %v1320_v18 = vadd.f32 %v1319_v10, %v8564_v16  ;;  %v5965_v16 = vld [vmem:[%s11951_s5 + $0xa8] sm:$0xf]  ;;  %v8061_v10 = vld [vmem:[%s11951_s5 + $0xac] sm:$0xf0] }
 0x3f8   :  { %v5966_v63 = vor.u32 %v8061_v10, %v5965_v16  ;;  %v5949_v16 = vld [vmem:[%s11951_s5 + $0x88] sm:$0xf]  ;;  %v8057_v10 = vld [vmem:[%s11951_s5 + $0x8c] sm:$0xf0] }
 0x3f9   :  { %v1324_v35 = vmax.f32 %v1320_v18, 0.0  ;;  %v6007_v18 = vld [vmem:[%s11951_s5 + $0x30] sm:$0xf]  ;;  %v5950_v14 = vor.u32 %v8057_v10, %v5949_v16  ;;  %v5933_v10 = vld [vmem:[%s11951_s5 + $0x68] sm:$0xf] }
 0x3fa   :  { %1538 = vmatpush.bf16.msrb.mxu3 %v5966_v63  ;;  %v6000_v63 = vor.u32 %v8045_v47, %v5999_v8  ;;  %v8053_v8 = vld [vmem:[%s11951_s5 + $0x6c] sm:$0xf0] }
 0x3fe   :  { %v1321_v58 = vpop.f32.mrf.mxu1  ;;  %1539 = vmatpush.bf16.msrb.mxu3 %v5958_v39  ;;  %v1840_v39 = vunpack.c.l.b16 %v6106_v26 }
 0x3ff   :  { %v1322_v6 = vadd.f32 %v1321_v58, %v8572_v23  ;;  %v8048_v23 = vld [vmem:[%s11951_s5 + $0x44] sm:$0xf]  ;;  %v6009_v58 = vld [vmem:[%s11951_s5 + $0x38] sm:$0xf0] }
 0x400   :  { %v6020_v45 = vor.u32 %v8048_v23, %v6017_v27  ;;  %v6012_v53 = vor.u32 %v8046_v44, %v6009_v58  ;;  %v8044_v23 = vld [vmem:[%s11951_s5 + $0x24] sm:$0xf]  ;;  %v6001_v27 = vld [vmem:[%s11951_s5 + $0x28] sm:$0xf0] }
 0x401   :  { %v1325_v36 = vmax.f32 %v1322_v6, 0.0  ;;  %v6008_v6 = vor.u32 %v8047_v19, %v6007_v18  ;;  %v8042_v18 = vld [vmem:[%s11951_s5 + $0x14] sm:$0xf]  ;;  %v5993_v19 = vld [vmem:[%s11951_s5 + $0x18] sm:$0xf0] }
 0x402   :  { %1651 = vmatpush.bf16.msra.mxu1 %v6020_v45  ;;  %v5991_v45 = vld [vmem:[%s11951_s5 + $0x10] sm:$0xf]  ;;  %1540 = vmatpush.bf16.msrb.mxu3 %v5950_v14  ;;  %v5996_v16 = vor.u32 %v8042_v18, %v5993_v19  ;;  %v5934_v14 = vor.u32 %v8053_v8, %v5933_v10  ;;  %v6086_v19 = vld [vmem:[%s11951_s5 + $0x120] sm:$0xf] }
 0x403   :  { %v1326_v20 = vpack.c.bf16 %v1325_v36, %v1324_v35  ;;  %v9150_v35 = vld [vmem:[%s11951_s5 + $0x130] sm:$0x33]  ;;  %v5970_v36 = vor.u32 %v8060_v41, %v5967_v15  ;;  %1639 = vmatpush.bf16.msrb.mxu0 %v6008_v6  ;;  %v5942_v15 = vor.u32 %v8055_v21, %v5941_v49  ;;  %v1841_v6 = vunpack.c.h.b16 %v6106_v26  ;;  %v5943_v21 = vld [vmem:[%s11951_s5 + $0x80] sm:$0xf0] }
 0x404   :  { %v1718_v44 = vunpack.c.l.b16 %v9150_v35  ;;  %v5951_v41 = vld [vmem:[%s11951_s5 + $0x90] sm:$0xf0]  ;;  %v1854_v49 = vpack.c.b16 %v1840_v39, %v1840_v39  ;;  %v8086_v39 = vld [vmem:[%s11951_s5 + $0x18c] sm:$0xf] }
 0x405   :  { %1334 = vmatpush.bf16.msra.mxu2 %v1326_v20  ;;  %v6004_v20 = vor.u32 %v8044_v23, %v6001_v27  ;;  %v5983_v23 = vld [vmem:[%s11951_s5] sm:$0xf]  ;;  %v8041_v27 = vld [vmem:[%s11951_s5 + $0x4] sm:$0xf0] }
 0x406   :  { %1652 = vmatpush.bf16.msra.mxu1 %v6012_v53  ;;  %v5992_v53 = vor.u32 %v8043_v30, %v5991_v45  ;;  %v1732_v47 = vpack.c.b16 %v1718_v44, %v1718_v44  ;;  %1541 = vmatpush.bf16.msrb.mxu3 %v5942_v15  ;;  %v5984_v45 = vor.u32 %v8041_v27, %v5983_v23  ;;  %v1719_v30 = vunpack.c.h.b16 %v9150_v35  ;;  %v8075_v44 = vld [vmem:[%s11951_s5 + $0x124] sm:$0xf0]  ;;  %v8073_v23 = vld [vmem:[%s11951_s5 + $0x114] sm:$0xf0] }
 0x407   :  { %1640 = vmatpush.bf16.msrb.mxu0 %v6000_v63  ;;  %v1855_v63 = vpack.c.b16 %v1841_v6, %v1841_v6  ;;  %v1872_v35 = vsel %vm81_vm0, %v1854_v49, 0  ;;  %v6151_v6 = vld [vmem:[%s11951_s5 + $0x190] sm:$0xf0]  ;;  %v6087_v10 = vor.u32 %v8075_v44, %v6086_v19  ;;  %v6143_v49 = vld [vmem:[%s11951_s5 + $0x180] sm:$0xf0] }
 0x408   :  { %5900 = vmatmul.msk.bf16.vlgmr.msra.gmra.mxu2 %vm162_vm2, %v8845_v34  ;;  %v8058_v34 = vld [vmem:[%s11951_s5 + $0x9c] sm:$0xf]  ;;  %v1750_v26 = vsel %vm81_vm0, %v1732_v47, 0  ;;  %v1733_v8 = vpack.c.b16 %v1719_v30, %v1719_v30  ;;  %v6078_v47 = vld [vmem:[%s11951_s5 + $0x110] sm:$0xf] }
 0x409   :  { %1549 = vmatpush.bf16.msrb.mxu2 %v1533_v59  ;;  %v5959_v59 = vld [vmem:[%s11951_s5 + $0xa0] sm:$0xf0]  ;;  %v1875_v15 = vsel %vm81_vm0, %v1855_v63, 0  ;;  %v8071_v30 = vld [vmem:[%s11951_s5 + $0x104] sm:$0xf0] }
 0x40a   :  { %v5962_v58 = vor.u32 %v8058_v34, %v5959_v59  ;;  %1653 = vmatpush.bf16.msra.mxu1 %v6004_v20  ;;  %v8040_v34 = vld [vmem:[%s11951_s5 + $0x4] sm:$0xf]  ;;  %v5985_v59 = vld [vmem:[%s11951_s5 + $0x8] sm:$0xf0]  ;;  %v8054_v20 = vld [vmem:[%s11951_s5 + $0x7c] sm:$0xf]  ;;  %1542 = vmatpush.bf16.msrb.mxu3 %v5934_v14 }
 0x40b   :  { %1641 = vmatpush.bf16.msrb.mxu0 %v5992_v53  ;;  %v5988_v18 = vor.u32 %v8040_v34, %v5985_v59  ;;  %v8052_v53 = vld [vmem:[%s11951_s5 + $0x6c] sm:$0xf]  ;;  %v6141_v34 = vld [vmem:[%s11951_s5 + $0x178] sm:$0xf]  ;;  %v8085_v59 = vld [vmem:[%s11951_s5 + $0x17c] sm:$0xf0] }
 0x40c   :  { %v8084_v14 = vld [vmem:[%s11951_s5 + $0x17c] sm:$0xf]  ;;  %v8074_v63 = vld [vmem:[%s11951_s5 + $0x124] sm:$0xf] }
 0x40d   :  { %1550 = vmatpush.bf16.msrb.mxu2 %v5978_v61  ;;  %v8056_v61 = vld [vmem:[%s11951_s5 + $0x8c] sm:$0xf]  ;;  %v6146_v19 = vor.u32 %v8084_v14, %v6143_v49  ;;  %v6125_v49 = vld [vmem:[%s11951_s5 + $0x158] sm:$0xf] }
 0x40e   :  { %1654 = vmatpush.bf16.msra.mxu1 %v5996_v16  ;;  %v5935_v16 = vld [vmem:[%s11951_s5 + $0x70] sm:$0xf0]  ;;  %1756 = vmatpush.bf16.msra.mxu3 %v1750_v26  ;;  %v6070_v26 = vld [vmem:[%s11951_s5 + $0x100] sm:$0xf] }
 0x40f   :  { %1642 = vmatpush.bf16.msrb.mxu0 %v5984_v45  ;;  %v1753_v45 = vsel %vm81_vm0, %v1733_v8, 0 }
 0x411   :  { %1551 = vmatpush.bf16.msrb.mxu2 %v5970_v36  ;;  %v5954_v36 = vor.u32 %v8056_v61, %v5951_v41  ;;  %v8087_v61 = vld [vmem:[%s11951_s5 + $0x18c] sm:$0xf0]  ;;  %v5946_v41 = vor.u32 %v8054_v20, %v5943_v21  ;;  %v6088_v20 = vld [vmem:[%s11951_s5 + $0x128] sm:$0xf0]  ;;  %v6079_v21 = vor.u32 %v8073_v23, %v6078_v47  ;;  %v6135_v47 = vld [vmem:[%s11951_s5 + $0x170] sm:$0xf0] }
 0x412   :  { %1655 = vmatpush.bf16.msra.mxu1 %v5988_v18  ;;  %1757 = vmatpush.bf16.msra.mxu3 %v6087_v10  ;;  %v6142_v18 = vor.u32 %v8085_v59, %v6141_v34  ;;  %v6091_v44 = vor.u32 %v8074_v63, %v6088_v20  ;;  %v8082_v10 = vld [vmem:[%s11951_s5 + $0x16c] sm:$0xf]  ;;  %v8068_v34 = vld [vmem:[%s11951_s5 + $0xf4] sm:$0xf]  ;;  %v6064_v59 = vld [vmem:[%s11951_s5 + $0xf8] sm:$0xf0] }
 0x413   :  { %1878 = vmatpush.bf16.msra.mxu0 %v1872_v35  ;;  %v6138_v23 = vor.u32 %v8082_v10, %v6135_v47  ;;  %v6067_v14 = vor.u32 %v8068_v34, %v6064_v59  ;;  %v8081_v63 = vld [vmem:[%s11951_s5 + $0x15c] sm:$0xf0]  ;;  %v8080_v20 = vld [vmem:[%s11951_s5 + $0x15c] sm:$0xf]  ;;  %v8065_v10 = vld [vmem:[%s11951_s5 + $0xd4] sm:$0xf0] }
 0x414   :  { %v8077_v34 = vld [vmem:[%s11951_s5 + $0x13c] sm:$0xf0] }
 0x415   :  { %1552 = vmatpush.bf16.msrb.mxu2 %v5962_v58  ;;  %v6149_v58 = vld [vmem:[%s11951_s5 + $0x188] sm:$0xf] }
 0x416   :  { %1891 = vmatpush.bf16.msrb.mxu1 %v1875_v15  ;;  %v6150_v27 = vor.u32 %v8087_v61, %v6149_v58  ;;  %1758 = vmatpush.bf16.msra.mxu3 %v6079_v21  ;;  %v6071_v58 = vor.u32 %v8071_v30, %v6070_v26  ;;  %v8072_v61 = vld [vmem:[%s11951_s5 + $0x114] sm:$0xf]  ;;  %v8070_v15 = vld [vmem:[%s11951_s5 + $0x104] sm:$0xf]  ;;  %v6126_v21 = vor.u32 %v8081_v63, %v6125_v49  ;;  %v6054_v30 = vld [vmem:[%s11951_s5 + $0xe0] sm:$0xf]  ;;  %v9367_v63 = vpop.f32.mrf.mxu3 }
 0x418   :  { %5901 = vmatmul.msk.bf16.gmra.mxu2 %vm162_vm2, %v8871_v7  ;;  %v5938_v7 = vor.u32 %v8052_v53, %v5935_v16  ;;  %1879 = vmatpush.bf16.msra.mxu0 %v6150_v27  ;;  %v6133_v53 = vld [vmem:[%s11951_s5 + $0x168] sm:$0xf]  ;;  %v8083_v16 = vld [vmem:[%s11951_s5 + $0x16c] sm:$0xf0] }
 0x419   :  { %1553 = vmatpush.bf16.msrb.mxu2 %v5954_v36  ;;  %v6154_v36 = vor.u32 %v8086_v39, %v6151_v6  ;;  %v6072_v39 = vld [vmem:[%s11951_s5 + $0x108] sm:$0xf0]  ;;  %v6134_v8 = vor.u32 %v8083_v16, %v6133_v53  ;;  %v6062_v27 = vld [vmem:[%s11951_s5 + $0xf0] sm:$0xf] }
 0x41a   :  { %1759 = vmatpush.bf16.msra.mxu3 %v6071_v58  ;;  %v6075_v6 = vor.u32 %v8070_v15, %v6072_v39  ;;  %v6056_v58 = vld [vmem:[%s11951_s5 + $0xe8] sm:$0xf0]  ;;  %v6046_v16 = vld [vmem:[%s11951_s5 + $0xd0] sm:$0xf] }
 0x41b   :  { %1892 = vmatpush.bf16.msrb.mxu1 %v6154_v36  ;;  %v8069_v36 = vld [vmem:[%s11951_s5 + $0xf4] sm:$0xf0]  ;;  %v8078_v15 = vld [vmem:[%s11951_s5 + $0x14c] sm:$0xf]  ;;  %v6047_v47 = vor.u32 %v8065_v10, %v6046_v16 }
 0x41c   :  { %1880 = vmatpush.bf16.msra.mxu0 %v6142_v18  ;;  %v8067_v18 = vld [vmem:[%s11951_s5 + $0xe4] sm:$0xf0] }
 0x41d   :  { %1554 = vmatpush.bf16.msrb.mxu2 %v5946_v41  ;;  %v6080_v41 = vld [vmem:[%s11951_s5 + $0x118] sm:$0xf0] }
 0x41e   :  { %v6083_v35 = vor.u32 %v8072_v61, %v6080_v41  ;;  %v6117_v41 = vld [vmem:[%s11951_s5 + $0x148] sm:$0xf] }
 0x41f   :  { %1893 = vmatpush.bf16.msrb.mxu1 %v6146_v19  ;;  %v8066_v19 = vld [vmem:[%s11951_s5 + $0xe4] sm:$0xf] }
 0x420   :  { %1881 = vmatpush.bf16.msra.mxu0 %v6134_v8  ;;  %v6059_v61 = vor.u32 %v8066_v19, %v6056_v58  ;;  %v8064_v8 = vld [vmem:[%s11951_s5 + $0xd4] sm:$0xf]  ;;  %v1218_v58 = vadd.f32 %v9022_v51, %v9041_v4 }
 0x421   :  { %1555 = vmatpush.bf16.msrb.mxu2 %v5938_v7  ;;  %v6063_v7 = vor.u32 %v8069_v36, %v6062_v27  ;;  %v6109_v36 = vld [vmem:[%s11951_s5 + $0x138] sm:$0xf] }
 0x422   :  { %v6110_v59 = vor.u32 %v8077_v34, %v6109_v36 }
 0x423   :  { %1894 = vmatpush.bf16.msrb.mxu1 %v6138_v23  ;;  %1760 = vmatpush.bf16.msra.mxu3 %v6063_v7  ;;  %v6048_v23 = vld [vmem:[%s11951_s5 + $0xd8] sm:$0xf0] }
 0x424   :  { %1882 = vmatpush.bf16.msra.mxu0 %v6126_v21  ;;  %v6051_v27 = vor.u32 %v8064_v8, %v6048_v23  ;;  %v8076_v7 = vld [vmem:[%s11951_s5 + $0x13c] sm:$0xf] }
 0x425   :  { %1769 = vmatpush.bf16.msra.mxu2 %v1753_v45  ;;  %v6127_v45 = vld [vmem:[%s11951_s5 + $0x160] sm:$0xf0] }
 0x426   :  { %v6130_v26 = vor.u32 %v8080_v20, %v6127_v45  ;;  %v216_v20 = vadd.f32 %v8654_v2, %v8650_v0  ;;  %v959_v45 = vadd.f32 %v9002_v12, %v8998_v28  ;;  %v6169_v2 = vld [vmem:[%s11951_s5 + $0x200] sm:$0x33] }
 0x428   :  { %1895 = vmatpush.bf16.msrb.mxu1 %v6130_v26  ;;  %v305_v21 = vadd.f32 %v8797_v33, %v216_v20  ;;  %v1272_v26 = vpop.f32.mrf.mxu3  ;;  %v1400_v33 = vpop.f32.mrf.mxu1 }
 0x429   :  { %1770 = vmatpush.bf16.msra.mxu2 %v6091_v44  ;;  %v6055_v44 = vor.u32 %v8067_v18, %v6054_v30  ;;  %v821_v18 = vpop.permute.xlu1 %820  ;;  %v1282_v12 = vadd.f32 %v1272_v26, %v1218_v58 }
 0x42a   :  { %v390_v30 = vadd.f32 %v8800_v38, %v305_v21 }
 0x42b   :  { %1761 = vmatpush.bf16.msra.mxu3 %v6055_v44  ;;  %v1027_v44 = vadd.f32 %v8966_v48, %v959_v45 }
 0x42c   :  { %v475_v19 = vadd.f32 %v8804_v50, %v390_v30  ;;  %v6212_v30 = vld [vmem:[%s11951_s5 + $0x1f0] sm:$0xf] }
 0x42d   :  { %1771 = vmatpush.bf16.msra.mxu2 %v6083_v35  ;;  %v8079_v35 = vld [vmem:[%s11951_s5 + $0x14c] sm:$0xf0]  ;;  %v1091_v38 = vadd.f32 %v9004_v37, %v1027_v44 }
 0x42e   :  { %v6118_v39 = vor.u32 %v8079_v35, %v6117_v41  ;;  %v560_v0 = vadd.f32 %v8810_v55, %v475_v19  ;;  %v1962_v41 = vunpack.c.l.b16 %v6169_v2  ;;  %v1220_v19 = vadd.f32 %v9028_v60, %v9045_v9  ;;  %v6275_v9 = vld [vmem:[%s11951_s5 + $0x258] sm:$0xf] }
 0x42f   :  { %1762 = vmatpush.bf16.msra.mxu3 %v6047_v47  ;;  %v1155_v51 = vadd.f32 %v9043_v56, %v1091_v38 }
 0x430   :  { %1883 = vmatpush.bf16.msra.mxu0 %v6118_v39  ;;  %v645_v28 = vadd.f32 %v8933_v5, %v560_v0  ;;  %v1274_v4 = vpop.f32.mrf.mxu3  ;;  %v1976_v10 = vpack.c.b16 %v1962_v41, %v1962_v41  ;;  %v6214_v0 = vld [vmem:[%s11951_s5 + $0x1f8] sm:$0xf0] }
 0x431   :  { %1772 = vmatpush.bf16.msra.mxu2 %v6075_v6  ;;  %v6119_v6 = vld [vmem:[%s11951_s5 + $0x150] sm:$0xf0] }
 0x432   :  { %v6122_v53 = vor.u32 %v8078_v15, %v6119_v6  ;;  %v730_v55 = vadd.f32 %v8938_v11, %v645_v28  ;;  %v1963_v15 = vunpack.c.h.b16 %v6169_v2  ;;  %v9396_v6 = vadd.f32 %v8795_v32, %v8652_v1 }
 0x433   :  { %v1219_v11 = vadd.f32 %v9026_v24, %v1155_v51  ;;  %v964_v24 = vadd.f32 %v9006_v3, %v9000_v40  ;;  %v8099_v40 = vld [vmem:[%s11951_s5 + $0x1f4] sm:$0xf0]  ;;  %v6277_v51 = vld [vmem:[%s11951_s5 + $0x260] sm:$0xf0] }
 0x434   :  { %1896 = vmatpush.bf16.msrb.mxu1 %v6122_v53  ;;  %1884 = vmatpush.bf16.msra.mxu0 %v6110_v59  ;;  %v815_v5 = vadd.f32 %v8942_v22, %v730_v55  ;;  %v9398_v53 = vpop.permute.xlu1 %825  ;;  %v1977_v22 = vpack.c.b16 %v1963_v15, %v1963_v15  ;;  %v1402_v59 = vpop.f32.mrf.mxu1  ;;  %v8110_v55 = vld [vmem:[%s11951_s5 + $0x25c] sm:$0xf] }
 0x435   :  { %1773 = vmatpush.bf16.msra.mxu2 %v6067_v14  ;;  %v6111_v14 = vld [vmem:[%s11951_s5 + $0x140] sm:$0xf0]  ;;  %v1283_v21 = vadd.f32 %v1274_v4, %v1219_v11  ;;  %v6206_v11 = vld [vmem:[%s11951_s5 + $0x1e8] sm:$0xf0] }
 0x436   :  { %v6114_v49 = vor.u32 %v8076_v7, %v6111_v14  ;;  %v839_v32 = vadd.f32 %v9398_v53, %v815_v5  ;;  %v1997_v58 = vsel %vm81_vm0, %v1977_v22, 0 }
 0x438   :  { %1897 = vmatpush.bf16.msrb.mxu1 %v6114_v49  ;;  %v1994_v49 = vsel %vm81_vm0, %v1976_v10, 0  ;;  %v9460_v15 = vmax.f32 %v839_v32, 0.0  ;;  %v8097_v10 = vld [vmem:[%s11951_s5 + $0x1e4] sm:$0xf0] }
 0x439   :  { %1774 = vmatpush.bf16.msra.mxu2 %v6059_v61  ;;  %v838_v61 = vadd.f32 %v821_v18, %v8940_v17  ;;  %v6232_v17 = vld [vmem:[%s11951_s5 + $0x268] sm:$0x33] }
 0x43a   :  { %v2084_v37 = vunpack.c.l.b16 %v6232_v17  ;;  %v2085_v8 = vunpack.c.h.b16 %v6232_v17 }
 0x43b   :  { %v9386_v50 = vmax.f32 %v838_v61, 0.0  ;;  %v8098_v61 = vld [vmem:[%s11951_s5 + $0x1f4] sm:$0xf] }
 0x43c   :  { %v2098_v34 = vpack.c.b16 %v2084_v37, %v2084_v37  ;;  %v2099_v20 = vpack.c.b16 %v2085_v8, %v2085_v8  ;;  %v6217_v37 = vor.u32 %v8098_v61, %v6214_v0  ;;  %v6198_v61 = vld [vmem:[%s11951_s5 + $0x1d8] sm:$0xf0] }
 0x43d   :  { %1775 = vmatpush.bf16.msra.mxu2 %v6051_v27  ;;  %v1442_v16 = vrot.slane %v9386_v50, 1  ;;  %v1661_v47 = vrot.slane %v9386_v50, 2  ;;  %v1783_v23 = vrot.slane %v9386_v50, 3  ;;  %v1905_v27 = vrot.slane %v9386_v50, 4 }
 0x43e   :  { %v2027_v1 = vrot.slane %v9386_v50, 5  ;;  %v2149_v7 = vrot.slane %v9386_v50, 6  ;;  %v2116_v60 = vsel %vm81_vm0, %v2098_v34, 0  ;;  %v2119_v17 = vsel %vm81_vm0, %v2099_v20, 0 }
 0x43f   :  { %v6280_v34 = vor.u32 %v8110_v55, %v6277_v51  ;;  %v1029_v20 = vadd.f32 %v8968_v54, %v964_v24  ;;  %v2271_v54 = vrot.slane %v9386_v50, 7  ;;  %v8093_v55 = vld [vmem:[%s11951_s5 + $0x1c4] sm:$0xf0] }
 0x48b   :  { %v1336_v48 = vpop.f32.mrf.mxu2 }
 0x48c   :  { %v1346_v35 = vadd.f32 %v1336_v48, %v1282_v12  ;;  %v8111_v12 = vld [vmem:[%s11951_s5 + $0x25c] sm:$0xf0] }
 0x48d   :  { %v6276_v32 = vor.u32 %v8111_v12, %v6275_v9  ;;  %v8107_v9 = vld [vmem:[%s11951_s5 + $0x23c] sm:$0xf0]  ;;  %v6261_v12 = vld [vmem:[%s11951_s5 + $0x240] sm:$0xf0] }
 0x48e   :  { %v1410_v39 = vadd.f32 %v1400_v33, %v1346_v35  ;;  %v1277_v33 = vpop.f32.mrf.mxu3 }
 0x48f   :  { %v1284_v8 = vadd.f32 %v1277_v33, %v1220_v19 }
 0x490   :  { %v1414_v56 = vadd.f32 %v1410_v39, %v821_v18  ;;  %v9423_v18 = vpop.permute.xlu2 %830  ;;  %v6213_v39 = vor.u32 %v8099_v40, %v6212_v30 }
 0x491   :  { %v840_v5 = vadd.f32 %v9423_v18, %v8949_v31  ;;  %v8096_v31 = vld [vmem:[%s11951_s5 + $0x1e4] sm:$0xf] }
 0x492   :  { %v9407_v36 = vmax.f32 %v1414_v56, 0.0  ;;  %v6209_v19 = vor.u32 %v8096_v31, %v6206_v11  ;;  %v8105_v31 = vld [vmem:[%s11951_s5 + $0x22c] sm:$0xf0]  ;;  %v8104_v11 = vld [vmem:[%s11951_s5 + $0x22c] sm:$0xf] }
 0x493   :  { %v1338_v14 = vpop.f32.mrf.mxu2  ;;  %v9508_v24 = vmax.f32 %v840_v5, 0.0 }
 0x494   :  { %v1444_v45 = vsel %vm1425_vm3, %v1442_v16, %v9407_v36  ;;  %v1423_v26 = vrot.slane %v9407_v36, 7  ;;  %v1663_v3 = vrot.slane %v9407_v36, 1  ;;  %v1785_v2 = vrot.slane %v9407_v36, 2  ;;  %v6204_v16 = vld [vmem:[%s11951_s5 + $0x1e0] sm:$0xf] }
 0x495   :  { %v1445_v44 = vpack.c.bf16 %v1444_v45, %v1444_v45  ;;  %v1347_v28 = vadd.f32 %v1338_v14, %v1283_v21  ;;  %v1907_v35 = vrot.slane %v9407_v36, 3  ;;  %v6267_v14 = vld [vmem:[%s11951_s5 + $0x248] sm:$0xf]  ;;  %v1405_v45 = vpop.f32.mrf.mxu1  ;;  %v3489_v51 = vrot.slane %v9508_v24, 1 }
 0x496   :  { %v1426_v38 = vsel %vm1425_vm3, %v9386_v50, %v1423_v26  ;;  %v9445_v48 = vsel %vm1425_vm3, %v1661_v47, %v1663_v3  ;;  %v9457_v4 = vsel %vm1425_vm3, %v1783_v23, %v1785_v2  ;;  %v2029_v47 = vrot.slane %v9407_v36, 4  ;;  %v6269_v26 = vld [vmem:[%s11951_s5 + $0x250] sm:$0xf0] }
 0x497   :  { %5979 = vmatmul.msk.bf16.vlgmr.msrb.gmra.mxu3 %vm1525_vm4, %v1445_v44  ;;  %5980 = vmatmul.msk.bf16.vlgmr.msrb.gmra.mxu2 %vm1525_vm4, %v1445_v44  ;;  %v1427_v41 = vpack.c.bf16 %v1426_v38, %v1426_v38  ;;  %v9479_v56 = vsel %vm1425_vm3, %v1905_v27, %v1907_v35  ;;  %v2151_v23 = vrot.slane %v9407_v36, 5  ;;  %v1411_v22 = vadd.f32 %v1402_v59, %v1347_v28  ;;  %v8108_v59 = vld [vmem:[%s11951_s5 + $0x24c] sm:$0xf]  ;;  %v6196_v44 = vld [vmem:[%s11951_s5 + $0x1d0] sm:$0xf] }
 0x498   :  { %2000 = vmatpush.bf16.msrb.mxu3 %v1994_v49  ;;  %2013 = vmatpush.bf16.msrb.mxu2 %v1997_v58  ;;  %v8109_v49 = vld [vmem:[%s11951_s5 + $0x24c] sm:$0xf0]  ;;  %v2273_v27 = vrot.slane %v9407_v36, 6  ;;  %v9500_v30 = vsel %vm1425_vm3, %v2027_v1, %v2029_v47  ;;  %v6205_v3 = vor.u32 %v8097_v10, %v6204_v16  ;;  %v307_v1 = vadd.f32 %v8802_v46, %v9396_v6  ;;  %v8094_v50 = vld [vmem:[%s11951_s5 + $0x1d4] sm:$0xf] }
 0x499   :  { %6029 = vmatmul.msk.bf16.vlgmr.msrb.gmra.mxu0 %vm1525_vm4, %v1427_v41  ;;  %6030 = vmatmul.msk.bf16.vlgmr.msra.gmra.mxu1 %vm1525_vm4, %v1427_v41  ;;  %v9505_v36 = vsel %vm1425_vm3, %v2149_v7, %v2151_v23  ;;  %v6268_v58 = vor.u32 %v8109_v49, %v6267_v14  ;;  %v8095_v7 = vld [vmem:[%s11951_s5 + $0x1d4] sm:$0xf0]  ;;  %v1415_v2 = vadd.f32 %v1411_v22, %v9398_v53  ;;  %v3123_v28 = vrot.slane %v9460_v15, 6  ;;  %v8106_v53 = vld [vmem:[%s11951_s5 + $0x23c] sm:$0xf] }
 0x49a   :  { %2122 = vmatpush.bf16.msrb.mxu0 %v2116_v60  ;;  %2135 = vmatpush.bf16.msra.mxu1 %v2119_v17  ;;  %v9525_v0 = vsel %vm1425_vm3, %v2271_v54, %v2273_v27  ;;  %v6272_v46 = vor.u32 %v8108_v59, %v6269_v26  ;;  %v6259_v6 = vld [vmem:[%s11951_s5 + $0x238] sm:$0xf]  ;;  %v392_v38 = vadd.f32 %v8808_v52, %v307_v1  ;;  %v6253_v47 = vld [vmem:[%s11951_s5 + $0x230] sm:$0xf0]  ;;  %v6180_v23 = vld [vmem:[%s11951_s5 + $0x1b0] sm:$0xf] }
 0x49b   :  { %v1341_v21 = vpop.f32.mrf.mxu2  ;;  %v1093_v60 = vadd.f32 %v9367_v63, %v1029_v20  ;;  %v6197_v17 = vor.u32 %v8095_v7, %v6196_v44  ;;  %v6201_v52 = vor.u32 %v8094_v50, %v6198_v61  ;;  %v6188_v63 = vld [vmem:[%s11951_s5 + $0x1c0] sm:$0xf]  ;;  %v9562_v16 = vmax.f32 %v1415_v2, 0.0  ;;  %v8091_v14 = vld [vmem:[%s11951_s5 + $0x1b4] sm:$0xf0] }
 0x49c   :  { %v1348_v40 = vadd.f32 %v1341_v21, %v1284_v8  ;;  %2001 = vmatpush.bf16.msrb.mxu3 %v6213_v39  ;;  %2014 = vmatpush.bf16.msrb.mxu2 %v6217_v37  ;;  %v477_v35 = vadd.f32 %v8812_v57, %v392_v38  ;;  %v6190_v39 = vld [vmem:[%s11951_s5 + $0x1c8] sm:$0xf0]  ;;  %v6295_v37 = vld [vmem:[%s11951_s5 + $0x2d0] sm:$0x33]  ;;  %v6260_v57 = vor.u32 %v8107_v9, %v6259_v6  ;;  %v6251_v8 = vld [vmem:[%s11951_s5 + $0x228] sm:$0xf] }
 0x49d   :  { %v1157_v5 = vadd.f32 %v9047_v43, %v1093_v60  ;;  %v6264_v43 = vor.u32 %v8106_v53, %v6261_v12  ;;  %v8090_v49 = vld [vmem:[%s11951_s5 + $0x1b4] sm:$0xf]  ;;  %v6182_v27 = vld [vmem:[%s11951_s5 + $0x1b8] sm:$0xf0]  ;;  %v2206_v20 = vunpack.c.l.b16 %v6295_v37  ;;  %v6243_v21 = vld [vmem:[%s11951_s5 + $0x218] sm:$0xf] }
 0x49e   :  { %v1412_v33 = vadd.f32 %v1405_v45, %v1348_v40  ;;  %2123 = vmatpush.bf16.msrb.mxu0 %v6276_v32  ;;  %2136 = vmatpush.bf16.msra.mxu1 %v6280_v34  ;;  %v562_v22 = vadd.f32 %v8821_v13, %v477_v35  ;;  %v6189_v32 = vor.u32 %v8093_v55, %v6188_v63  ;;  %v2207_v45 = vunpack.c.h.b16 %v6295_v37  ;;  %v6358_v59 = vld [vmem:[%s11951_s5 + $0x338] sm:$0x33]  ;;  %v6245_v50 = vld [vmem:[%s11951_s5 + $0x220] sm:$0xf0]  ;;  %v6172_v61 = vld [vmem:[%s11951_s5 + $0x1a0] sm:$0xf] }
 0x49f   :  { %v1666_v13 = vpack.c.bf16 %v9445_v48, %v9445_v48  ;;  %v3245_v26 = vrot.slane %v9460_v15, 7  ;;  %v1221_v40 = vadd.f32 %v9030_v25, %v1157_v5  ;;  %v6252_v48 = vor.u32 %v8105_v31, %v6251_v8  ;;  %v8102_v44 = vld [vmem:[%s11951_s5 + $0x21c] sm:$0xf]  ;;  %v8089_v2 = vld [vmem:[%s11951_s5 + $0x1a4] sm:$0xf0] }
 0x4a0   :  { %v1416_v41 = vadd.f32 %v1412_v33, %v9423_v18  ;;  %2002 = vmatpush.bf16.msrb.mxu3 %v6205_v3  ;;  %2015 = vmatpush.bf16.msrb.mxu2 %v6209_v19  ;;  %v8092_v18 = vld [vmem:[%s11951_s5 + $0x1c4] sm:$0xf]  ;;  %v6256_v3 = vor.u32 %v8104_v11, %v6253_v47  ;;  %v8103_v19 = vld [vmem:[%s11951_s5 + $0x21c] sm:$0xf0]  ;;  %v3125_v1 = vrot.slane %v9562_v16, 5  ;;  %v1788_v25 = vpack.c.bf16 %v9457_v4, %v9457_v4  ;;  %v1279_v33 = vpop.f32.mrf.mxu3 }
 0x4a1   :  { %v6193_v34 = vor.u32 %v8092_v18, %v6190_v39  ;;  %v6185_v7 = vor.u32 %v8090_v49, %v6182_v27  ;;  %v8088_v4 = vld [vmem:[%s11951_s5 + $0x1a4] sm:$0xf]  ;;  %v2220_v6 = vpack.c.b16 %v2206_v20, %v2206_v20  ;;  %v2328_v38 = vunpack.c.l.b16 %v6358_v59  ;;  %v6235_v63 = vld [vmem:[%s11951_s5 + $0x208] sm:$0xf]  ;;  %v8100_v18 = vld [vmem:[%s11951_s5 + $0x20c] sm:$0xf] }
 0x4a2   :  { %v9564_v10 = vmax.f32 %v1416_v41, 0.0  ;;  %2124 = vmatpush.bf16.msrb.mxu0 %v6268_v58  ;;  %2137 = vmatpush.bf16.msra.mxu1 %v6272_v46  ;;  %v6181_v58 = vor.u32 %v8091_v14, %v6180_v23  ;;  %v6174_v46 = vld [vmem:[%s11951_s5 + $0x1a8] sm:$0xf0]  ;;  %v2329_v60 = vunpack.c.h.b16 %v6358_v59  ;;  %v3247_v9 = vrot.slane %v9562_v16, 6  ;;  %v6237_v39 = vld [vmem:[%s11951_s5 + $0x210] sm:$0xf0] }
 0x4a3   :  { %v647_v53 = vadd.f32 %v8936_v29, %v562_v22  ;;  %v2221_v12 = vpack.c.b16 %v2207_v45, %v2207_v45  ;;  %v9638_v41 = vsel %vm1425_vm3, %v3123_v28, %v3125_v1  ;;  %v8101_v29 = vld [vmem:[%s11951_s5 + $0x20c] sm:$0xf0]  ;;  %v1343_v35 = vpop.f32.mrf.mxu2  ;;  %v6173_v5 = vor.u32 %v8089_v2, %v6172_v61  ;;  %v6338_v22 = vld [vmem:[%s11951_s5 + $0x2c0] sm:$0xf]  ;;  %v6340_v27 = vld [vmem:[%s11951_s5 + $0x2c8] sm:$0xf0]  ;;  %v1407_v45 = vpop.f32.mrf.mxu1 }
 0x4a4   :  { %2003 = vmatpush.bf16.msrb.mxu3 %v6197_v17  ;;  %2016 = vmatpush.bf16.msrb.mxu2 %v6201_v52  ;;  %v9602_v54 = vsel %vm1425_vm3, %v3489_v51, %v9564_v10  ;;  %v6244_v17 = vor.u32 %v8103_v19, %v6243_v21  ;;  %v6248_v52 = vor.u32 %v8102_v44, %v6245_v50  ;;  %v3609_v37 = vrot.slane %v9508_v24, 2  ;;  %v6401_v59 = vld [vmem:[%s11951_s5 + $0x328] sm:$0xf]  ;;  %v836_v19 = vpop.permute.xlu2 %835  ;;  %v8134_v1 = vld [vmem:[%s11951_s5 + $0x32c] sm:$0xf] }
 0x4a5   :  { %v9647_v55 = vsel %vm1425_vm3, %v3245_v26, %v3247_v9  ;;  %v1285_v51 = vadd.f32 %v1279_v33, %v1221_v40  ;;  %v6177_v28 = vor.u32 %v8088_v4, %v6174_v46  ;;  %v2343_v8 = vpack.c.b16 %v2329_v60, %v2329_v60  ;;  %v8135_v26 = vld [vmem:[%s11951_s5 + $0x32c] sm:$0xf0]  ;;  %v8121_v61 = vld [vmem:[%s11951_s5 + $0x2b4] sm:$0xf0]  ;;  %v8120_v46 = vld [vmem:[%s11951_s5 + $0x2b4] sm:$0xf] }
 0x4a6   :  { %2125 = vmatpush.bf16.msrb.mxu0 %v6260_v57  ;;  %2138 = vmatpush.bf16.msra.mxu1 %v6264_v43  ;;  %v2238_v57 = vsel %vm81_vm0, %v2220_v6, 0  ;;  %v2342_v43 = vpack.c.b16 %v2328_v38, %v2328_v38  ;;  %v3368_v31 = vrot.slane %v9564_v10, 7  ;;  %v732_v11 = vadd.f32 %v8992_v62, %v647_v53  ;;  %v8122_v62 = vld [vmem:[%s11951_s5 + $0x2c4] sm:$0xf]  ;;  %v6330_v50 = vld [vmem:[%s11951_s5 + $0x2b0] sm:$0xf] }
 0x4a7   :  { %6092 = vmatmul.msk.bf16.vlgmr.msra.gmra.mxu3 %vm1525_vm4, %v1666_v13  ;;  %6093 = vmatmul.msk.bf16.vlgmr.msra.gmra.mxu2 %vm1525_vm4, %v1666_v13  ;;  %v2241_v47 = vsel %vm81_vm0, %v2221_v12, 0  ;;  %v6236_v23 = vor.u32 %v8101_v29, %v6235_v63  ;;  %v1349_v14 = vadd.f32 %v1343_v35, %v1285_v51  ;;  %v6240_v49 = vor.u32 %v8100_v18, %v6237_v39  ;;  %v6332_v6 = vld [vmem:[%s11951_s5 + $0x2b8] sm:$0xf0]  ;;  %v6395_v29 = vld [vmem:[%s11951_s5 + $0x320] sm:$0xf0] }
 0x4a8   :  { %2004 = vmatpush.bf16.msrb.mxu3 %v6189_v32  ;;  %2017 = vmatpush.bf16.msrb.mxu2 %v6193_v34  ;;  %v8123_v32 = vld [vmem:[%s11951_s5 + $0x2c4] sm:$0xf0]  ;;  %v3611_v34 = vrot.slane %v9564_v10, 1  ;;  %v9675_v20 = vsel %vm1425_vm3, %v9508_v24, %v3368_v31  ;;  %v3733_v13 = vrot.slane %v9564_v10, 2  ;;  %v817_v21 = vadd.f32 %v8955_v42, %v732_v11  ;;  %v8132_v63 = vld [vmem:[%s11951_s5 + $0x31c] sm:$0xf] }
 0x4a9   :  { %6155 = vmatmul.msk.bf16.vlgmr.msra.gmra.mxu0 %vm1525_vm4, %v1788_v25  ;;  %6156 = vmatmul.msk.bf16.vlgmr.msrb.gmra.mxu1 %vm1525_vm4, %v1788_v25  ;;  %v2360_v42 = vsel %vm81_vm0, %v2342_v43, 0  ;;  %v2363_v44 = vsel %vm81_vm0, %v2343_v8, 0  ;;  %v6403_v25 = vld [vmem:[%s11951_s5 + $0x330] sm:$0xf0]  ;;  %v3975_v33 = vrot.slane %v9508_v24, 5  ;;  %v1413_v4 = vadd.f32 %v1407_v45, %v1349_v14 }
 0x4aa   :  { %2126 = vmatpush.bf16.msrb.mxu0 %v6252_v48  ;;  %2139 = vmatpush.bf16.msra.mxu1 %v6256_v3  ;;  %v9686_v40 = vsel %vm1425_vm3, %v3609_v37, %v3611_v34  ;;  %v3731_v48 = vrot.slane %v9508_v24, 3  ;;  %v3853_v3 = vrot.slane %v9508_v24, 4  ;;  %v3855_v38 = vrot.slane %v9564_v10, 3  ;;  %v6322_v37 = vld [vmem:[%s11951_s5 + $0x2a0] sm:$0xf] }
 0x4ab   :  { %v3977_v60 = vrot.slane %v9564_v10, 4  ;;  %v841_v9 = vadd.f32 %v836_v19, %v817_v21  ;;  %v6402_v53 = vor.u32 %v8135_v26, %v6401_v59  ;;  %v6406_v12 = vor.u32 %v8134_v1, %v6403_v25  ;;  %v8118_v11 = vld [vmem:[%s11951_s5 + $0x2a4] sm:$0xf]  ;;  %v8117_v45 = vld [vmem:[%s11951_s5 + $0x294] sm:$0xf0] }
 0x4ac   :  { %2005 = vmatpush.bf16.msrb.mxu3 %v6181_v58  ;;  %2018 = vmatpush.bf16.msrb.mxu2 %v6185_v7  ;;  %v6339_v58 = vor.u32 %v8123_v32, %v6338_v22  ;;  %v6343_v7 = vor.u32 %v8122_v62, %v6340_v27  ;;  %v9705_v2 = vsel %vm1425_vm3, %v3731_v48, %v3733_v13  ;;  %v4219_v43 = vrot.slane %v9508_v24, 7  ;;  %v6387_v62 = vld [vmem:[%s11951_s5 + $0x310] sm:$0xf0]  ;;  %v6316_v48 = vld [vmem:[%s11951_s5 + $0x298] sm:$0xf0] }
 0x4ad   :  { %v9729_v51 = vsel %vm1425_vm3, %v3853_v3, %v3855_v38  ;;  %v9732_v35 = vsel %vm1425_vm3, %v3975_v33, %v3977_v60  ;;  %v6331_v18 = vor.u32 %v8121_v61, %v6330_v50  ;;  %v6335_v39 = vor.u32 %v8120_v46, %v6332_v6  ;;  %v8116_v26 = vld [vmem:[%s11951_s5 + $0x294] sm:$0xf]  ;;  %v6421_v50 = vld [vmem:[%s11951_s5 + $0x3a0] sm:$0x33]  ;;  %v8115_v46 = vld [vmem:[%s11951_s5 + $0x284] sm:$0xf0] }
 0x4ae   :  { %2127 = vmatpush.bf16.msrb.mxu0 %v6244_v17  ;;  %2140 = vmatpush.bf16.msra.mxu1 %v6248_v52  ;;  %v6393_v17 = vld [vmem:[%s11951_s5 + $0x318] sm:$0xf]  ;;  %v8133_v52 = vld [vmem:[%s11951_s5 + $0x31c] sm:$0xf0]  ;;  %v1417_v8 = vadd.f32 %v1413_v4, %v836_v19  ;;  %v1910_v31 = vpack.c.bf16 %v9479_v56, %v9479_v56  ;;  %v4221_v22 = vrot.slane %v9564_v10, 6  ;;  %v9755_v32 = vmax.f32 %v841_v9, 0.0 }
 0x4af   :  { %v6398_v34 = vor.u32 %v8132_v63, %v6395_v29  ;;  %v6385_v56 = vld [vmem:[%s11951_s5 + $0x308] sm:$0xf]  ;;  %v2032_v14 = vpack.c.bf16 %v9500_v30, %v9500_v30  ;;  %v6314_v30 = vld [vmem:[%s11951_s5 + $0x290] sm:$0xf]  ;;  %v6319_v33 = vor.u32 %v8116_v26, %v6316_v48  ;;  %v6306_v4 = vld [vmem:[%s11951_s5 + $0x280] sm:$0xf]  ;;  %v2449_v29 = vunpack.c.l.b16 %v6421_v50 }
 0x4b0   :  { %2006 = vmatpush.bf16.msrb.mxu3 %v6173_v5  ;;  %2019 = vmatpush.bf16.msrb.mxu2 %v6177_v28  ;;  %v4097_v5 = vrot.slane %v9508_v24, 6  ;;  %v4099_v28 = vrot.slane %v9564_v10, 5  ;;  %v6394_v24 = vor.u32 %v8133_v52, %v6393_v17  ;;  %v8131_v10 = vld [vmem:[%s11951_s5 + $0x30c] sm:$0xf0]  ;;  %v9774_v27 = vsel %vm1425_vm3, %v4219_v43, %v4221_v22  ;;  %v8114_v6 = vld [vmem:[%s11951_s5 + $0x284] sm:$0xf] }
 0x4b1   :  { %v9782_v59 = vmax.f32 %v1417_v8, 0.0  ;;  %v6386_v3 = vor.u32 %v8131_v10, %v6385_v56  ;;  %v5071_v1 = vrot.slane %v9755_v32, 6  ;;  %v5193_v25 = vrot.slane %v9755_v32, 7  ;;  %v6308_v38 = vld [vmem:[%s11951_s5 + $0x288] sm:$0xf0] }
 0x4b2   :  { %2128 = vmatpush.bf16.msrb.mxu0 %v6236_v23  ;;  %2141 = vmatpush.bf16.msra.mxu1 %v6240_v49  ;;  %v9752_v23 = vsel %vm1425_vm3, %v4097_v5, %v4099_v28  ;;  %v8130_v49 = vld [vmem:[%s11951_s5 + $0x30c] sm:$0xf]  ;;  %v6315_v61 = vor.u32 %v8117_v45, %v6314_v30  ;;  %v6369_v52 = vld [vmem:[%s11951_s5 + $0x2e8] sm:$0xf]  ;;  %v8127_v63 = vld [vmem:[%s11951_s5 + $0x2ec] sm:$0xf0]  ;;  %v2450_v5 = vunpack.c.h.b16 %v6421_v50  ;;  %v6311_v43 = vor.u32 %v8114_v6, %v6308_v38 }
 0x4b3   :  { %v6390_v19 = vor.u32 %v8130_v49, %v6387_v62  ;;  %v6484_v60 = vld [vmem:[%s11951_s5 + $0x408] sm:$0x33]  ;;  %v5073_v9 = vrot.slane %v9782_v59, 5  ;;  %v6298_v8 = vld [vmem:[%s11951_s5 + $0x270] sm:$0xf]  ;;  %v6370_v22 = vor.u32 %v8127_v63, %v6369_v52 }
 0x4b4   :  { %2244 = vmatpush.bf16.msra.mxu3 %v2238_v57  ;;  %2257 = vmatpush.bf16.msra.mxu2 %v2241_v47  ;;  %v8119_v57 = vld [vmem:[%s11951_s5 + $0x2a4] sm:$0xf0]  ;;  %v6324_v47 = vld [vmem:[%s11951_s5 + $0x2a8] sm:$0xf0]  ;;  %v2464_v10 = vpack.c.b16 %v2450_v5, %v2450_v5  ;;  %v6361_v49 = vld [vmem:[%s11951_s5 + $0x2d8] sm:$0xf] }
 0x4b5   :  { %v6323_v13 = vor.u32 %v8119_v57, %v6322_v37  ;;  %v6327_v21 = vor.u32 %v8118_v11, %v6324_v47  ;;  %v8126_v28 = vld [vmem:[%s11951_s5 + $0x2ec] sm:$0xf]  ;;  %v6307_v57 = vor.u32 %v8115_v46, %v6306_v4  ;;  %v2570_v11 = vunpack.c.l.b16 %v6484_v60  ;;  %v6363_v30 = vld [vmem:[%s11951_s5 + $0x2e0] sm:$0xf0]  ;;  %v8159_v46 = vld [vmem:[%s11951_s5 + $0x3fc] sm:$0xf0] }
 0x4b6   :  { %2366 = vmatpush.bf16.msra.mxu0 %v2360_v42  ;;  %2379 = vmatpush.bf16.msrb.mxu1 %v2363_v44  ;;  %v6377_v42 = vld [vmem:[%s11951_s5 + $0x2f8] sm:$0xf]  ;;  %v8129_v44 = vld [vmem:[%s11951_s5 + $0x2fc] sm:$0xf0]  ;;  %v2571_v47 = vunpack.c.h.b16 %v6484_v60  ;;  %v2154_v4 = vpack.c.bf16 %v9505_v36, %v9505_v36  ;;  %v8158_v6 = vld [vmem:[%s11951_s5 + $0x3fc] sm:$0xf] }
 0x4b7   :  { %6218 = vmatmul.msk.bf16.vlgmr.msrb.gmra.mxu3 %vm1525_vm4, %v1910_v31  ;;  %6219 = vmatmul.msk.bf16.vlgmr.msrb.gmra.mxu2 %vm1525_vm4, %v1910_v31  ;;  %v8113_v31 = vld [vmem:[%s11951_s5 + $0x274] sm:$0xf0]  ;;  %v2584_v26 = vpack.c.b16 %v2570_v11, %v2570_v11  ;;  %v6529_v38 = vld [vmem:[%s11951_s5 + $0x400] sm:$0xf0]  ;;  %v6456_v36 = vld [vmem:[%s11951_s5 + $0x380] sm:$0xf] }
 0x4b8   :  { %2245 = vmatpush.bf16.msra.mxu3 %v6339_v58  ;;  %2258 = vmatpush.bf16.msra.mxu2 %v6343_v7  ;;  %v8128_v58 = vld [vmem:[%s11951_s5 + $0x2fc] sm:$0xf]  ;;  %v6379_v7 = vld [vmem:[%s11951_s5 + $0x300] sm:$0xf0]  ;;  %v6299_v62 = vor.u32 %v8113_v31, %v6298_v8  ;;  %v2585_v48 = vpack.c.b16 %v2571_v47, %v2571_v47  ;;  %v6458_v52 = vld [vmem:[%s11951_s5 + $0x388] sm:$0xf0] }
 0x4b9   :  { %6281 = vmatmul.msk.bf16.vlgmr.msrb.gmra.mxu0 %vm1525_vm4, %v2032_v14  ;;  %6282 = vmatmul.msk.bf16.vlgmr.msra.gmra.mxu1 %vm1525_vm4, %v2032_v14  ;;  %v6382_v17 = vor.u32 %v8128_v58, %v6379_v7  ;;  %v2463_v14 = vpack.c.b16 %v2449_v29, %v2449_v29  ;;  %v8146_v58 = vld [vmem:[%s11951_s5 + $0x394] sm:$0xf]  ;;  %v6466_v7 = vld [vmem:[%s11951_s5 + $0x398] sm:$0xf0]  ;;  %v2602_v50 = vsel %vm81_vm0, %v2584_v26, 0  ;;  %v6532_v29 = vor.u32 %v8158_v6, %v6529_v38 }
 0x4ba   :  { %2367 = vmatpush.bf16.msra.mxu0 %v6402_v53  ;;  %2380 = vmatpush.bf16.msrb.mxu1 %v6406_v12  ;;  %v5195_v53 = vrot.slane %v9782_v59, 6  ;;  %v6378_v12 = vor.u32 %v8129_v44, %v6377_v42  ;;  %v8157_v5 = vld [vmem:[%s11951_s5 + $0x3ec] sm:$0xf0]  ;;  %v8143_v31 = vld [vmem:[%s11951_s5 + $0x374] sm:$0xf0] }
 0x4bb   :  { %v6448_v8 = vld [vmem:[%s11951_s5 + $0x370] sm:$0xf]  ;;  %v8142_v11 = vld [vmem:[%s11951_s5 + $0x374] sm:$0xf]  ;;  %v6450_v47 = vld [vmem:[%s11951_s5 + $0x378] sm:$0xf0] }
 0x4bc   :  { %2246 = vmatpush.bf16.msra.mxu3 %v6331_v18  ;;  %2259 = vmatpush.bf16.msra.mxu2 %v6335_v39  ;;  %v6371_v18 = vld [vmem:[%s11951_s5 + $0x2f0] sm:$0xf0]  ;;  %v9839_v39 = vsel %vm1425_vm3, %v5071_v1, %v5073_v9  ;;  %v9842_v37 = vsel %vm1425_vm3, %v5193_v25, %v5195_v53  ;;  %v6464_v1 = vld [vmem:[%s11951_s5 + $0x390] sm:$0xf]  ;;  %v8147_v25 = vld [vmem:[%s11951_s5 + $0x394] sm:$0xf0]  ;;  %v6469_v9 = vor.u32 %v8146_v58, %v6466_v7 }
 0x4bd   :  { %v6374_v56 = vor.u32 %v8126_v28, %v6371_v18  ;;  %v6465_v60 = vor.u32 %v8147_v25, %v6464_v1  ;;  %v2276_v53 = vpack.c.bf16 %v9525_v0, %v9525_v0  ;;  %v6519_v0 = vld [vmem:[%s11951_s5 + $0x3e8] sm:$0xf]  ;;  %v8156_v28 = vld [vmem:[%s11951_s5 + $0x3ec] sm:$0xf]  ;;  %v6521_v18 = vld [vmem:[%s11951_s5 + $0x3f0] sm:$0xf0] }
 0x4be   :  { %2368 = vmatpush.bf16.msra.mxu0 %v6394_v24  ;;  %2381 = vmatpush.bf16.msrb.mxu1 %v6398_v34  ;;  %v8112_v24 = vld [vmem:[%s11951_s5 + $0x274] sm:$0xf]  ;;  %v6300_v34 = vld [vmem:[%s11951_s5 + $0x278] sm:$0xf0]  ;;  %v6432_v7 = vld [vmem:[%s11951_s5 + $0x350] sm:$0xf] }
 0x4bf   :  { %v6303_v45 = vor.u32 %v8112_v24, %v6300_v34  ;;  %v6524_v24 = vor.u32 %v8156_v28, %v6521_v18  ;;  %v6511_v34 = vld [vmem:[%s11951_s5 + $0x3d8] sm:$0xf]  ;;  %v6547_v1 = vld [vmem:[%s11951_s5 + $0x470] sm:$0x33]  ;;  %v8151_v38 = vld [vmem:[%s11951_s5 + $0x3bc] sm:$0xf0] }
 0x4c0   :  { %2247 = vmatpush.bf16.msra.mxu3 %v6323_v13  ;;  %2260 = vmatpush.bf16.msra.mxu2 %v6327_v21  ;;  %v8125_v13 = vld [vmem:[%s11951_s5 + $0x2dc] sm:$0xf0]  ;;  %v8124_v21 = vld [vmem:[%s11951_s5 + $0x2dc] sm:$0xf]  ;;  %v6495_v6 = vld [vmem:[%s11951_s5 + $0x3b8] sm:$0xf] }
 0x4c1   :  { %v6362_v42 = vor.u32 %v8125_v13, %v6361_v49  ;;  %v6366_v44 = vor.u32 %v8124_v21, %v6363_v30  ;;  %v6449_v49 = vor.u32 %v8143_v31, %v6448_v8  ;;  %v6440_v13 = vld [vmem:[%s11951_s5 + $0x360] sm:$0xf]  ;;  %v8141_v21 = vld [vmem:[%s11951_s5 + $0x364] sm:$0xf0]  ;;  %v8140_v30 = vld [vmem:[%s11951_s5 + $0x364] sm:$0xf] }
 0x4c2   :  { %2369 = vmatpush.bf16.msra.mxu0 %v6386_v3  ;;  %2382 = vmatpush.bf16.msrb.mxu1 %v6390_v19  ;;  %v2481_v3 = vsel %vm81_vm0, %v2463_v14, 0  ;;  %v2484_v19 = vsel %vm81_vm0, %v2464_v10, 0  ;;  %v8154_v14 = vld [vmem:[%s11951_s5 + $0x3dc] sm:$0xf]  ;;  %v6513_v10 = vld [vmem:[%s11951_s5 + $0x3e0] sm:$0xf0]  ;;  %v6441_v25 = vor.u32 %v8141_v21, %v6440_v13 }
 0x4c3   :  { %v8136_v28 = vld [vmem:[%s11951_s5 + $0x344] sm:$0xf]  ;;  %v6426_v18 = vld [vmem:[%s11951_s5 + $0x348] sm:$0xf0]  ;;  %v2515_v13 = vrot.slane %v9460_v15, 1 }
 0x4c4   :  { %2248 = vmatpush.bf16.msra.mxu3 %v6315_v61  ;;  %2261 = vmatpush.bf16.msra.mxu2 %v6319_v33  ;;  %v2605_v61 = vsel %vm81_vm0, %v2585_v48, 0  ;;  %v6527_v33 = vld [vmem:[%s11951_s5 + $0x3f8] sm:$0xf]  ;;  %v6516_v48 = vor.u32 %v8154_v14, %v6513_v10  ;;  %v6429_v14 = vor.u32 %v8136_v28, %v6426_v18  ;;  %v6574_v28 = vld [vmem:[%s11951_s5 + $0x440] sm:$0xf] }
 0x4c5   :  { %v6528_v63 = vor.u32 %v8159_v46, %v6527_v33  ;;  %v6434_v33 = vld [vmem:[%s11951_s5 + $0x358] sm:$0xf0]  ;;  %v8167_v18 = vld [vmem:[%s11951_s5 + $0x444] sm:$0xf0] }
 0x4c6   :  { %2370 = vmatpush.bf16.msra.mxu0 %v6378_v12  ;;  %2383 = vmatpush.bf16.msrb.mxu1 %v6382_v17  ;;  %v8145_v12 = vld [vmem:[%s11951_s5 + $0x384] sm:$0xf0]  ;;  %v8144_v17 = vld [vmem:[%s11951_s5 + $0x384] sm:$0xf] }
 0x4c8   :  { %2249 = vmatpush.bf16.msra.mxu3 %v6307_v57  ;;  %2262 = vmatpush.bf16.msra.mxu2 %v6311_v43  ;;  %v6457_v57 = vor.u32 %v8145_v12, %v6456_v36  ;;  %v6461_v43 = vor.u32 %v8144_v17, %v6458_v52  ;;  %v6610_v36 = vld [vmem:[%s11951_s5 + $0x4d8] sm:$0x33]  ;;  %v6497_v12 = vld [vmem:[%s11951_s5 + $0x3c0] sm:$0xf0] }
 0x4ca   :  { %2371 = vmatpush.bf16.msra.mxu0 %v6370_v22  ;;  %2384 = vmatpush.bf16.msrb.mxu1 %v6374_v56  ;;  %v6520_v22 = vor.u32 %v8157_v5, %v6519_v0  ;;  %v8155_v56 = vld [vmem:[%s11951_s5 + $0x3dc] sm:$0xf0]  ;;  %v6496_v0 = vor.u32 %v8151_v38, %v6495_v6  ;;  %v8137_v5 = vld [vmem:[%s11951_s5 + $0x344] sm:$0xf0]  ;;  %v6582_v6 = vld [vmem:[%s11951_s5 + $0x450] sm:$0xf] }
 0x4cb   :  { %v6512_v26 = vor.u32 %v8155_v56, %v6511_v34  ;;  %v6489_v34 = vld [vmem:[%s11951_s5 + $0x3b0] sm:$0xf0] }
 0x4cc   :  { %2250 = vmatpush.bf16.msra.mxu3 %v6299_v62  ;;  %2263 = vmatpush.bf16.msra.mxu2 %v6303_v45  ;;  %v6453_v62 = vor.u32 %v8142_v11, %v6450_v47  ;;  %v6442_v45 = vld [vmem:[%s11951_s5 + $0x368] sm:$0xf0]  ;;  %v6487_v47 = vld [vmem:[%s11951_s5 + $0x3a8] sm:$0xf] }
 0x4cd   :  { %v6445_v58 = vor.u32 %v8140_v30, %v6442_v45 }
 0x4ce   :  { %2372 = vmatpush.bf16.msra.mxu0 %v6362_v42  ;;  %2385 = vmatpush.bf16.msrb.mxu1 %v6366_v44  ;;  %v8152_v42 = vld [vmem:[%s11951_s5 + $0x3cc] sm:$0xf]  ;;  %v6505_v44 = vld [vmem:[%s11951_s5 + $0x3d0] sm:$0xf0] }
 0x4cf   :  { %6344 = vmatmul.msk.bf16.vlgmr.msra.gmra.mxu3 %vm1525_vm4, %v2154_v4  ;;  %6345 = vmatmul.msk.bf16.vlgmr.msra.gmra.mxu2 %vm1525_vm4, %v2154_v4  ;;  %v6508_v46 = vor.u32 %v8152_v42, %v6505_v44  ;;  %v6592_v42 = vld [vmem:[%s11951_s5 + $0x468] sm:$0xf0]  ;;  %v2517_v44 = vsel %vm1425_vm3, %v2515_v13, %v9562_v16 }
 0x4d0   :  { %2487 = vmatpush.bf16.msrb.mxu3 %v2481_v3  ;;  %2500 = vmatpush.bf16.msrb.mxu2 %v2484_v19  ;;  %v6503_v3 = vld [vmem:[%s11951_s5 + $0x3c8] sm:$0xf]  ;;  %v8153_v19 = vld [vmem:[%s11951_s5 + $0x3cc] sm:$0xf0]  ;;  %v2518_v38 = vpack.c.bf16 %v2517_v44, %v2517_v44  ;;  %v6558_v44 = vld [vmem:[%s11951_s5 + $0x420] sm:$0xf] }
 0x4d1   :  { %6407 = vmatmul.msk.bf16.vlgmr.msra.gmra.mxu0 %vm1525_vm4, %v2276_v53  ;;  %6408 = vmatmul.msk.bf16.vlgmr.msrb.gmra.mxu1 %vm1525_vm4, %v2276_v53  ;;  %v6504_v4 = vor.u32 %v8153_v19, %v6503_v3  ;;  %v8150_v53 = vld [vmem:[%s11951_s5 + $0x3bc] sm:$0xf]  ;;  %v8171_v3 = vld [vmem:[%s11951_s5 + $0x464] sm:$0xf0]  ;;  %v8170_v19 = vld [vmem:[%s11951_s5 + $0x464] sm:$0xf] }
 0x4d2   :  { %2608 = vmatpush.bf16.msrb.mxu0 %v2602_v50  ;;  %2621 = vmatpush.bf16.msra.mxu1 %v2605_v61  ;;  %v8139_v50 = vld [vmem:[%s11951_s5 + $0x354] sm:$0xf0]  ;;  %v8138_v61 = vld [vmem:[%s11951_s5 + $0x354] sm:$0xf]  ;;  %v6500_v8 = vor.u32 %v8150_v53, %v6497_v12 }
 0x4d3   :  { %v6433_v17 = vor.u32 %v8139_v50, %v6432_v7  ;;  %v6437_v52 = vor.u32 %v8138_v61, %v6434_v33  ;;  %v8182_v61 = vld [vmem:[%s11951_s5 + $0x4cc] sm:$0xf]  ;;  %v6655_v33 = vld [vmem:[%s11951_s5 + $0x4d0] sm:$0xf0] }
 0x4d4   :  { %2488 = vmatpush.bf16.msrb.mxu3 %v6465_v60  ;;  %2501 = vmatpush.bf16.msrb.mxu2 %v6469_v9  ;;  %v2692_v60 = vunpack.c.l.b16 %v6547_v1  ;;  %v2693_v9 = vunpack.c.h.b16 %v6547_v1  ;;  %v6653_v1 = vld [vmem:[%s11951_s5 + $0x4c8] sm:$0xf]  ;;  %v6658_v12 = vor.u32 %v8182_v61, %v6655_v33 }
 0x4d5   :  { %v6621_v33 = vld [vmem:[%s11951_s5 + $0x488] sm:$0xf] }
 0x4d6   :  { %2609 = vmatpush.bf16.msrb.mxu0 %v6528_v63  ;;  %2622 = vmatpush.bf16.msra.mxu1 %v6532_v29  ;;  %v6424_v63 = vld [vmem:[%s11951_s5 + $0x340] sm:$0xf]  ;;  %v2394_v29 = vrot.slane %v9562_v16, 7  ;;  %v2706_v31 = vpack.c.b16 %v2692_v60, %v2692_v60  ;;  %v2707_v11 = vpack.c.b16 %v2693_v9, %v2693_v9  ;;  %v8169_v60 = vld [vmem:[%s11951_s5 + $0x454] sm:$0xf0] }
 0x4d7   :  { %v6425_v56 = vor.u32 %v8137_v5, %v6424_v63  ;;  %v8168_v9 = vld [vmem:[%s11951_s5 + $0x454] sm:$0xf]  ;;  %v8180_v63 = vld [vmem:[%s11951_s5 + $0x4bc] sm:$0xf] }
 0x4d8   :  { %2489 = vmatpush.bf16.msrb.mxu3 %v6457_v57  ;;  %2502 = vmatpush.bf16.msrb.mxu2 %v6461_v43  ;;  %v2814_v57 = vunpack.c.l.b16 %v6610_v36  ;;  %v2815_v43 = vunpack.c.h.b16 %v6610_v36  ;;  %v2396_v10 = vsel %vm1425_vm3, %v9460_v15, %v2394_v29  ;;  %v2724_v21 = vsel %vm81_vm0, %v2706_v31, 0  ;;  %v6584_v36 = vld [vmem:[%s11951_s5 + $0x458] sm:$0xf0]  ;;  %v6647_v29 = vld [vmem:[%s11951_s5 + $0x4c0] sm:$0xf0] }
 0x4d9   :  { %v2727_v30 = vsel %vm81_vm0, %v2707_v11, 0  ;;  %v6587_v5 = vor.u32 %v8168_v9, %v6584_v36  ;;  %v6650_v31 = vor.u32 %v8180_v63, %v6647_v29  ;;  %v6637_v11 = vld [vmem:[%s11951_s5 + $0x4a8] sm:$0xf]  ;;  %v8160_v29 = vld [vmem:[%s11951_s5 + $0x414] sm:$0xf] }
 0x4da   :  { %2610 = vmatpush.bf16.msrb.mxu0 %v6520_v22  ;;  %2623 = vmatpush.bf16.msra.mxu1 %v6524_v24  ;;  %v8149_v22 = vld [vmem:[%s11951_s5 + $0x3ac] sm:$0xf0]  ;;  %v8148_v24 = vld [vmem:[%s11951_s5 + $0x3ac] sm:$0xf] }
 0x4db   :  { %v6488_v45 = vor.u32 %v8149_v22, %v6487_v47  ;;  %v8179_v47 = vld [vmem:[%s11951_s5 + $0x4ac] sm:$0xf0]  ;;  %v8178_v22 = vld [vmem:[%s11951_s5 + $0x4ac] sm:$0xf] }
 0x4dc   :  { %2490 = vmatpush.bf16.msrb.mxu3 %v6449_v49  ;;  %2503 = vmatpush.bf16.msrb.mxu2 %v6453_v62  ;;  %v2828_v49 = vpack.c.b16 %v2814_v57, %v2814_v57  ;;  %v2829_v62 = vpack.c.b16 %v2815_v43, %v2815_v43  ;;  %v8166_v57 = vld [vmem:[%s11951_s5 + $0x444] sm:$0xf]  ;;  %v6576_v43 = vld [vmem:[%s11951_s5 + $0x448] sm:$0xf0]  ;;  %v6638_v13 = vor.u32 %v8179_v47, %v6637_v11  ;;  %v8173_v11 = vld [vmem:[%s11951_s5 + $0x47c] sm:$0xf0] }
 0x4dd   :  { %v8172_v47 = vld [vmem:[%s11951_s5 + $0x47c] sm:$0xf] }
 0x4de   :  { %2611 = vmatpush.bf16.msrb.mxu0 %v6512_v26  ;;  %2624 = vmatpush.bf16.msra.mxu1 %v6516_v48  ;;  %v6492_v26 = vor.u32 %v8148_v24, %v6489_v34  ;;  %v6590_v48 = vld [vmem:[%s11951_s5 + $0x460] sm:$0xf]  ;;  %v2846_v7 = vsel %vm81_vm0, %v2828_v49, 0  ;;  %v2849_v50 = vsel %vm81_vm0, %v2829_v62, 0  ;;  %v6639_v24 = vld [vmem:[%s11951_s5 + $0x4b0] sm:$0xf0]  ;;  %v6575_v34 = vor.u32 %v8167_v18, %v6574_v28 }
 0x4df   :  { %v8164_v49 = vld [vmem:[%s11951_s5 + $0x434] sm:$0xf]  ;;  %v6568_v62 = vld [vmem:[%s11951_s5 + $0x438] sm:$0xf0] }
 0x4e0   :  { %2491 = vmatpush.bf16.msrb.mxu3 %v6441_v25  ;;  %2504 = vmatpush.bf16.msrb.mxu2 %v6445_v58  ;;  %v8183_v25 = vld [vmem:[%s11951_s5 + $0x4cc] sm:$0xf0]  ;;  %v2397_v58 = vpack.c.bf16 %v2396_v10, %v2396_v10  ;;  %v8165_v10 = vld [vmem:[%s11951_s5 + $0x434] sm:$0xf0] }
 0x4e1   :  { %v6654_v53 = vor.u32 %v8183_v25, %v6653_v1  ;;  %v8163_v1 = vld [vmem:[%s11951_s5 + $0x424] sm:$0xf0]  ;;  %v8162_v25 = vld [vmem:[%s11951_s5 + $0x424] sm:$0xf] }
 0x4e2   :  { %2612 = vmatpush.bf16.msrb.mxu0 %v6504_v4  ;;  %2625 = vmatpush.bf16.msra.mxu1 %v6508_v46  ;;  %v6591_v4 = vor.u32 %v8171_v3, %v6590_v48  ;;  %v6595_v46 = vor.u32 %v8170_v19, %v6592_v42  ;;  %v6631_v48 = vld [vmem:[%s11951_s5 + $0x4a0] sm:$0xf0]  ;;  %v6571_v42 = vor.u32 %v8164_v49, %v6568_v62  ;;  %v2757_v49 = vrot.slane %v9460_v15, 3 }
 0x4e3   :  { %v6673_v3 = vld [vmem:[%s11951_s5 + $0x540] sm:$0x33]  ;;  %v6559_v9 = vor.u32 %v8163_v1, %v6558_v44  ;;  %v6779_v1 = vld [vmem:[%s11951_s5 + $0x598] sm:$0xf] }
 0x4e4   :  { %2492 = vmatpush.bf16.msrb.mxu3 %v6433_v17  ;;  %2505 = vmatpush.bf16.msrb.mxu2 %v6437_v52  ;;  %v6645_v17 = vld [vmem:[%s11951_s5 + $0x4b8] sm:$0xf]  ;;  %v8181_v52 = vld [vmem:[%s11951_s5 + $0x4bc] sm:$0xf0] }
 0x4e6   :  { %2613 = vmatpush.bf16.msrb.mxu0 %v6496_v0  ;;  %2626 = vmatpush.bf16.msra.mxu1 %v6500_v8  ;;  %v6583_v0 = vor.u32 %v8169_v60, %v6582_v6  ;;  %v6646_v8 = vor.u32 %v8181_v52, %v6645_v17  ;;  %v2937_v6 = vunpack.c.h.b16 %v6673_v3  ;;  %v6623_v60 = vld [vmem:[%s11951_s5 + $0x490] sm:$0xf0] }
 0x4e8   :  { %2493 = vmatpush.bf16.msrb.mxu3 %v6425_v56  ;;  %2506 = vmatpush.bf16.msrb.mxu2 %v6429_v14  ;;  %v6579_v56 = vor.u32 %v8166_v57, %v6576_v43  ;;  %v6566_v14 = vld [vmem:[%s11951_s5 + $0x430] sm:$0xf]  ;;  %v2951_v57 = vpack.c.b16 %v2937_v6, %v2937_v6  ;;  %v6613_v43 = vld [vmem:[%s11951_s5 + $0x478] sm:$0xf]  ;;  %v8193_v6 = vld [vmem:[%s11951_s5 + $0x524] sm:$0xf0] }
 0x4e9   :  { %v6567_v19 = vor.u32 %v8165_v10, %v6566_v14  ;;  %v2759_v14 = vrot.slane %v9562_v16, 2 }
 0x4ea   :  { %2614 = vmatpush.bf16.msrb.mxu0 %v6488_v45  ;;  %2627 = vmatpush.bf16.msra.mxu1 %v6492_v26  ;;  %v8177_v45 = vld [vmem:[%s11951_s5 + $0x49c] sm:$0xf0]  ;;  %v8176_v26 = vld [vmem:[%s11951_s5 + $0x49c] sm:$0xf] }
 0x4eb   :  { %6470 = vmatmul.msk.bf16.vlgmr.msrb.gmra.mxu3 %vm1525_vm4, %v2397_v58  ;;  %6471 = vmatmul.msk.bf16.vlgmr.msrb.gmra.mxu2 %vm1525_vm4, %v2397_v58  ;;  %v6560_v58 = vld [vmem:[%s11951_s5 + $0x428] sm:$0xf0]  ;;  %v6634_v61 = vor.u32 %v8176_v26, %v6631_v48  ;;  %v8195_v26 = vld [vmem:[%s11951_s5 + $0x534] sm:$0xf0]  ;;  %v8194_v48 = vld [vmem:[%s11951_s5 + $0x534] sm:$0xf]  ;;  %v2761_v44 = vsel %vm1425_vm3, %v2757_v49, %v2759_v14 }
 0x4ec   :  { %2730 = vmatpush.bf16.msra.mxu3 %v2724_v21  ;;  %2743 = vmatpush.bf16.msra.mxu2 %v2727_v30  ;;  %v6642_v21 = vor.u32 %v8178_v22, %v6639_v24  ;;  %v6629_v30 = vld [vmem:[%s11951_s5 + $0x498] sm:$0xf]  ;;  %v6563_v36 = vor.u32 %v8162_v25, %v6560_v58  ;;  %v6615_v22 = vld [vmem:[%s11951_s5 + $0x480] sm:$0xf0]  ;;  %v8207_v58 = vld [vmem:[%s11951_s5 + $0x59c] sm:$0xf0] }
 0x4ed   :  { %6533 = vmatmul.msk.bf16.vlgmr.msrb.gmra.mxu0 %vm1525_vm4, %v2518_v38  ;;  %6534 = vmatmul.msk.bf16.vlgmr.msra.gmra.mxu1 %vm1525_vm4, %v2518_v38  ;;  %v8174_v38 = vld [vmem:[%s11951_s5 + $0x48c] sm:$0xf]  ;;  %v8188_v14 = vld [vmem:[%s11951_s5 + $0x504] sm:$0xf] }
 0x4ee   :  { %2852 = vmatpush.bf16.msra.mxu0 %v2846_v7  ;;  %2865 = vmatpush.bf16.msrb.mxu1 %v2849_v50  ;;  %v6736_v7 = vld [vmem:[%s11951_s5 + $0x5a8] sm:$0x33]  ;;  %v6630_v50 = vor.u32 %v8177_v45, %v6629_v30  ;;  %v6626_v28 = vor.u32 %v8174_v38, %v6623_v60  ;;  %v6618_v30 = vor.u32 %v8172_v47, %v6615_v22  ;;  %v6716_v45 = vld [vmem:[%s11951_s5 + $0x530] sm:$0xf]  ;;  %v8192_v38 = vld [vmem:[%s11951_s5 + $0x524] sm:$0xf] }
 0x4ef   :  { %v3058_v17 = vunpack.c.l.b16 %v6736_v7  ;;  %v3059_v52 = vunpack.c.h.b16 %v6736_v7  ;;  %v8206_v7 = vld [vmem:[%s11951_s5 + $0x59c] sm:$0xf]  ;;  %v6710_v60 = vld [vmem:[%s11951_s5 + $0x528] sm:$0xf0]  ;;  %v6765_v47 = vld [vmem:[%s11951_s5 + $0x580] sm:$0xf0] }
 0x4f0   :  { %2731 = vmatpush.bf16.msra.mxu3 %v6591_v4  ;;  %2744 = vmatpush.bf16.msra.mxu2 %v6595_v46  ;;  %v8175_v4 = vld [vmem:[%s11951_s5 + $0x48c] sm:$0xf0]  ;;  %v2936_v46 = vunpack.c.l.b16 %v6673_v3  ;;  %v6718_v3 = vld [vmem:[%s11951_s5 + $0x538] sm:$0xf0] }
 0x4f1   :  { %v6622_v63 = vor.u32 %v8175_v4, %v6621_v33  ;;  %v6721_v33 = vor.u32 %v8194_v48, %v6718_v3  ;;  %v6708_v4 = vld [vmem:[%s11951_s5 + $0x520] sm:$0xf] }
 0x4f2   :  { %2853 = vmatpush.bf16.msra.mxu0 %v6654_v53  ;;  %2866 = vmatpush.bf16.msrb.mxu1 %v6658_v12  ;;  %v6550_v53 = vld [vmem:[%s11951_s5 + $0x410] sm:$0xf]  ;;  %v8161_v12 = vld [vmem:[%s11951_s5 + $0x414] sm:$0xf0]  ;;  %v2950_v18 = vpack.c.b16 %v2936_v46, %v2936_v46  ;;  %v2762_v46 = vpack.c.bf16 %v2761_v44, %v2761_v44  ;;  %v8186_v44 = vld [vmem:[%s11951_s5 + $0x4f4] sm:$0xf] }
 0x4f4   :  { %2732 = vmatpush.bf16.msra.mxu3 %v6583_v0  ;;  %2745 = vmatpush.bf16.msra.mxu2 %v6587_v5  ;;  %v6552_v0 = vld [vmem:[%s11951_s5 + $0x418] sm:$0xf0]  ;;  %v2637_v5 = vrot.slane %v9562_v16, 1  ;;  %v2968_v62 = vsel %vm81_vm0, %v2950_v18, 0 }
 0x4f5   :  { %v6555_v24 = vor.u32 %v8160_v29, %v6552_v0  ;;  %v6713_v29 = vor.u32 %v8192_v38, %v6710_v60  ;;  %v6700_v0 = vld [vmem:[%s11951_s5 + $0x510] sm:$0xf]  ;;  %v6702_v18 = vld [vmem:[%s11951_s5 + $0x518] sm:$0xf0] }
 0x4f6   :  { %2854 = vmatpush.bf16.msra.mxu0 %v6646_v8  ;;  %2867 = vmatpush.bf16.msrb.mxu1 %v6650_v31  ;;  %v2635_v8 = vrot.slane %v9460_v15, 2  ;;  %v6551_v31 = vor.u32 %v8161_v12, %v6550_v53  ;;  %v6771_v53 = vld [vmem:[%s11951_s5 + $0x588] sm:$0xf]  ;;  %v8205_v12 = vld [vmem:[%s11951_s5 + $0x58c] sm:$0xf0] }
 0x4f8   :  { %2733 = vmatpush.bf16.msra.mxu3 %v6575_v34  ;;  %2746 = vmatpush.bf16.msra.mxu2 %v6579_v56  ;;  %v3072_v34 = vpack.c.b16 %v3058_v17, %v3058_v17  ;;  %v3073_v56 = vpack.c.b16 %v3059_v52, %v3059_v52  ;;  %v2639_v10 = vsel %vm1425_vm3, %v2635_v8, %v2637_v5  ;;  %v8204_v17 = vld [vmem:[%s11951_s5 + $0x58c] sm:$0xf]  ;;  %v6773_v52 = vld [vmem:[%s11951_s5 + $0x590] sm:$0xf0]  ;;  %v8191_v5 = vld [vmem:[%s11951_s5 + $0x514] sm:$0xf0] }
 0x4f9   :  { %v2640_v25 = vpack.c.bf16 %v2639_v10, %v2639_v10  ;;  %v6763_v8 = vld [vmem:[%s11951_s5 + $0x578] sm:$0xf]  ;;  %v6701_v22 = vor.u32 %v8191_v5, %v6700_v0  ;;  %v6694_v10 = vld [vmem:[%s11951_s5 + $0x508] sm:$0xf0] }
 0x4fa   :  { %2855 = vmatpush.bf16.msra.mxu0 %v6638_v13  ;;  %2868 = vmatpush.bf16.msrb.mxu1 %v6642_v21  ;;  %v2971_v13 = vsel %vm81_vm0, %v2951_v57, 0  ;;  %v6614_v21 = vor.u32 %v8173_v11, %v6613_v43  ;;  %v6772_v57 = vor.u32 %v8205_v12, %v6771_v53  ;;  %v6776_v43 = vor.u32 %v8204_v17, %v6773_v52  ;;  %v8202_v11 = vld [vmem:[%s11951_s5 + $0x57c] sm:$0xf]  ;;  %v8185_v12 = vld [vmem:[%s11951_s5 + $0x4e4] sm:$0xf0] }
 0x4fb   :  { %v6697_v3 = vor.u32 %v8188_v14, %v6694_v10  ;;  %v8184_v17 = vld [vmem:[%s11951_s5 + $0x4e4] sm:$0xf]  ;;  %v6678_v52 = vld [vmem:[%s11951_s5 + $0x4e8] sm:$0xf0]  ;;  %v3001_v14 = vrot.slane %v9460_v15, 5 }
 0x4fc   :  { %2734 = vmatpush.bf16.msra.mxu3 %v6567_v19  ;;  %2747 = vmatpush.bf16.msra.mxu2 %v6571_v42  ;;  %v3090_v19 = vsel %vm81_vm0, %v3072_v34, 0  ;;  %v3093_v42 = vsel %vm81_vm0, %v3073_v56, 0  ;;  %v6692_v34 = vld [vmem:[%s11951_s5 + $0x500] sm:$0xf]  ;;  %v8189_v56 = vld [vmem:[%s11951_s5 + $0x504] sm:$0xf0] }
 0x4fd   :  { %v6693_v48 = vor.u32 %v8189_v56, %v6692_v34 }
 0x4fe   :  { %2856 = vmatpush.bf16.msra.mxu0 %v6630_v50  ;;  %2869 = vmatpush.bf16.msrb.mxu1 %v6634_v61  ;;  %v6781_v50 = vld [vmem:[%s11951_s5 + $0x5a0] sm:$0xf0]  ;;  %v6717_v61 = vor.u32 %v8195_v26, %v6716_v45  ;;  %v6757_v45 = vld [vmem:[%s11951_s5 + $0x570] sm:$0xf0] }
 0x4ff   :  { %v6799_v26 = vld [vmem:[%s11951_s5 + $0x610] sm:$0x33] }
 0x500   :  { %2735 = vmatpush.bf16.msra.mxu3 %v6559_v9  ;;  %2748 = vmatpush.bf16.msra.mxu2 %v6563_v36  ;;  %v6780_v9 = vor.u32 %v8207_v58, %v6779_v1  ;;  %v6784_v36 = vor.u32 %v8206_v7, %v6781_v50  ;;  %v6686_v1 = vld [vmem:[%s11951_s5 + $0x4f8] sm:$0xf0]  ;;  %v6747_v7 = vld [vmem:[%s11951_s5 + $0x558] sm:$0xf]  ;;  %v8199_v50 = vld [vmem:[%s11951_s5 + $0x55c] sm:$0xf0] }
 0x501   :  { %v6689_v60 = vor.u32 %v8186_v44, %v6686_v1  ;;  %v6748_v53 = vor.u32 %v8199_v50, %v6747_v7 }
 0x502   :  { %2857 = vmatpush.bf16.msra.mxu0 %v6622_v63  ;;  %2870 = vmatpush.bf16.msrb.mxu1 %v6626_v28  ;;  %v6709_v63 = vor.u32 %v8193_v6, %v6708_v4  ;;  %v8190_v28 = vld [vmem:[%s11951_s5 + $0x514] sm:$0xf]  ;;  %v6862_v4 = vld [vmem:[%s11951_s5 + $0x678] sm:$0x33]  ;;  %v6749_v6 = vld [vmem:[%s11951_s5 + $0x560] sm:$0xf0] }
 0x504   :  { %2736 = vmatpush.bf16.msra.mxu3 %v6551_v31  ;;  %2749 = vmatpush.bf16.msra.mxu2 %v6555_v24  ;;  %v8203_v31 = vld [vmem:[%s11951_s5 + $0x57c] sm:$0xf0]  ;;  %v6705_v24 = vor.u32 %v8190_v28, %v6702_v18  ;;  %v6739_v18 = vld [vmem:[%s11951_s5 + $0x548] sm:$0xf] }
 0x505   :  { %v6764_v49 = vor.u32 %v8203_v31, %v6763_v8  ;;  %v8196_v8 = vld [vmem:[%s11951_s5 + $0x54c] sm:$0xf]  ;;  %v6741_v31 = vld [vmem:[%s11951_s5 + $0x550] sm:$0xf0] }
 0x506   :  { %2858 = vmatpush.bf16.msra.mxu0 %v6614_v21  ;;  %2871 = vmatpush.bf16.msrb.mxu1 %v6618_v30  ;;  %v8201_v21 = vld [vmem:[%s11951_s5 + $0x56c] sm:$0xf0]  ;;  %v8200_v30 = vld [vmem:[%s11951_s5 + $0x56c] sm:$0xf] }
 0x507   :  { %6596 = vmatmul.msk.bf16.vlgmr.msra.gmra.mxu3 %vm1525_vm4, %v2640_v25  ;;  %6597 = vmatmul.msk.bf16.vlgmr.msra.gmra.mxu2 %vm1525_vm4, %v2640_v25  ;;  %v6760_v58 = vor.u32 %v8200_v30, %v6757_v45  ;;  %v8219_v45 = vld [vmem:[%s11951_s5 + $0x604] sm:$0xf0] }
 0x508   :  { %2974 = vmatpush.bf16.msrb.mxu3 %v2968_v62  ;;  %2987 = vmatpush.bf16.msrb.mxu2 %v2971_v13  ;;  %v6768_v62 = vor.u32 %v8202_v11, %v6765_v47  ;;  %v6755_v13 = vld [vmem:[%s11951_s5 + $0x568] sm:$0xf]  ;;  %v6681_v47 = vor.u32 %v8184_v17, %v6678_v52  ;;  %v6897_v17 = vld [vmem:[%s11951_s5 + $0x658] sm:$0xf]  ;;  %v8229_v52 = vld [vmem:[%s11951_s5 + $0x65c] sm:$0xf0] }
 0x509   :  { %6659 = vmatmul.msk.bf16.vlgmr.msra.gmra.mxu0 %vm1525_vm4, %v2762_v46  ;;  %6660 = vmatmul.msk.bf16.vlgmr.msrb.gmra.mxu1 %vm1525_vm4, %v2762_v46  ;;  %v6756_v25 = vor.u32 %v8201_v21, %v6755_v13  ;;  %v8198_v46 = vld [vmem:[%s11951_s5 + $0x55c] sm:$0xf]  ;;  %v6744_v13 = vor.u32 %v8196_v8, %v6741_v31  ;;  %v6842_v21 = vld [vmem:[%s11951_s5 + $0x600] sm:$0xf]  ;;  %v8214_v8 = vld [vmem:[%s11951_s5 + $0x5e4] sm:$0xf] }
 0x50a   :  { %3096 = vmatpush.bf16.msrb.mxu0 %v3090_v19  ;;  %3109 = vmatpush.bf16.msra.mxu1 %v3093_v42  ;;  %v6684_v19 = vld [vmem:[%s11951_s5 + $0x4f0] sm:$0xf]  ;;  %v8187_v42 = vld [vmem:[%s11951_s5 + $0x4f4] sm:$0xf0]  ;;  %v6752_v0 = vor.u32 %v8198_v46, %v6749_v6  ;;  %v6843_v7 = vor.u32 %v8219_v45, %v6842_v21  ;;  %v6828_v31 = vld [vmem:[%s11951_s5 + $0x5e8] sm:$0xf0] }
 0x50b   :  { %v6685_v38 = vor.u32 %v8187_v42, %v6684_v19  ;;  %v8231_v19 = vld [vmem:[%s11951_s5 + $0x66c] sm:$0xf0]  ;;  %v8213_v21 = vld [vmem:[%s11951_s5 + $0x5d4] sm:$0xf0] }
 0x50c   :  { %2975 = vmatpush.bf16.msrb.mxu3 %v6717_v61  ;;  %2988 = vmatpush.bf16.msrb.mxu2 %v6721_v33  ;;  %v3180_v61 = vunpack.c.l.b16 %v6799_v26  ;;  %v3181_v33 = vunpack.c.h.b16 %v6799_v26  ;;  %v6844_v26 = vld [vmem:[%s11951_s5 + $0x608] sm:$0xf0] }
 0x50e   :  { %3097 = vmatpush.bf16.msrb.mxu0 %v6780_v9  ;;  %3110 = vmatpush.bf16.msra.mxu1 %v6784_v36  ;;  %v6676_v9 = vld [vmem:[%s11951_s5 + $0x4e0] sm:$0xf]  ;;  %v2881_v36 = vrot.slane %v9562_v16, 3  ;;  %v3194_v5 = vpack.c.b16 %v3180_v61, %v3180_v61  ;;  %v3195_v28 = vpack.c.b16 %v3181_v33, %v3181_v33  ;;  %v6834_v61 = vld [vmem:[%s11951_s5 + $0x5f0] sm:$0xf] }
 0x50f   :  { %v6677_v11 = vor.u32 %v8185_v12, %v6676_v9  ;;  %v6836_v9 = vld [vmem:[%s11951_s5 + $0x5f8] sm:$0xf0] }
 0x510   :  { %2976 = vmatpush.bf16.msrb.mxu3 %v6709_v63  ;;  %2989 = vmatpush.bf16.msrb.mxu2 %v6713_v29  ;;  %v3302_v63 = vunpack.c.l.b16 %v6862_v4  ;;  %v3303_v29 = vunpack.c.h.b16 %v6862_v4  ;;  %v3212_v10 = vsel %vm81_vm0, %v3194_v5, 0 }
 0x512   :  { %3098 = vmatpush.bf16.msrb.mxu0 %v6772_v57  ;;  %3111 = vmatpush.bf16.msra.mxu1 %v6776_v43  ;;  %v2879_v57 = vrot.slane %v9460_v15, 4  ;;  %v8197_v43 = vld [vmem:[%s11951_s5 + $0x54c] sm:$0xf0]  ;;  %v3316_v34 = vpack.c.b16 %v3302_v63, %v3302_v63  ;;  %v3317_v56 = vpack.c.b16 %v3303_v29, %v3303_v29  ;;  %v8218_v15 = vld [vmem:[%s11951_s5 + $0x604] sm:$0xf] }
 0x513   :  { %v6847_v50 = vor.u32 %v8218_v15, %v6844_v26  ;;  %v8228_v63 = vld [vmem:[%s11951_s5 + $0x65c] sm:$0xf]  ;;  %v6899_v29 = vld [vmem:[%s11951_s5 + $0x660] sm:$0xf0]  ;;  %v6881_v26 = vld [vmem:[%s11951_s5 + $0x638] sm:$0xf] }
 0x514   :  { %2977 = vmatpush.bf16.msrb.mxu3 %v6701_v22  ;;  %2990 = vmatpush.bf16.msrb.mxu2 %v6705_v24  ;;  %v3003_v22 = vrot.slane %v9562_v16, 4  ;;  %v2883_v24 = vsel %vm1425_vm3, %v2879_v57, %v2881_v36  ;;  %v3334_v44 = vsel %vm81_vm0, %v3316_v34, 0  ;;  %v3337_v1 = vsel %vm81_vm0, %v3317_v56, 0  ;;  %v8226_v34 = vld [vmem:[%s11951_s5 + $0x64c] sm:$0xf] }
 0x515   :  { %v2884_v42 = vpack.c.bf16 %v2883_v24, %v2883_v24  ;;  %v8227_v24 = vld [vmem:[%s11951_s5 + $0x64c] sm:$0xf0]  ;;  %v6891_v56 = vld [vmem:[%s11951_s5 + $0x650] sm:$0xf0] }
 0x516   :  { %3099 = vmatpush.bf16.msrb.mxu0 %v6764_v49  ;;  %3112 = vmatpush.bf16.msra.mxu1 %v6768_v62  ;;  %v3215_v49 = vsel %vm81_vm0, %v3195_v28, 0  ;;  %v6740_v62 = vor.u32 %v8197_v43, %v6739_v18  ;;  %v1644_v30 = vpop.f32.mrf.mxu0  ;;  %v1657_v16 = vpop.f32.mrf.mxu1  ;;  %v6826_v28 = vld [vmem:[%s11951_s5 + $0x5e0] sm:$0xf]  ;;  %v8215_v43 = vld [vmem:[%s11951_s5 + $0x5e4] sm:$0xf0]  ;;  %v6894_v15 = vor.u32 %v8226_v34, %v6891_v56 }
 0x518   :  { %2978 = vmatpush.bf16.msrb.mxu3 %v6693_v48  ;;  %2991 = vmatpush.bf16.msrb.mxu2 %v6697_v3  ;;  %v3005_v48 = vsel %vm1425_vm3, %v3001_v14, %v3003_v22  ;;  %v6905_v3 = vld [vmem:[%s11951_s5 + $0x668] sm:$0xf]  ;;  %v6827_v14 = vor.u32 %v8215_v43, %v6826_v28  ;;  %v8209_v28 = vld [vmem:[%s11951_s5 + $0x5b4] sm:$0xf0] }
 0x519   :  { %v3006_v33 = vpack.c.bf16 %v3005_v48, %v3005_v48  ;;  %v6906_v6 = vor.u32 %v8231_v19, %v6905_v3  ;;  %v6889_v22 = vld [vmem:[%s11951_s5 + $0x648] sm:$0xf]  ;;  %v6925_v48 = vld [vmem:[%s11951_s5 + $0x6e0] sm:$0x33]  ;;  %v8224_v19 = vld [vmem:[%s11951_s5 + $0x63c] sm:$0xf] }
 0x51a   :  { %3100 = vmatpush.bf16.msrb.mxu0 %v6756_v25  ;;  %3113 = vmatpush.bf16.msra.mxu1 %v6760_v58  ;;  %v8230_v25 = vld [vmem:[%s11951_s5 + $0x66c] sm:$0xf]  ;;  %v6907_v58 = vld [vmem:[%s11951_s5 + $0x670] sm:$0xf0]  ;;  %v1544_v4 = vpop.f32.mrf.mxu3  ;;  %v1557_v46 = vpop.f32.mrf.mxu2  ;;  %v6890_v45 = vor.u32 %v8227_v24, %v6889_v22  ;;  %v8225_v3 = vld [vmem:[%s11951_s5 + $0x63c] sm:$0xf0] }
 0x51b   :  { %v10406_v36 = vadd.f32 %v1644_v30, %v1544_v4  ;;  %v6910_v12 = vor.u32 %v8230_v25, %v6907_v58  ;;  %v8212_v30 = vld [vmem:[%s11951_s5 + $0x5d4] sm:$0xf]  ;;  %v6810_v25 = vld [vmem:[%s11951_s5 + $0x5c0] sm:$0xf]  ;;  %v8211_v58 = vld [vmem:[%s11951_s5 + $0x5c4] sm:$0xf0] }
 0x51c   :  { %2979 = vmatpush.bf16.msrb.mxu3 %v6685_v38  ;;  %2992 = vmatpush.bf16.msrb.mxu2 %v6689_v60  ;;  %v8217_v38 = vld [vmem:[%s11951_s5 + $0x5f4] sm:$0xf0]  ;;  %v8216_v60 = vld [vmem:[%s11951_s5 + $0x5f4] sm:$0xf]  ;;  %v6873_v4 = vld [vmem:[%s11951_s5 + $0x628] sm:$0xf] }
 0x51d   :  { %v6839_v5 = vor.u32 %v8216_v60, %v6836_v9  ;;  %v8222_v9 = vld [vmem:[%s11951_s5 + $0x62c] sm:$0xf] }
 0x51e   :  { %3101 = vmatpush.bf16.msrb.mxu0 %v6748_v53  ;;  %3114 = vmatpush.bf16.msra.mxu1 %v6752_v0  ;;  %v10408_v53 = vadd.f32 %v1657_v16, %v1557_v46  ;;  %v6835_v0 = vor.u32 %v8217_v38, %v6834_v61  ;;  %v1646_v18 = vpop.f32.mrf.mxu0  ;;  %v1659_v57 = vpop.f32.mrf.mxu1  ;;  %v6820_v16 = vld [vmem:[%s11951_s5 + $0x5d8] sm:$0xf0]  ;;  %v8223_v46 = vld [vmem:[%s11951_s5 + $0x62c] sm:$0xf0]  ;;  %v6882_v38 = vor.u32 %v8225_v3, %v6881_v26 }
 0x520   :  { %2980 = vmatpush.bf16.msrb.mxu3 %v6677_v11  ;;  %2993 = vmatpush.bf16.msrb.mxu2 %v6681_v47  ;;  %v6898_v11 = vor.u32 %v8229_v52, %v6897_v17  ;;  %v6902_v47 = vor.u32 %v8228_v63, %v6899_v29  ;;  %v3424_v17 = vunpack.c.h.b16 %v6925_v48  ;;  %v6988_v52 = vld [vmem:[%s11951_s5 + $0x748] sm:$0x33]  ;;  %v6811_v63 = vor.u32 %v8211_v58, %v6810_v25  ;;  %v6970_v25 = vld [vmem:[%s11951_s5 + $0x6d8] sm:$0xf0]  ;;  %v7031_v58 = vld [vmem:[%s11951_s5 + $0x738] sm:$0xf] }
 0x521   :  { %v3545_v22 = vunpack.c.h.b16 %v6988_v52 }
 0x522   :  { %3102 = vmatpush.bf16.msrb.mxu0 %v6740_v62  ;;  %3115 = vmatpush.bf16.msra.mxu1 %v6744_v13  ;;  %v1546_v62 = vpop.f32.mrf.mxu3  ;;  %v1559_v13 = vpop.f32.mrf.mxu2  ;;  %v3438_v56 = vpack.c.b16 %v3424_v17, %v3424_v17  ;;  %v8241_v17 = vld [vmem:[%s11951_s5 + $0x6c4] sm:$0xf0] }
 0x523   :  { %6722 = vmatmul.msk.bf16.vlgmr.msrb.gmra.mxu3 %vm1525_vm4, %v2884_v42  ;;  %6723 = vmatmul.msk.bf16.vlgmr.msrb.gmra.mxu2 %vm1525_vm4, %v2884_v42  ;;  %v6883_v42 = vld [vmem:[%s11951_s5 + $0x640] sm:$0xf0]  ;;  %v8220_v62 = vld [vmem:[%s11951_s5 + $0x61c] sm:$0xf] }
 0x524   :  { %3218 = vmatpush.bf16.msra.mxu3 %v3212_v10  ;;  %3231 = vmatpush.bf16.msra.mxu2 %v3215_v49  ;;  %v6831_v10 = vor.u32 %v8214_v8, %v6828_v31  ;;  %v6818_v49 = vld [vmem:[%s11951_s5 + $0x5d0] sm:$0xf]  ;;  %v6886_v60 = vor.u32 %v8224_v19, %v6883_v42  ;;  %v8208_v8 = vld [vmem:[%s11951_s5 + $0x5b4] sm:$0xf]  ;;  %v6804_v31 = vld [vmem:[%s11951_s5 + $0x5b8] sm:$0xf0] }
 0x525   :  { %6785 = vmatmul.msk.bf16.vlgmr.msrb.gmra.mxu0 %vm1525_vm4, %v3006_v33  ;;  %6786 = vmatmul.msk.bf16.vlgmr.msra.gmra.mxu1 %vm1525_vm4, %v3006_v33  ;;  %v6812_v33 = vld [vmem:[%s11951_s5 + $0x5c8] sm:$0xf0]  ;;  %v6968_v42 = vld [vmem:[%s11951_s5 + $0x6d0] sm:$0xf] }
 0x526   :  { %3340 = vmatpush.bf16.msra.mxu0 %v3334_v44  ;;  %3353 = vmatpush.bf16.msrb.mxu1 %v3337_v1  ;;  %v6819_v44 = vor.u32 %v8213_v21, %v6818_v49  ;;  %v6823_v1 = vor.u32 %v8212_v30, %v6820_v16  ;;  %v1899_v61 = vpop.f32.mrf.mxu1  ;;  %v8221_v49 = vld [vmem:[%s11951_s5 + $0x61c] sm:$0xf0] }
 0x528   :  { %3219 = vmatpush.bf16.msra.mxu3 %v6843_v7  ;;  %3232 = vmatpush.bf16.msra.mxu2 %v6847_v50  ;;  %v8210_v7 = vld [vmem:[%s11951_s5 + $0x5c4] sm:$0xf]  ;;  %v1886_v50 = vpop.f32.mrf.mxu0 }
 0x529   :  { %v6815_v29 = vor.u32 %v8210_v7, %v6812_v33  ;;  %v8255_v7 = vld [vmem:[%s11951_s5 + $0x73c] sm:$0xf0] }
 0x52a   :  { %3341 = vmatpush.bf16.msra.mxu0 %v6906_v6  ;;  %3354 = vmatpush.bf16.msrb.mxu1 %v6910_v12  ;;  %v3423_v6 = vunpack.c.l.b16 %v6925_v48  ;;  %v6875_v12 = vld [vmem:[%s11951_s5 + $0x630] sm:$0xf0]  ;;  %v1764_v18 = vpop.f32.mrf.mxu3  ;;  %v1777_v57 = vpop.f32.mrf.mxu2  ;;  %v3458_v48 = vsel %vm81_vm0, %v3438_v56, 0 }
 0x52b   :  { %v6878_v43 = vor.u32 %v8222_v9, %v6875_v12  ;;  %v1781_v24 = vadd.f32 %v1764_v18, %v10406_v36  ;;  %v1782_v34 = vadd.f32 %v1777_v57, %v10408_v53  ;;  %v6867_v36 = vld [vmem:[%s11951_s5 + $0x620] sm:$0xf0]  ;;  %v6807_v53 = vor.u32 %v8208_v8, %v6804_v31  ;;  %v7025_v18 = vld [vmem:[%s11951_s5 + $0x730] sm:$0xf0] }
 0x52c   :  { %3220 = vmatpush.bf16.msra.mxu3 %v6835_v0  ;;  %3233 = vmatpush.bf16.msra.mxu2 %v6839_v5  ;;  %v6874_v0 = vor.u32 %v8223_v46, %v6873_v4  ;;  %v6802_v5 = vld [vmem:[%s11951_s5 + $0x5b0] sm:$0xf]  ;;  %v6870_v19 = vor.u32 %v8220_v62, %v6867_v36  ;;  %v3250_v12 = vpack.c.bf16 %v9647_v55, %v9647_v55  ;;  %v7023_v55 = vld [vmem:[%s11951_s5 + $0x728] sm:$0xf]  ;;  %v7017_v62 = vld [vmem:[%s11951_s5 + $0x720] sm:$0xf0] }
 0x52d   :  { %v10528_v13 = vadd.f32 %v1886_v50, %v1781_v24  ;;  %v10530_v21 = vadd.f32 %v1899_v61, %v1782_v34  ;;  %v3128_v50 = vpack.c.bf16 %v9638_v41, %v9638_v41  ;;  %v6960_v41 = vld [vmem:[%s11951_s5 + $0x6c0] sm:$0xf]  ;;  %v6954_v24 = vld [vmem:[%s11951_s5 + $0x6b8] sm:$0xf0] }
 0x52e   :  { %3342 = vmatpush.bf16.msra.mxu0 %v6898_v11  ;;  %3355 = vmatpush.bf16.msrb.mxu1 %v6902_v47  ;;  %v3437_v11 = vpack.c.b16 %v3423_v6, %v3423_v6  ;;  %v3544_v47 = vunpack.c.l.b16 %v6988_v52  ;;  %v1901_v16 = vpop.f32.mrf.mxu1  ;;  %v8254_v6 = vld [vmem:[%s11951_s5 + $0x73c] sm:$0xf]  ;;  %v8240_v52 = vld [vmem:[%s11951_s5 + $0x6c4] sm:$0xf]  ;;  %v6961_v57 = vor.u32 %v8241_v17, %v6960_v41  ;;  %v6999_v17 = vld [vmem:[%s11951_s5 + $0x6f8] sm:$0xf] }
 0x530   :  { %3221 = vmatpush.bf16.msra.mxu3 %v6827_v14  ;;  %3234 = vmatpush.bf16.msra.mxu2 %v6831_v10  ;;  %v6865_v14 = vld [vmem:[%s11951_s5 + $0x618] sm:$0xf]  ;;  %v6803_v10 = vor.u32 %v8209_v28, %v6802_v5  ;;  %v1888_v30 = vpop.f32.mrf.mxu0  ;;  %v3455_v26 = vsel %vm81_vm0, %v3437_v11, 0  ;;  %v8253_v5 = vld [vmem:[%s11951_s5 + $0x72c] sm:$0xf0] }
 0x531   :  { %v6866_v3 = vor.u32 %v8221_v49, %v6865_v14  ;;  %v8252_v28 = vld [vmem:[%s11951_s5 + $0x72c] sm:$0xf]  ;;  %v6952_v11 = vld [vmem:[%s11951_s5 + $0x6b0] sm:$0xf]  ;;  %v7024_v34 = vor.u32 %v8253_v5, %v7023_v55  ;;  %v7015_v14 = vld [vmem:[%s11951_s5 + $0x718] sm:$0xf] }
 0x532   :  { %3343 = vmatpush.bf16.msra.mxu0 %v6890_v45  ;;  %3356 = vmatpush.bf16.msrb.mxu1 %v6894_v15  ;;  %v3558_v45 = vpack.c.b16 %v3544_v47, %v3544_v47  ;;  %v3559_v15 = vpack.c.b16 %v3545_v22, %v3545_v22  ;;  %v1766_v4 = vpop.f32.mrf.mxu3  ;;  %v1779_v46 = vpop.f32.mrf.mxu2  ;;  %v8239_v47 = vld [vmem:[%s11951_s5 + $0x6b4] sm:$0xf0]  ;;  %v8238_v22 = vld [vmem:[%s11951_s5 + $0x6b4] sm:$0xf]  ;;  %v7028_v56 = vor.u32 %v8252_v28, %v7025_v18  ;;  %v8250_v49 = vld [vmem:[%s11951_s5 + $0x71c] sm:$0xf] }
 0x533   :  { %v6953_v36 = vor.u32 %v8239_v47, %v6952_v11  ;;  %v8246_v55 = vld [vmem:[%s11951_s5 + $0x6fc] sm:$0xf]  ;;  %v7001_v5 = vld [vmem:[%s11951_s5 + $0x700] sm:$0xf0]  ;;  %v8233_v11 = vld [vmem:[%s11951_s5 + $0x684] sm:$0xf0] }
 0x534   :  { %3222 = vmatpush.bf16.msra.mxu3 %v6819_v44  ;;  %3235 = vmatpush.bf16.msra.mxu2 %v6823_v1  ;;  %v8243_v44 = vld [vmem:[%s11951_s5 + $0x6d4] sm:$0xf0]  ;;  %v8242_v1 = vld [vmem:[%s11951_s5 + $0x6d4] sm:$0xf]  ;;  %v3576_v61 = vsel %vm81_vm0, %v3558_v45, 0  ;;  %v3579_v33 = vsel %vm81_vm0, %v3559_v15, 0 }
 0x535   :  { %v6973_v9 = vor.u32 %v8242_v1, %v6970_v25  ;;  %v6944_v45 = vld [vmem:[%s11951_s5 + $0x6a0] sm:$0xf]  ;;  %v8248_v1 = vld [vmem:[%s11951_s5 + $0x70c] sm:$0xf]  ;;  %v7009_v25 = vld [vmem:[%s11951_s5 + $0x710] sm:$0xf0] }
 0x536   :  { %3344 = vmatpush.bf16.msra.mxu0 %v6882_v38  ;;  %3357 = vmatpush.bf16.msrb.mxu1 %v6886_v60  ;;  %v7033_v38 = vld [vmem:[%s11951_s5 + $0x740] sm:$0xf0]  ;;  %v6969_v60 = vor.u32 %v8243_v44, %v6968_v42  ;;  %v2143_v31 = vpop.f32.mrf.mxu1  ;;  %v7020_v44 = vor.u32 %v8250_v49, %v7017_v62  ;;  %v6991_v49 = vld [vmem:[%s11951_s5 + $0x6e8] sm:$0xf]  ;;  %v8245_v62 = vld [vmem:[%s11951_s5 + $0x6ec] sm:$0xf0] }
 0x537   :  { %v8232_v47 = vld [vmem:[%s11951_s5 + $0x684] sm:$0xf] }
 0x538   :  { %3223 = vmatpush.bf16.msra.mxu3 %v6811_v63  ;;  %3236 = vmatpush.bf16.msra.mxu2 %v6815_v29  ;;  %v6962_v63 = vld [vmem:[%s11951_s5 + $0x6c8] sm:$0xf0]  ;;  %v7032_v29 = vor.u32 %v8255_v7, %v7031_v58  ;;  %v2130_v8 = vpop.f32.mrf.mxu0  ;;  %v7051_v58 = vld [vmem:[%s11951_s5 + $0x7b0] sm:$0x33] }
 0x53a   :  { %3345 = vmatpush.bf16.msra.mxu0 %v6874_v0  ;;  %3358 = vmatpush.bf16.msrb.mxu1 %v6878_v43  ;;  %v7036_v0 = vor.u32 %v8254_v6, %v7033_v38  ;;  %v6965_v43 = vor.u32 %v8240_v52, %v6962_v63  ;;  %v2008_v30 = vpop.f32.mrf.mxu3  ;;  %v2021_v16 = vpop.f32.mrf.mxu2  ;;  %v6936_v6 = vld [vmem:[%s11951_s5 + $0x690] sm:$0xf]  ;;  %v8235_v38 = vld [vmem:[%s11951_s5 + $0x694] sm:$0xf0]  ;;  %v8247_v52 = vld [vmem:[%s11951_s5 + $0x6fc] sm:$0xf0]  ;;  %v3666_v63 = vunpack.c.l.b16 %v7051_v58 }
 0x53b   :  { %v2025_v15 = vadd.f32 %v2008_v30, %v10528_v13  ;;  %v7007_v13 = vld [vmem:[%s11951_s5 + $0x708] sm:$0xf]  ;;  %v6937_v28 = vor.u32 %v8235_v38, %v6936_v6  ;;  %v8278_v6 = vld [vmem:[%s11951_s5 + $0x80c] sm:$0xf]  ;;  %v7159_v38 = vld [vmem:[%s11951_s5 + $0x810] sm:$0xf0] }
 0x53c   :  { %3224 = vmatpush.bf16.msra.mxu3 %v6803_v10  ;;  %3237 = vmatpush.bf16.msra.mxu2 %v6807_v53  ;;  %v8251_v10 = vld [vmem:[%s11951_s5 + $0x71c] sm:$0xf0]  ;;  %v6957_v53 = vor.u32 %v8238_v22, %v6954_v24  ;;  %v6930_v22 = vld [vmem:[%s11951_s5 + $0x688] sm:$0xf0] }
 0x53d   :  { %v7016_v42 = vor.u32 %v8251_v10, %v7015_v14  ;;  %v10645_v7 = vadd.f32 %v2130_v8, %v2025_v15  ;;  %v6928_v8 = vld [vmem:[%s11951_s5 + $0x680] sm:$0xf]  ;;  %v3680_v14 = vpack.c.b16 %v3666_v63, %v3666_v63 }
 0x53e   :  { %3346 = vmatpush.bf16.msra.mxu0 %v6866_v3  ;;  %3359 = vmatpush.bf16.msrb.mxu1 %v6870_v19  ;;  %v8236_v3 = vld [vmem:[%s11951_s5 + $0x6a4] sm:$0xf]  ;;  %v6946_v19 = vld [vmem:[%s11951_s5 + $0x6a8] sm:$0xf0]  ;;  %v2145_v46 = vpop.f32.mrf.mxu1  ;;  %v6929_v30 = vor.u32 %v8233_v11, %v6928_v8 }
 0x53f   :  { %6848 = vmatmul.msk.bf16.vlgmr.msra.gmra.mxu3 %vm1525_vm4, %v3128_v50  ;;  %6849 = vmatmul.msk.bf16.vlgmr.msra.gmra.mxu2 %vm1525_vm4, %v3128_v50  ;;  %v8262_v11 = vld [vmem:[%s11951_s5 + $0x784] sm:$0xf] }
 0x540   :  { %3461 = vmatpush.bf16.msrb.mxu3 %v3455_v26  ;;  %3474 = vmatpush.bf16.msrb.mxu2 %v3458_v48  ;;  %v2026_v26 = vadd.f32 %v2021_v16, %v10530_v21  ;;  %v8237_v48 = vld [vmem:[%s11951_s5 + $0x6a4] sm:$0xf0]  ;;  %v8249_v21 = vld [vmem:[%s11951_s5 + $0x70c] sm:$0xf0]  ;;  %v2132_v4 = vpop.f32.mrf.mxu0  ;;  %v6933_v16 = vor.u32 %v8232_v47, %v6930_v22  ;;  %v7080_v47 = vld [vmem:[%s11951_s5 + $0x788] sm:$0xf0] }
 0x541   :  { %6911 = vmatmul.msk.bf16.vlgmr.msra.gmra.mxu0 %vm1525_vm4, %v3250_v12  ;;  %6912 = vmatmul.msk.bf16.vlgmr.msrb.gmra.mxu1 %vm1525_vm4, %v3250_v12  ;;  %v7008_v41 = vor.u32 %v8249_v21, %v7007_v13  ;;  %v7012_v12 = vor.u32 %v8248_v1, %v7009_v25  ;;  %v8266_v13 = vld [vmem:[%s11951_s5 + $0x7a4] sm:$0xf]  ;;  %v7096_v21 = vld [vmem:[%s11951_s5 + $0x7a8] sm:$0xf0] }
 0x542   :  { %3582 = vmatpush.bf16.msrb.mxu0 %v3576_v61  ;;  %3595 = vmatpush.bf16.msra.mxu1 %v3579_v33  ;;  %v10647_v50 = vadd.f32 %v2143_v31, %v2026_v26  ;;  %v6945_v61 = vor.u32 %v8237_v48, %v6944_v45  ;;  %v6949_v33 = vor.u32 %v8236_v3, %v6946_v19  ;;  %v3698_v26 = vsel %vm81_vm0, %v3680_v14, 0 }
 0x543   :  { %v7000_v31 = vor.u32 %v8247_v52, %v6999_v17  ;;  %v6992_v3 = vor.u32 %v8245_v62, %v6991_v49  ;;  %v8264_v17 = vld [vmem:[%s11951_s5 + $0x794] sm:$0xf]  ;;  %v7088_v52 = vld [vmem:[%s11951_s5 + $0x798] sm:$0xf0]  ;;  %v7141_v49 = vld [vmem:[%s11951_s5 + $0x7e8] sm:$0xf] }
 0x544   :  { %3462 = vmatpush.bf16.msrb.mxu3 %v6969_v60  ;;  %3475 = vmatpush.bf16.msrb.mxu2 %v6973_v9  ;;  %v8234_v60 = vld [vmem:[%s11951_s5 + $0x694] sm:$0xf]  ;;  %v6938_v9 = vld [vmem:[%s11951_s5 + $0x698] sm:$0xf0]  ;;  %v8275_v62 = vld [vmem:[%s11951_s5 + $0x7ec] sm:$0xf0] }
 0x545   :  { %v6941_v18 = vor.u32 %v8234_v60, %v6938_v9  ;;  %v7099_v9 = vor.u32 %v8266_v13, %v7096_v21  ;;  %v7133_v13 = vld [vmem:[%s11951_s5 + $0x7d8] sm:$0xf]  ;;  %v8273_v21 = vld [vmem:[%s11951_s5 + $0x7dc] sm:$0xf0] }
 0x546   :  { %3583 = vmatpush.bf16.msrb.mxu0 %v7032_v29  ;;  %3596 = vmatpush.bf16.msra.mxu1 %v7036_v0  ;;  %v3667_v29 = vunpack.c.h.b16 %v7051_v58  ;;  %v7114_v0 = vld [vmem:[%s11951_s5 + $0x818] sm:$0x33]  ;;  %v7157_v58 = vld [vmem:[%s11951_s5 + $0x808] sm:$0xf] }
 0x547   :  { %v3788_v24 = vunpack.c.l.b16 %v7114_v0 }
 0x548   :  { %3463 = vmatpush.bf16.msrb.mxu3 %v6961_v57  ;;  %3476 = vmatpush.bf16.msrb.mxu2 %v6965_v43  ;;  %v2010_v57 = vpop.f32.mrf.mxu3  ;;  %v2023_v43 = vpop.f32.mrf.mxu2  ;;  %v3681_v10 = vpack.c.b16 %v3667_v29, %v3667_v29  ;;  %v7162_v29 = vor.u32 %v8278_v6, %v7159_v38  ;;  %v8258_v6 = vld [vmem:[%s11951_s5 + $0x764] sm:$0xf]  ;;  %v7064_v38 = vld [vmem:[%s11951_s5 + $0x768] sm:$0xf0] }
 0x549   :  { %v3802_v45 = vpack.c.b16 %v3788_v24, %v3788_v24  ;;  %v8276_v57 = vld [vmem:[%s11951_s5 + $0x7fc] sm:$0xf]  ;;  %v7151_v43 = vld [vmem:[%s11951_s5 + $0x800] sm:$0xf0] }
 0x54a   :  { %3584 = vmatpush.bf16.msrb.mxu0 %v7024_v34  ;;  %3597 = vmatpush.bf16.msra.mxu1 %v7028_v56  ;;  %v3789_v34 = vunpack.c.h.b16 %v7114_v0  ;;  %v7004_v56 = vor.u32 %v8246_v55, %v7001_v5  ;;  %v3701_v48 = vsel %vm81_vm0, %v3681_v10, 0 }
 0x54b   :  { %v3820_v4 = vsel %vm81_vm0, %v3802_v45, 0  ;;  %v7070_v45 = vld [vmem:[%s11951_s5 + $0x770] sm:$0xf] }
 0x54c   :  { %3464 = vmatpush.bf16.msrb.mxu3 %v6953_v36  ;;  %3477 = vmatpush.bf16.msrb.mxu2 %v6957_v53  ;;  %v8244_v36 = vld [vmem:[%s11951_s5 + $0x6ec] sm:$0xf]  ;;  %v6993_v53 = vld [vmem:[%s11951_s5 + $0x6f0] sm:$0xf0]  ;;  %v3803_v15 = vpack.c.b16 %v3789_v34, %v3789_v34 }
 0x54d   :  { %v6996_v19 = vor.u32 %v8244_v36, %v6993_v53  ;;  %v8274_v36 = vld [vmem:[%s11951_s5 + $0x7ec] sm:$0xf]  ;;  %v7143_v53 = vld [vmem:[%s11951_s5 + $0x7f0] sm:$0xf0] }
 0x54e   :  { %3585 = vmatpush.bf16.msrb.mxu0 %v7016_v42  ;;  %3598 = vmatpush.bf16.msra.mxu1 %v7020_v44  ;;  %v7094_v42 = vld [vmem:[%s11951_s5 + $0x7a0] sm:$0xf]  ;;  %v8267_v44 = vld [vmem:[%s11951_s5 + $0x7a4] sm:$0xf0]  ;;  %v2374_v1 = vpop.f32.mrf.mxu0  ;;  %v2387_v25 = vpop.f32.mrf.mxu1  ;;  %v3823_v46 = vsel %vm81_vm0, %v3803_v15, 0 }
 0x54f   :  { %v7095_v60 = vor.u32 %v8267_v44, %v7094_v42  ;;  %v8261_v15 = vld [vmem:[%s11951_s5 + $0x774] sm:$0xf0] }
 0x550   :  { %3465 = vmatpush.bf16.msrb.mxu3 %v6945_v61  ;;  %3478 = vmatpush.bf16.msrb.mxu2 %v6949_v33  ;;  %v8279_v61 = vld [vmem:[%s11951_s5 + $0x80c] sm:$0xf0]  ;;  %v3371_v33 = vpack.c.bf16 %v9675_v20, %v9675_v20 }
 0x551   :  { %v7086_v20 = vld [vmem:[%s11951_s5 + $0x790] sm:$0xf]  ;;  %v7158_v63 = vor.u32 %v8279_v61, %v7157_v58  ;;  %v7177_v58 = vld [vmem:[%s11951_s5 + $0x880] sm:$0x33]  ;;  %v7071_v61 = vor.u32 %v8261_v15, %v7070_v45  ;;  %v8291_v15 = vld [vmem:[%s11951_s5 + $0x874] sm:$0xf0] }
 0x552   :  { %3586 = vmatpush.bf16.msrb.mxu0 %v7008_v41  ;;  %3599 = vmatpush.bf16.msra.mxu1 %v7012_v12  ;;  %v3492_v41 = vpack.c.bf16 %v9602_v54, %v9602_v54  ;;  %v8265_v12 = vld [vmem:[%s11951_s5 + $0x794] sm:$0xf0]  ;;  %v2252_v0 = vpop.f32.mrf.mxu3  ;;  %v2265_v55 = vpop.f32.mrf.mxu2  ;;  %v7220_v45 = vld [vmem:[%s11951_s5 + $0x870] sm:$0xf] }
 0x553   :  { %v7149_v54 = vld [vmem:[%s11951_s5 + $0x7f8] sm:$0xf]  ;;  %v2269_v5 = vadd.f32 %v2252_v0, %v10645_v7  ;;  %v7087_v8 = vor.u32 %v8265_v12, %v7086_v20  ;;  %v7078_v7 = vld [vmem:[%s11951_s5 + $0x780] sm:$0xf]  ;;  %v7125_v20 = vld [vmem:[%s11951_s5 + $0x7c8] sm:$0xf]  ;;  %v3910_v12 = vunpack.c.l.b16 %v7177_v58 }
 0x554   :  { %3466 = vmatpush.bf16.msrb.mxu3 %v6937_v28  ;;  %3479 = vmatpush.bf16.msrb.mxu2 %v6941_v18  ;;  %v2270_v28 = vadd.f32 %v2265_v55, %v10647_v50  ;;  %v8277_v18 = vld [vmem:[%s11951_s5 + $0x7fc] sm:$0xf0]  ;;  %v8263_v50 = vld [vmem:[%s11951_s5 + $0x784] sm:$0xf0]  ;;  %v7067_v55 = vor.u32 %v8258_v6, %v7064_v38  ;;  %v8288_v6 = vld [vmem:[%s11951_s5 + $0x864] sm:$0xf] }
 0x555   :  { %v10774_v22 = vadd.f32 %v2374_v1, %v2269_v5  ;;  %v7150_v34 = vor.u32 %v8277_v18, %v7149_v54  ;;  %v8272_v1 = vld [vmem:[%s11951_s5 + $0x7dc] sm:$0xf]  ;;  %v7054_v54 = vld [vmem:[%s11951_s5 + $0x750] sm:$0xf]  ;;  %v8256_v18 = vld [vmem:[%s11951_s5 + $0x754] sm:$0xf] }
 0x556   :  { %3587 = vmatpush.bf16.msrb.mxu0 %v7000_v31  ;;  %3600 = vmatpush.bf16.msra.mxu1 %v7004_v56  ;;  %v7091_v31 = vor.u32 %v8264_v17, %v7088_v52  ;;  %v10776_v24 = vadd.f32 %v2387_v25, %v2270_v28  ;;  %v7154_v56 = vor.u32 %v8276_v57, %v7151_v43  ;;  %v2376_v14 = vpop.f32.mrf.mxu0  ;;  %v2389_v10 = vpop.f32.mrf.mxu1  ;;  %v7135_v25 = vld [vmem:[%s11951_s5 + $0x7e0] sm:$0xf0]  ;;  %v3911_v17 = vunpack.c.h.b16 %v7177_v58  ;;  %v7240_v52 = vld [vmem:[%s11951_s5 + $0x8e8] sm:$0x33]  ;;  %v8257_v28 = vld [vmem:[%s11951_s5 + $0x754] sm:$0xf0] }
 0x557   :  { %v7056_v57 = vld [vmem:[%s11951_s5 + $0x758] sm:$0xf0]  ;;  %v4032_v43 = vunpack.c.l.b16 %v7240_v52  ;;  %v7055_v14 = vor.u32 %v8257_v28, %v7054_v54  ;;  %v7285_v58 = vld [vmem:[%s11951_s5 + $0x8e0] sm:$0xf0]  ;;  %v7214_v38 = vld [vmem:[%s11951_s5 + $0x868] sm:$0xf0] }
 0x558   :  { %3467 = vmatpush.bf16.msrb.mxu3 %v6929_v30  ;;  %3480 = vmatpush.bf16.msrb.mxu2 %v6933_v16  ;;  %v7079_v30 = vor.u32 %v8263_v50, %v7078_v7  ;;  %v7083_v16 = vor.u32 %v8262_v11, %v7080_v47  ;;  %v3924_v7 = vpack.c.b16 %v3910_v12, %v3910_v12  ;;  %v7117_v11 = vld [vmem:[%s11951_s5 + $0x7b8] sm:$0xf]  ;;  %v8269_v47 = vld [vmem:[%s11951_s5 + $0x7bc] sm:$0xf0]  ;;  %v8286_v54 = vld [vmem:[%s11951_s5 + $0x854] sm:$0xf] }
 0x559   :  { %v3925_v50 = vpack.c.b16 %v3911_v17, %v3911_v17  ;;  %v7059_v10 = vor.u32 %v8256_v18, %v7056_v57 }
 0x55a   :  { %3588 = vmatpush.bf16.msrb.mxu0 %v6992_v3  ;;  %3601 = vmatpush.bf16.msra.mxu1 %v6996_v19  ;;  %v7142_v3 = vor.u32 %v8275_v62, %v7141_v49  ;;  %v7146_v19 = vor.u32 %v8274_v36, %v7143_v53  ;;  %v2254_v42 = vpop.f32.mrf.mxu3  ;;  %v2267_v44 = vpop.f32.mrf.mxu2  ;;  %v4046_v49 = vpack.c.b16 %v4032_v43, %v4032_v43  ;;  %v3942_v36 = vsel %vm81_vm0, %v3924_v7, 0  ;;  %v7267_v7 = vld [vmem:[%s11951_s5 + $0x8b8] sm:$0xf] }
 0x55b   :  { %6974 = vmatmul.msk.bf16.vlgmr.msrb.gmra.mxu3 %vm1525_vm4, %v3371_v33  ;;  %6975 = vmatmul.msk.bf16.vlgmr.msrb.gmra.mxu2 %vm1525_vm4, %v3371_v33  ;;  %v3945_v53 = vsel %vm81_vm0, %v3925_v50, 0  ;;  %v7283_v42 = vld [vmem:[%s11951_s5 + $0x8d8] sm:$0xf]  ;;  %v8303_v44 = vld [vmem:[%s11951_s5 + $0x8dc] sm:$0xf0] }
 0x55c   :  { %3704 = vmatpush.bf16.msra.mxu3 %v3698_v26  ;;  %3717 = vmatpush.bf16.msra.mxu2 %v3701_v48  ;;  %v8260_v26 = vld [vmem:[%s11951_s5 + $0x774] sm:$0xf]  ;;  %v7072_v48 = vld [vmem:[%s11951_s5 + $0x778] sm:$0xf0]  ;;  %v8299_v50 = vld [vmem:[%s11951_s5 + $0x8bc] sm:$0xf0] }
 0x55d   :  { %7037 = vmatmul.msk.bf16.vlgmr.msrb.gmra.mxu0 %vm1525_vm4, %v3492_v41  ;;  %7038 = vmatmul.msk.bf16.vlgmr.msra.gmra.mxu1 %vm1525_vm4, %v3492_v41  ;;  %v7075_v33 = vor.u32 %v8260_v26, %v7072_v48  ;;  %v8271_v41 = vld [vmem:[%s11951_s5 + $0x7cc] sm:$0xf0]  ;;  %v8290_v26 = vld [vmem:[%s11951_s5 + $0x874] sm:$0xf]  ;;  %v7222_v48 = vld [vmem:[%s11951_s5 + $0x878] sm:$0xf0] }
 0x55e   :  { %3826 = vmatpush.bf16.msra.mxu0 %v3820_v4  ;;  %3839 = vmatpush.bf16.msrb.mxu1 %v3823_v46  ;;  %v7062_v4 = vld [vmem:[%s11951_s5 + $0x760] sm:$0xf]  ;;  %v8259_v46 = vld [vmem:[%s11951_s5 + $0x764] sm:$0xf0]  ;;  %v7126_v5 = vor.u32 %v8271_v41, %v7125_v20 }
 0x55f   :  { %v7063_v0 = vor.u32 %v8259_v46, %v7062_v4  ;;  %v3736_v4 = vpack.c.bf16 %v9705_v2, %v9705_v2  ;;  %v8289_v46 = vld [vmem:[%s11951_s5 + $0x864] sm:$0xf0] }
 0x560   :  { %3705 = vmatpush.bf16.msra.mxu3 %v7095_v60  ;;  %3718 = vmatpush.bf16.msra.mxu2 %v7099_v9  ;;  %v7134_v60 = vor.u32 %v8273_v21, %v7133_v13  ;;  %v7138_v9 = vor.u32 %v8272_v1, %v7135_v25  ;;  %v3614_v13 = vpack.c.bf16 %v9686_v40, %v9686_v40  ;;  %v4064_v21 = vsel %vm81_vm0, %v4046_v49, 0  ;;  %v8302_v25 = vld [vmem:[%s11951_s5 + $0x8dc] sm:$0xf]  ;;  %v7212_v40 = vld [vmem:[%s11951_s5 + $0x860] sm:$0xf] }
 0x561   :  { %v7275_v2 = vld [vmem:[%s11951_s5 + $0x8c8] sm:$0xf]  ;;  %v8284_v49 = vld [vmem:[%s11951_s5 + $0x844] sm:$0xf] }
 0x562   :  { %3827 = vmatpush.bf16.msra.mxu0 %v7158_v63  ;;  %3840 = vmatpush.bf16.msrb.mxu1 %v7162_v29  ;;  %v8270_v63 = vld [vmem:[%s11951_s5 + $0x7cc] sm:$0xf]  ;;  %v7127_v29 = vld [vmem:[%s11951_s5 + $0x7d0] sm:$0xf0] }
 0x564   :  { %3706 = vmatpush.bf16.msra.mxu3 %v7087_v8  ;;  %3719 = vmatpush.bf16.msra.mxu2 %v7091_v31  ;;  %v4033_v8 = vunpack.c.h.b16 %v7240_v52  ;;  %v7130_v31 = vor.u32 %v8270_v63, %v7127_v29  ;;  %v8301_v52 = vld [vmem:[%s11951_s5 + $0x8cc] sm:$0xf0]  ;;  %v8300_v63 = vld [vmem:[%s11951_s5 + $0x8cc] sm:$0xf]  ;;  %v7277_v29 = vld [vmem:[%s11951_s5 + $0x8d0] sm:$0xf0] }
 0x565   :  { %v7276_v57 = vor.u32 %v8301_v52, %v7275_v2  ;;  %v7280_v43 = vor.u32 %v8300_v63, %v7277_v29  ;;  %v8281_v2 = vld [vmem:[%s11951_s5 + $0x824] sm:$0xf0] }
 0x566   :  { %3828 = vmatpush.bf16.msra.mxu0 %v7150_v34  ;;  %3841 = vmatpush.bf16.msrb.mxu1 %v7154_v56  ;;  %v8268_v34 = vld [vmem:[%s11951_s5 + $0x7bc] sm:$0xf]  ;;  %v7119_v56 = vld [vmem:[%s11951_s5 + $0x7c0] sm:$0xf0]  ;;  %v4047_v62 = vpack.c.b16 %v4033_v8, %v4033_v8 }
 0x568   :  { %3707 = vmatpush.bf16.msra.mxu3 %v7079_v30  ;;  %3720 = vmatpush.bf16.msra.mxu2 %v7083_v16  ;;  %v7118_v30 = vor.u32 %v8269_v47, %v7117_v11  ;;  %v7122_v16 = vor.u32 %v8268_v34, %v7119_v56  ;;  %v4067_v1 = vsel %vm81_vm0, %v4047_v62, 0  ;;  %v8298_v11 = vld [vmem:[%s11951_s5 + $0x8bc] sm:$0xf]  ;;  %v7269_v47 = vld [vmem:[%s11951_s5 + $0x8c0] sm:$0xf0] }
 0x569   :  { %v7198_v62 = vld [vmem:[%s11951_s5 + $0x848] sm:$0xf0] }
 0x56a   :  { %3829 = vmatpush.bf16.msra.mxu0 %v7142_v3  ;;  %3842 = vmatpush.bf16.msrb.mxu1 %v7146_v19  ;;  %v2616_v3 = vpop.f32.mrf.mxu0  ;;  %v2629_v19 = vpop.f32.mrf.mxu1 }
 0x56c   :  { %3708 = vmatpush.bf16.msra.mxu3 %v7071_v61  ;;  %3721 = vmatpush.bf16.msra.mxu2 %v7075_v33  ;;  %v7221_v61 = vor.u32 %v8291_v15, %v7220_v45  ;;  %v7225_v33 = vor.u32 %v8290_v26, %v7222_v48  ;;  %v7259_v45 = vld [vmem:[%s11951_s5 + $0x8a8] sm:$0xf]  ;;  %v8297_v15 = vld [vmem:[%s11951_s5 + $0x8ac] sm:$0xf0]  ;;  %v8296_v26 = vld [vmem:[%s11951_s5 + $0x8ac] sm:$0xf] }
 0x56d   :  { %v7261_v48 = vld [vmem:[%s11951_s5 + $0x8b0] sm:$0xf0] }
 0x56e   :  { %3830 = vmatpush.bf16.msra.mxu0 %v7134_v60  ;;  %3843 = vmatpush.bf16.msrb.mxu1 %v7138_v9  ;;  %v7284_v60 = vor.u32 %v8303_v44, %v7283_v42  ;;  %v7288_v9 = vor.u32 %v8302_v25, %v7285_v58  ;;  %v2495_v20 = vpop.f32.mrf.mxu3  ;;  %v2508_v41 = vpop.f32.mrf.mxu2  ;;  %v7201_v42 = vor.u32 %v8284_v49, %v7198_v62  ;;  %v7188_v44 = vld [vmem:[%s11951_s5 + $0x830] sm:$0xf] }
 0x56f   :  { %v2512_v12 = vadd.f32 %v2495_v20, %v10774_v22  ;;  %v2513_v17 = vadd.f32 %v2508_v41, %v10776_v24  ;;  %v7204_v22 = vld [vmem:[%s11951_s5 + $0x850] sm:$0xf]  ;;  %v8287_v24 = vld [vmem:[%s11951_s5 + $0x854] sm:$0xf0]  ;;  %v7260_v25 = vor.u32 %v8297_v15, %v7259_v45  ;;  %v7264_v58 = vor.u32 %v8296_v26, %v7261_v48  ;;  %v7180_v20 = vld [vmem:[%s11951_s5 + $0x820] sm:$0xf] }
 0x570   :  { %3709 = vmatpush.bf16.msra.mxu3 %v7063_v0  ;;  %3722 = vmatpush.bf16.msra.mxu2 %v7067_v55  ;;  %v7213_v0 = vor.u32 %v8289_v46, %v7212_v40  ;;  %v7217_v55 = vor.u32 %v8288_v6, %v7214_v38  ;;  %v7205_v34 = vor.u32 %v8287_v24, %v7204_v22  ;;  %v7366_v46 = vld [vmem:[%s11951_s5 + $0x9b8] sm:$0x33]  ;;  %v7253_v38 = vld [vmem:[%s11951_s5 + $0x8a0] sm:$0xf0]  ;;  %v7243_v22 = vld [vmem:[%s11951_s5 + $0x888] sm:$0xf] }
 0x571   :  { %v10942_v28 = vadd.f32 %v2616_v3, %v2512_v12  ;;  %v10944_v18 = vadd.f32 %v2629_v19, %v2513_v17  ;;  %v7303_v3 = vld [vmem:[%s11951_s5 + $0x950] sm:$0x33]  ;;  %v8294_v6 = vld [vmem:[%s11951_s5 + $0x89c] sm:$0xf]  ;;  %v8280_v12 = vld [vmem:[%s11951_s5 + $0x824] sm:$0xf]  ;;  %v4276_v52 = vunpack.c.l.b16 %v7366_v46  ;;  %v4277_v63 = vunpack.c.h.b16 %v7366_v46 }
 0x572   :  { %3831 = vmatpush.bf16.msra.mxu0 %v7126_v5  ;;  %3844 = vmatpush.bf16.msrb.mxu1 %v7130_v31  ;;  %v7206_v5 = vld [vmem:[%s11951_s5 + $0x858] sm:$0xf0]  ;;  %v2618_v8 = vpop.f32.mrf.mxu0  ;;  %v2631_v31 = vpop.f32.mrf.mxu1  ;;  %v4154_v40 = vunpack.c.l.b16 %v7303_v3  ;;  %v7182_v17 = vld [vmem:[%s11951_s5 + $0x828] sm:$0xf0]  ;;  %v7256_v29 = vor.u32 %v8294_v6, %v7253_v38  ;;  %v8293_v24 = vld [vmem:[%s11951_s5 + $0x88c] sm:$0xf0] }
 0x573   :  { %v7209_v56 = vor.u32 %v8286_v54, %v7206_v5  ;;  %v8292_v54 = vld [vmem:[%s11951_s5 + $0x88c] sm:$0xf]  ;;  %v7245_v5 = vld [vmem:[%s11951_s5 + $0x890] sm:$0xf0]  ;;  %v4290_v8 = vpack.c.b16 %v4276_v52, %v4276_v52  ;;  %v4291_v31 = vpack.c.b16 %v4277_v63, %v4277_v63  ;;  %v7403_v46 = vld [vmem:[%s11951_s5 + $0x9a0] sm:$0xf0] }
 0x574   :  { %3710 = vmatpush.bf16.msra.mxu3 %v7055_v14  ;;  %3723 = vmatpush.bf16.msra.mxu2 %v7059_v10  ;;  %v7196_v14 = vld [vmem:[%s11951_s5 + $0x840] sm:$0xf]  ;;  %v8285_v10 = vld [vmem:[%s11951_s5 + $0x844] sm:$0xf0]  ;;  %v8326_v15 = vld [vmem:[%s11951_s5 + $0x9ac] sm:$0xf] }
 0x575   :  { %v7197_v19 = vor.u32 %v8285_v10, %v7196_v14  ;;  %v8314_v14 = vld [vmem:[%s11951_s5 + $0x944] sm:$0xf]  ;;  %v7348_v10 = vld [vmem:[%s11951_s5 + $0x948] sm:$0xf0]  ;;  %v4311_v45 = vsel %vm81_vm0, %v4291_v31, 0 }
 0x576   :  { %3832 = vmatpush.bf16.msra.mxu0 %v7118_v30  ;;  %3845 = vmatpush.bf16.msrb.mxu1 %v7122_v16  ;;  %v2497_v30 = vpop.f32.mrf.mxu3  ;;  %v2510_v16 = vpop.f32.mrf.mxu2  ;;  %v7411_v26 = vld [vmem:[%s11951_s5 + $0x9b0] sm:$0xf0]  ;;  %v7393_v63 = vld [vmem:[%s11951_s5 + $0x988] sm:$0xf] }
 0x577   :  { %7100 = vmatmul.msk.bf16.vlgmr.msra.gmra.mxu3 %vm1525_vm4, %v3614_v13  ;;  %7101 = vmatmul.msk.bf16.vlgmr.msra.gmra.mxu2 %vm1525_vm4, %v3614_v13  ;;  %v8283_v13 = vld [vmem:[%s11951_s5 + $0x834] sm:$0xf0]  ;;  %v3858_v30 = vpack.c.bf16 %v9729_v51, %v9729_v51  ;;  %v4308_v16 = vsel %vm81_vm0, %v4290_v8, 0  ;;  %v7338_v51 = vld [vmem:[%s11951_s5 + $0x930] sm:$0xf] }
 0x578   :  { %3948 = vmatpush.bf16.msrb.mxu3 %v3942_v36  ;;  %3961 = vmatpush.bf16.msrb.mxu2 %v3945_v53  ;;  %v7268_v36 = vor.u32 %v8299_v50, %v7267_v7  ;;  %v7272_v53 = vor.u32 %v8298_v11, %v7269_v47  ;;  %v7244_v11 = vor.u32 %v8293_v24, %v7243_v22 }
 0x579   :  { %7163 = vmatmul.msk.bf16.vlgmr.msra.gmra.mxu0 %vm1525_vm4, %v3736_v4  ;;  %7164 = vmatmul.msk.bf16.vlgmr.msrb.gmra.mxu1 %vm1525_vm4, %v3736_v4  ;;  %v4155_v4 = vunpack.c.h.b16 %v7303_v3  ;;  %v7248_v47 = vor.u32 %v8292_v54, %v7245_v5  ;;  %v7351_v3 = vor.u32 %v8314_v14, %v7348_v10  ;;  %v7322_v54 = vld [vmem:[%s11951_s5 + $0x910] sm:$0xf]  ;;  %v8309_v5 = vld [vmem:[%s11951_s5 + $0x914] sm:$0xf0]  ;;  %v7429_v14 = vld [vmem:[%s11951_s5 + $0xa20] sm:$0x33] }
 0x57a   :  { %4070 = vmatpush.bf16.msrb.mxu0 %v4064_v21  ;;  %4083 = vmatpush.bf16.msra.mxu1 %v4067_v1  ;;  %v8282_v21 = vld [vmem:[%s11951_s5 + $0x834] sm:$0xf]  ;;  %v7190_v1 = vld [vmem:[%s11951_s5 + $0x838] sm:$0xf0]  ;;  %v7323_v10 = vor.u32 %v8309_v5, %v7322_v54 }
 0x57c   :  { %3949 = vmatpush.bf16.msrb.mxu3 %v7221_v61  ;;  %3962 = vmatpush.bf16.msrb.mxu2 %v7225_v33  ;;  %v7251_v61 = vld [vmem:[%s11951_s5 + $0x898] sm:$0xf]  ;;  %v8295_v33 = vld [vmem:[%s11951_s5 + $0x89c] sm:$0xf0] }
 0x57d   :  { %v7252_v41 = vor.u32 %v8295_v33, %v7251_v61 }
 0x57e   :  { %4071 = vmatpush.bf16.msrb.mxu0 %v7284_v60  ;;  %4084 = vmatpush.bf16.msra.mxu1 %v7288_v9  ;;  %v7189_v60 = vor.u32 %v8283_v13, %v7188_v44  ;;  %v7193_v9 = vor.u32 %v8282_v21, %v7190_v1  ;;  %v8312_v44 = vld [vmem:[%s11951_s5 + $0x934] sm:$0xf]  ;;  %v7340_v13 = vld [vmem:[%s11951_s5 + $0x938] sm:$0xf0]  ;;  %v7414_v1 = vor.u32 %v8326_v15, %v7411_v26  ;;  %v7377_v15 = vld [vmem:[%s11951_s5 + $0x968] sm:$0xf] }
 0x57f   :  { %v7343_v38 = vor.u32 %v8312_v44, %v7340_v13  ;;  %v8319_v26 = vld [vmem:[%s11951_s5 + $0x96c] sm:$0xf0] }
 0x580   :  { %3950 = vmatpush.bf16.msrb.mxu3 %v7213_v0  ;;  %3963 = vmatpush.bf16.msrb.mxu2 %v7217_v55  ;;  %v4168_v0 = vpack.c.b16 %v4154_v40, %v4154_v40  ;;  %v4169_v55 = vpack.c.b16 %v4155_v4, %v4155_v4  ;;  %v8325_v40 = vld [vmem:[%s11951_s5 + $0x99c] sm:$0xf0]  ;;  %v8324_v4 = vld [vmem:[%s11951_s5 + $0x99c] sm:$0xf] }
 0x582   :  { %4072 = vmatpush.bf16.msrb.mxu0 %v7276_v57  ;;  %4085 = vmatpush.bf16.msra.mxu1 %v7280_v43  ;;  %v7181_v57 = vor.u32 %v8281_v2, %v7180_v20  ;;  %v7185_v43 = vor.u32 %v8280_v12, %v7182_v17  ;;  %v4186_v7 = vsel %vm81_vm0, %v4168_v0, 0  ;;  %v4189_v50 = vsel %vm81_vm0, %v4169_v55, 0  ;;  %v8322_v0 = vld [vmem:[%s11951_s5 + $0x98c] sm:$0xf]  ;;  %v7395_v55 = vld [vmem:[%s11951_s5 + $0x990] sm:$0xf0] }
 0x583   :  { %v7406_v12 = vor.u32 %v8324_v4, %v7403_v46  ;;  %v7398_v31 = vor.u32 %v8322_v0, %v7395_v55  ;;  %v7472_v0 = vld [vmem:[%s11951_s5 + $0xa10] sm:$0xf]  ;;  %v8339_v55 = vld [vmem:[%s11951_s5 + $0xa14] sm:$0xf0] }
 0x584   :  { %3951 = vmatpush.bf16.msrb.mxu3 %v7205_v34  ;;  %3964 = vmatpush.bf16.msrb.mxu2 %v7209_v56  ;;  %v7346_v34 = vld [vmem:[%s11951_s5 + $0x940] sm:$0xf]  ;;  %v8315_v56 = vld [vmem:[%s11951_s5 + $0x944] sm:$0xf0] }
 0x585   :  { %v7347_v48 = vor.u32 %v8315_v56, %v7346_v34  ;;  %v8320_v34 = vld [vmem:[%s11951_s5 + $0x97c] sm:$0xf]  ;;  %v7387_v56 = vld [vmem:[%s11951_s5 + $0x980] sm:$0xf0] }
 0x586   :  { %4073 = vmatpush.bf16.msrb.mxu0 %v7268_v36  ;;  %4086 = vmatpush.bf16.msra.mxu1 %v7272_v53  ;;  %v2860_v49 = vpop.f32.mrf.mxu0  ;;  %v2873_v62 = vpop.f32.mrf.mxu1  ;;  %v7409_v36 = vld [vmem:[%s11951_s5 + $0x9a8] sm:$0xf]  ;;  %v8327_v53 = vld [vmem:[%s11951_s5 + $0x9ac] sm:$0xf0] }
 0x587   :  { %v7410_v21 = vor.u32 %v8327_v53, %v7409_v36  ;;  %v8307_v36 = vld [vmem:[%s11951_s5 + $0x904] sm:$0xf0]  ;;  %v8306_v53 = vld [vmem:[%s11951_s5 + $0x904] sm:$0xf] }
 0x588   :  { %3952 = vmatpush.bf16.msrb.mxu3 %v7197_v19  ;;  %3965 = vmatpush.bf16.msrb.mxu2 %v7201_v42  ;;  %v3980_v19 = vpack.c.bf16 %v9732_v35, %v9732_v35  ;;  %v8313_v42 = vld [vmem:[%s11951_s5 + $0x934] sm:$0xf0] }
 0x589   :  { %v7401_v35 = vld [vmem:[%s11951_s5 + $0x998] sm:$0xf]  ;;  %v7339_v6 = vor.u32 %v8313_v42, %v7338_v51  ;;  %v7492_v51 = vld [vmem:[%s11951_s5 + $0xa88] sm:$0x33]  ;;  %v7379_v42 = vld [vmem:[%s11951_s5 + $0x970] sm:$0xf0] }
 0x58a   :  { %4074 = vmatpush.bf16.msrb.mxu0 %v7260_v25  ;;  %4087 = vmatpush.bf16.msra.mxu1 %v7264_v58  ;;  %v2738_v25 = vpop.f32.mrf.mxu3  ;;  %v2751_v58 = vpop.f32.mrf.mxu2  ;;  %v7402_v2 = vor.u32 %v8325_v40, %v7401_v35  ;;  %v7308_v35 = vld [vmem:[%s11951_s5 + $0x8f8] sm:$0xf0] }
 0x58b   :  { %v2755_v61 = vadd.f32 %v2738_v25, %v10942_v28  ;;  %v2756_v33 = vadd.f32 %v2751_v58, %v10944_v18  ;;  %v7330_v28 = vld [vmem:[%s11951_s5 + $0x920] sm:$0xf]  ;;  %v8311_v18 = vld [vmem:[%s11951_s5 + $0x924] sm:$0xf0]  ;;  %v8305_v25 = vld [vmem:[%s11951_s5 + $0x8f4] sm:$0xf0] }
 0x58c   :  { %3953 = vmatpush.bf16.msrb.mxu3 %v7189_v60  ;;  %3966 = vmatpush.bf16.msrb.mxu2 %v7193_v9  ;;  %v8310_v60 = vld [vmem:[%s11951_s5 + $0x924] sm:$0xf]  ;;  %v7332_v9 = vld [vmem:[%s11951_s5 + $0x928] sm:$0xf0]  ;;  %v7331_v22 = vor.u32 %v8311_v18, %v7330_v28  ;;  %v8304_v58 = vld [vmem:[%s11951_s5 + $0x8f4] sm:$0xf] }
 0x58d   :  { %v11110_v20 = vadd.f32 %v2860_v49, %v2755_v61  ;;  %v7335_v24 = vor.u32 %v8310_v60, %v7332_v9  ;;  %v4518_v61 = vunpack.c.l.b16 %v7492_v51  ;;  %v8316_v28 = vld [vmem:[%s11951_s5 + $0x95c] sm:$0xf]  ;;  %v7371_v18 = vld [vmem:[%s11951_s5 + $0x960] sm:$0xf0]  ;;  %v7311_v9 = vor.u32 %v8304_v58, %v7308_v35  ;;  %v7519_v35 = vld [vmem:[%s11951_s5 + $0xa58] sm:$0xf] }
 0x58e   :  { %4075 = vmatpush.bf16.msrb.mxu0 %v7252_v41  ;;  %4088 = vmatpush.bf16.msra.mxu1 %v7256_v29  ;;  %v11112_v41 = vadd.f32 %v2873_v62, %v2756_v33  ;;  %v2862_v17 = vpop.f32.mrf.mxu0  ;;  %v2875_v52 = vpop.f32.mrf.mxu1  ;;  %v8323_v29 = vld [vmem:[%s11951_s5 + $0x98c] sm:$0xf0]  ;;  %v7314_v62 = vld [vmem:[%s11951_s5 + $0x900] sm:$0xf]  ;;  %v4519_v33 = vunpack.c.h.b16 %v7492_v51 }
 0x58f   :  { %v7394_v8 = vor.u32 %v8323_v29, %v7393_v63  ;;  %v7315_v44 = vor.u32 %v8307_v36, %v7314_v62  ;;  %v7374_v29 = vor.u32 %v8316_v28, %v7371_v18  ;;  %v8332_v28 = vld [vmem:[%s11951_s5 + $0x9e4] sm:$0xf]  ;;  %v7450_v18 = vld [vmem:[%s11951_s5 + $0x9e8] sm:$0xf0] }
 0x590   :  { %3954 = vmatpush.bf16.msrb.mxu3 %v7181_v57  ;;  %3967 = vmatpush.bf16.msrb.mxu2 %v7185_v43  ;;  %v8308_v57 = vld [vmem:[%s11951_s5 + $0x914] sm:$0xf]  ;;  %v7324_v43 = vld [vmem:[%s11951_s5 + $0x918] sm:$0xf0] }
 0x591   :  { %v7327_v49 = vor.u32 %v8308_v57, %v7324_v43  ;;  %v7535_v57 = vld [vmem:[%s11951_s5 + $0xa78] sm:$0xf]  ;;  %v8351_v43 = vld [vmem:[%s11951_s5 + $0xa7c] sm:$0xf0] }
 0x592   :  { %4076 = vmatpush.bf16.msrb.mxu0 %v7244_v11  ;;  %4089 = vmatpush.bf16.msra.mxu1 %v7248_v47  ;;  %v7385_v11 = vld [vmem:[%s11951_s5 + $0x978] sm:$0xf]  ;;  %v8321_v47 = vld [vmem:[%s11951_s5 + $0x97c] sm:$0xf0]  ;;  %v7536_v62 = vor.u32 %v8351_v43, %v7535_v57  ;;  %v7442_v57 = vld [vmem:[%s11951_s5 + $0x9d8] sm:$0xf0] }
 0x593   :  { %7226 = vmatmul.msk.bf16.vlgmr.msrb.gmra.mxu3 %vm1525_vm4, %v3858_v30  ;;  %7227 = vmatmul.msk.bf16.vlgmr.msrb.gmra.mxu2 %vm1525_vm4, %v3858_v30  ;;  %v7316_v30 = vld [vmem:[%s11951_s5 + $0x908] sm:$0xf0] }
 0x594   :  { %4192 = vmatpush.bf16.msra.mxu3 %v4186_v7  ;;  %4205 = vmatpush.bf16.msra.mxu2 %v4189_v50  ;;  %v2740_v7 = vpop.f32.mrf.mxu3  ;;  %v2753_v50 = vpop.f32.mrf.mxu2  ;;  %v7319_v13 = vor.u32 %v8306_v53, %v7316_v30 }
 0x595   :  { %7289 = vmatmul.msk.bf16.vlgmr.msrb.gmra.mxu0 %vm1525_vm4, %v3980_v19  ;;  %7290 = vmatmul.msk.bf16.vlgmr.msra.gmra.mxu1 %vm1525_vm4, %v3980_v19  ;;  %v8318_v19 = vld [vmem:[%s11951_s5 + $0x96c] sm:$0xf]  ;;  %v8350_v50 = vld [vmem:[%s11951_s5 + $0xa7c] sm:$0xf] }
 0x596   :  { %4314 = vmatpush.bf16.msra.mxu0 %v4308_v16  ;;  %4327 = vmatpush.bf16.msrb.mxu1 %v4311_v45  ;;  %v7386_v16 = vor.u32 %v8321_v47, %v7385_v11  ;;  %v7390_v45 = vor.u32 %v8320_v34, %v7387_v56  ;;  %v7382_v40 = vor.u32 %v8318_v19, %v7379_v42  ;;  %v7537_v11 = vld [vmem:[%s11951_s5 + $0xa80] sm:$0xf0]  ;;  %v8334_v19 = vld [vmem:[%s11951_s5 + $0x9f4] sm:$0xf]  ;;  %v7458_v42 = vld [vmem:[%s11951_s5 + $0x9f8] sm:$0xf0] }
 0x597   :  { %v7473_v47 = vor.u32 %v8339_v55, %v7472_v0  ;;  %v4224_v56 = vpack.c.bf16 %v9774_v27, %v9774_v27  ;;  %v7540_v36 = vor.u32 %v8350_v50, %v7537_v11  ;;  %v7527_v27 = vld [vmem:[%s11951_s5 + $0xa68] sm:$0xf]  ;;  %v7555_v0 = vld [vmem:[%s11951_s5 + $0xaf0] sm:$0x33] }
 0x598   :  { %4193 = vmatpush.bf16.msra.mxu3 %v7347_v48  ;;  %4206 = vmatpush.bf16.msra.mxu2 %v7351_v3  ;;  %v4397_v48 = vunpack.c.l.b16 %v7429_v14  ;;  %v4398_v3 = vunpack.c.h.b16 %v7429_v14  ;;  %v8337_v14 = vld [vmem:[%s11951_s5 + $0xa04] sm:$0xf0]  ;;  %v4640_v50 = vunpack.c.l.b16 %v7555_v0  ;;  %v4641_v11 = vunpack.c.h.b16 %v7555_v0 }
 0x59a   :  { %4315 = vmatpush.bf16.msra.mxu0 %v7410_v21  ;;  %4328 = vmatpush.bf16.msrb.mxu1 %v7414_v1  ;;  %v7306_v21 = vld [vmem:[%s11951_s5 + $0x8f0] sm:$0xf]  ;;  %v7378_v1 = vor.u32 %v8319_v26, %v7377_v15  ;;  %v4411_v4 = vpack.c.b16 %v4397_v48, %v4397_v48  ;;  %v4412_v46 = vpack.c.b16 %v4398_v3, %v4398_v3  ;;  %v8348_v26 = vld [vmem:[%s11951_s5 + $0xa6c] sm:$0xf]  ;;  %v7529_v48 = vld [vmem:[%s11951_s5 + $0xa70] sm:$0xf0] }
 0x59b   :  { %v7307_v60 = vor.u32 %v8305_v25, %v7306_v21  ;;  %v8349_v15 = vld [vmem:[%s11951_s5 + $0xa6c] sm:$0xf0] }
 0x59c   :  { %4194 = vmatpush.bf16.msra.mxu3 %v7339_v6  ;;  %4207 = vmatpush.bf16.msra.mxu2 %v7343_v38  ;;  %v7369_v6 = vld [vmem:[%s11951_s5 + $0x958] sm:$0xf]  ;;  %v8317_v38 = vld [vmem:[%s11951_s5 + $0x95c] sm:$0xf0]  ;;  %v4429_v17 = vsel %vm81_vm0, %v4411_v4, 0  ;;  %v4432_v52 = vsel %vm81_vm0, %v4412_v46, 0  ;;  %v7528_v21 = vor.u32 %v8349_v15, %v7527_v27  ;;  %v7461_v46 = vor.u32 %v8334_v19, %v7458_v42 }
 0x59d   :  { %v7370_v63 = vor.u32 %v8317_v38, %v7369_v6  ;;  %v7448_v6 = vld [vmem:[%s11951_s5 + $0x9e0] sm:$0xf]  ;;  %v8333_v38 = vld [vmem:[%s11951_s5 + $0x9e4] sm:$0xf0]  ;;  %v4654_v15 = vpack.c.b16 %v4640_v50, %v4640_v50 }
 0x59e   :  { %4316 = vmatpush.bf16.msra.mxu0 %v7402_v2  ;;  %4329 = vmatpush.bf16.msrb.mxu1 %v7406_v12  ;;  %v4532_v2 = vpack.c.b16 %v4518_v61, %v4518_v61  ;;  %v4533_v12 = vpack.c.b16 %v4519_v33, %v4519_v33  ;;  %v8347_v61 = vld [vmem:[%s11951_s5 + $0xa5c] sm:$0xf0]  ;;  %v8346_v33 = vld [vmem:[%s11951_s5 + $0xa5c] sm:$0xf]  ;;  %v7449_v55 = vor.u32 %v8333_v38, %v7448_v6  ;;  %v7600_v6 = vld [vmem:[%s11951_s5 + $0xae8] sm:$0xf0] }
 0x5a0   :  { %4195 = vmatpush.bf16.msra.mxu3 %v7331_v22  ;;  %4208 = vmatpush.bf16.msra.mxu2 %v7335_v24  ;;  %v8338_v22 = vld [vmem:[%s11951_s5 + $0xa14] sm:$0xf]  ;;  %v7474_v24 = vld [vmem:[%s11951_s5 + $0xa18] sm:$0xf0]  ;;  %v4553_v7 = vsel %vm81_vm0, %v4533_v12, 0 }
 0x5a1   :  { %v7477_v34 = vor.u32 %v8338_v22, %v7474_v24  ;;  %v7453_v22 = vor.u32 %v8332_v28, %v7450_v18  ;;  %v7440_v24 = vld [vmem:[%s11951_s5 + $0x9d0] sm:$0xf] }
 0x5a2   :  { %4317 = vmatpush.bf16.msra.mxu0 %v7394_v8  ;;  %4330 = vmatpush.bf16.msrb.mxu1 %v7398_v31  ;;  %v3104_v54 = vpop.f32.mrf.mxu0  ;;  %v3117_v5 = vpop.f32.mrf.mxu1  ;;  %v4102_v8 = vpack.c.bf16 %v9752_v23, %v9752_v23  ;;  %v4550_v31 = vsel %vm81_vm0, %v4532_v2, 0  ;;  %v7464_v23 = vld [vmem:[%s11951_s5 + $0xa00] sm:$0xf] }
 0x5a3   :  { %v7465_v3 = vor.u32 %v8337_v14, %v7464_v23  ;;  %v7505_v23 = vld [vmem:[%s11951_s5 + $0xa40] sm:$0xf0] }
 0x5a4   :  { %4196 = vmatpush.bf16.msra.mxu3 %v7323_v10  ;;  %4209 = vmatpush.bf16.msra.mxu2 %v7327_v49  ;;  %v8336_v10 = vld [vmem:[%s11951_s5 + $0xa04] sm:$0xf]  ;;  %v7466_v49 = vld [vmem:[%s11951_s5 + $0xa08] sm:$0xf0] }
 0x5a5   :  { %v7469_v51 = vor.u32 %v8336_v10, %v7466_v49  ;;  %v7432_v10 = vld [vmem:[%s11951_s5 + $0x9c0] sm:$0xf]  ;;  %v4342_v49 = vrot.slane %v9782_v59, 7 }
 0x5a6   :  { %4318 = vmatpush.bf16.msra.mxu0 %v7386_v16  ;;  %4331 = vmatpush.bf16.msrb.mxu1 %v7390_v45  ;;  %v2982_v53 = vpop.f32.mrf.mxu3  ;;  %v2995_v30 = vpop.f32.mrf.mxu2 }
 0x5a7   :  { %v2999_v16 = vadd.f32 %v2982_v53, %v11110_v20  ;;  %v3000_v45 = vadd.f32 %v2995_v30, %v11112_v41  ;;  %v7456_v20 = vld [vmem:[%s11951_s5 + $0x9f0] sm:$0xf]  ;;  %v8335_v41 = vld [vmem:[%s11951_s5 + $0x9f4] sm:$0xf0]  ;;  %v8328_v53 = vld [vmem:[%s11951_s5 + $0x9c4] sm:$0xf]  ;;  %v4344_v42 = vsel %vm1425_vm3, %v9755_v32, %v4342_v49 }
 0x5a8   :  { %4197 = vmatpush.bf16.msra.mxu3 %v7315_v44  ;;  %4210 = vmatpush.bf16.msra.mxu2 %v7319_v13  ;;  %v7457_v4 = vor.u32 %v8335_v41, %v7456_v20  ;;  %v7434_v30 = vld [vmem:[%s11951_s5 + $0x9c8] sm:$0xf0]  ;;  %v7497_v20 = vld [vmem:[%s11951_s5 + $0xa30] sm:$0xf0] }
 0x5a9   :  { %v11278_v44 = vadd.f32 %v3104_v54, %v2999_v16  ;;  %v11280_v13 = vadd.f32 %v3117_v5, %v3000_v45  ;;  %v8331_v54 = vld [vmem:[%s11951_s5 + $0x9d4] sm:$0xf0]  ;;  %v8330_v5 = vld [vmem:[%s11951_s5 + $0x9d4] sm:$0xf]  ;;  %v7437_v19 = vor.u32 %v8328_v53, %v7434_v30  ;;  %v7584_v49 = vld [vmem:[%s11951_s5 + $0xac8] sm:$0xf0] }
 0x5aa   :  { %4319 = vmatpush.bf16.msra.mxu0 %v7378_v1  ;;  %4332 = vmatpush.bf16.msrb.mxu1 %v7382_v40  ;;  %v7532_v1 = vor.u32 %v8348_v26, %v7529_v48  ;;  %v3106_v25 = vpop.f32.mrf.mxu0  ;;  %v3119_v58 = vpop.f32.mrf.mxu1  ;;  %v7521_v40 = vld [vmem:[%s11951_s5 + $0xa60] sm:$0xf0]  ;;  %v7445_v14 = vor.u32 %v8330_v5, %v7442_v57  ;;  %v4655_v26 = vpack.c.b16 %v4641_v11, %v4641_v11  ;;  %v7495_v48 = vld [vmem:[%s11951_s5 + $0xa28] sm:$0xf]  ;;  %v7592_v5 = vld [vmem:[%s11951_s5 + $0xad8] sm:$0xf0] }
 0x5ab   :  { %v4463_v25 = vrot.slane %v9755_v32, 1  ;;  %v4672_v58 = vsel %vm81_vm0, %v4654_v15, 0  ;;  %v8371_v15 = vld [vmem:[%s11951_s5 + $0xb2c] sm:$0xf0] }
 0x5ac   :  { %4198 = vmatpush.bf16.msra.mxu3 %v7307_v60  ;;  %4211 = vmatpush.bf16.msra.mxu2 %v7311_v9  ;;  %v7520_v60 = vor.u32 %v8347_v61, %v7519_v35  ;;  %v7524_v9 = vor.u32 %v8346_v33, %v7521_v40  ;;  %v4675_v35 = vsel %vm81_vm0, %v4655_v26, 0  ;;  %v7598_v40 = vld [vmem:[%s11951_s5 + $0xae0] sm:$0xf]  ;;  %v8370_v26 = vld [vmem:[%s11951_s5 + $0xb2c] sm:$0xf] }
 0x5ad   :  { %v4465_v18 = vsel %vm1425_vm3, %v4463_v25, %v9782_v59 }
 0x5ae   :  { %4320 = vmatpush.bf16.msra.mxu0 %v7370_v63  ;;  %4333 = vmatpush.bf16.msrb.mxu1 %v7374_v29  ;;  %v2984_v2 = vpop.f32.mrf.mxu3  ;;  %v2997_v12 = vpop.f32.mrf.mxu2  ;;  %v8344_v63 = vld [vmem:[%s11951_s5 + $0xa4c] sm:$0xf]  ;;  %v7513_v29 = vld [vmem:[%s11951_s5 + $0xa50] sm:$0xf0] }
 0x5af   :  { %7352 = vmatmul.msk.bf16.vlgmr.msra.gmra.mxu3 %vm1525_vm4, %v4102_v8  ;;  %7353 = vmatmul.msk.bf16.vlgmr.msra.gmra.mxu2 %vm1525_vm4, %v4102_v8  ;;  %v7516_v8 = vor.u32 %v8344_v63, %v7513_v29  ;;  %v4345_v2 = vpack.c.bf16 %v4344_v42, %v4344_v42  ;;  %v7663_v63 = vld [vmem:[%s11951_s5 + $0xb50] sm:$0xf0]  ;;  %v7576_v42 = vld [vmem:[%s11951_s5 + $0xab8] sm:$0xf0] }
 0x5b0   :  { %4435 = vmatpush.bf16.msrb.mxu3 %v4429_v17  ;;  %4448 = vmatpush.bf16.msrb.mxu2 %v4432_v52  ;;  %v7511_v17 = vld [vmem:[%s11951_s5 + $0xa48] sm:$0xf]  ;;  %v8345_v52 = vld [vmem:[%s11951_s5 + $0xa4c] sm:$0xf0] }
 0x5b1   :  { %7415 = vmatmul.msk.bf16.vlgmr.msra.gmra.mxu0 %vm1525_vm4, %v4224_v56  ;;  %7416 = vmatmul.msk.bf16.vlgmr.msrb.gmra.mxu1 %vm1525_vm4, %v4224_v56  ;;  %v7512_v43 = vor.u32 %v8345_v52, %v7511_v17  ;;  %v7441_v56 = vor.u32 %v8331_v54, %v7440_v24  ;;  %v8374_v52 = vld [vmem:[%s11951_s5 + $0xb4c] sm:$0xf]  ;;  %v8361_v24 = vld [vmem:[%s11951_s5 + $0xad4] sm:$0xf0]  ;;  %v8360_v54 = vld [vmem:[%s11951_s5 + $0xad4] sm:$0xf] }
 0x5b2   :  { %4556 = vmatpush.bf16.msrb.mxu0 %v4550_v31  ;;  %4569 = vmatpush.bf16.msra.mxu1 %v4553_v7  ;;  %v7503_v31 = vld [vmem:[%s11951_s5 + $0xa38] sm:$0xf]  ;;  %v8343_v7 = vld [vmem:[%s11951_s5 + $0xa3c] sm:$0xf0] }
 0x5b4   :  { %4436 = vmatpush.bf16.msrb.mxu3 %v7473_v47  ;;  %4449 = vmatpush.bf16.msrb.mxu2 %v7477_v34  ;;  %v7618_v47 = vld [vmem:[%s11951_s5 + $0xb58] sm:$0x33] }
 0x5b5   :  { %v8342_v34 = vld [vmem:[%s11951_s5 + $0xa3c] sm:$0xf]  ;;  %v4762_v27 = vunpack.c.l.b16 %v7618_v47  ;;  %v4763_v16 = vunpack.c.h.b16 %v7618_v47  ;;  %v8373_v47 = vld [vmem:[%s11951_s5 + $0xb3c] sm:$0xf0] }
 0x5b6   :  { %4557 = vmatpush.bf16.msrb.mxu0 %v7536_v62  ;;  %4570 = vmatpush.bf16.msra.mxu1 %v7540_v36  ;;  %v7504_v62 = vor.u32 %v8343_v7, %v7503_v31  ;;  %v8329_v36 = vld [vmem:[%s11951_s5 + $0x9c4] sm:$0xf0]  ;;  %v7508_v45 = vor.u32 %v8342_v34, %v7505_v23  ;;  %v7653_v7 = vld [vmem:[%s11951_s5 + $0xb38] sm:$0xf]  ;;  %v8372_v34 = vld [vmem:[%s11951_s5 + $0xb3c] sm:$0xf] }
 0x5b7   :  { %v7433_v41 = vor.u32 %v8329_v36, %v7432_v10  ;;  %v7655_v23 = vld [vmem:[%s11951_s5 + $0xb40] sm:$0xf0]  ;;  %v7654_v53 = vor.u32 %v8373_v47, %v7653_v7 }
 0x5b8   :  { %4437 = vmatpush.bf16.msrb.mxu3 %v7465_v3  ;;  %4450 = vmatpush.bf16.msrb.mxu2 %v7469_v51  ;;  %v8341_v3 = vld [vmem:[%s11951_s5 + $0xa2c] sm:$0xf0]  ;;  %v8340_v51 = vld [vmem:[%s11951_s5 + $0xa2c] sm:$0xf]  ;;  %v8358_v10 = vld [vmem:[%s11951_s5 + $0xac4] sm:$0xf]  ;;  %v7658_v30 = vor.u32 %v8372_v34, %v7655_v23 }
 0x5b9   :  { %v7496_v61 = vor.u32 %v8341_v3, %v7495_v48  ;;  %v7500_v33 = vor.u32 %v8340_v51, %v7497_v20  ;;  %v7647_v48 = vld [vmem:[%s11951_s5 + $0xb30] sm:$0xf0]  ;;  %v7587_v51 = vor.u32 %v8358_v10, %v7584_v49  ;;  %v7574_v20 = vld [vmem:[%s11951_s5 + $0xab0] sm:$0xf]  ;;  %v7621_v23 = vld [vmem:[%s11951_s5 + $0xaf8] sm:$0xf] }
 0x5ba   :  { %4558 = vmatpush.bf16.msrb.mxu0 %v7528_v21  ;;  %4571 = vmatpush.bf16.msra.mxu1 %v7532_v1  ;;  %v4776_v21 = vpack.c.b16 %v4762_v27, %v4762_v27  ;;  %v4777_v1 = vpack.c.b16 %v4763_v16, %v4763_v16 }
 0x5bc   :  { %4438 = vmatpush.bf16.msrb.mxu3 %v7457_v4  ;;  %4451 = vmatpush.bf16.msrb.mxu2 %v7461_v46  ;;  %v8363_v4 = vld [vmem:[%s11951_s5 + $0xae4] sm:$0xf0]  ;;  %v8362_v46 = vld [vmem:[%s11951_s5 + $0xae4] sm:$0xf]  ;;  %v4794_v12 = vsel %vm81_vm0, %v4776_v21, 0  ;;  %v4797_v17 = vsel %vm81_vm0, %v4777_v1, 0  ;;  %v7650_v1 = vor.u32 %v8370_v26, %v7647_v48 }
 0x5bd   :  { %v7599_v29 = vor.u32 %v8363_v4, %v7598_v40  ;;  %v7603_v0 = vor.u32 %v8362_v46, %v7600_v6  ;;  %v7639_v40 = vld [vmem:[%s11951_s5 + $0xb20] sm:$0xf0] }
 0x5be   :  { %4559 = vmatpush.bf16.msrb.mxu0 %v7520_v60  ;;  %4572 = vmatpush.bf16.msra.mxu1 %v7524_v9  ;;  %v3348_v38 = vpop.f32.mrf.mxu0  ;;  %v3361_v28 = vpop.f32.mrf.mxu1  ;;  %v7661_v60 = vld [vmem:[%s11951_s5 + $0xb48] sm:$0xf]  ;;  %v8375_v9 = vld [vmem:[%s11951_s5 + $0xb4c] sm:$0xf0]  ;;  %v7681_v4 = vld [vmem:[%s11951_s5 + $0xbc0] sm:$0x33] }
 0x5bf   :  { %v7662_v57 = vor.u32 %v8375_v9, %v7661_v60  ;;  %v7568_v60 = vld [vmem:[%s11951_s5 + $0xaa8] sm:$0xf0] }
 0x5c0   :  { %4439 = vmatpush.bf16.msrb.mxu3 %v7449_v55  ;;  %4452 = vmatpush.bf16.msrb.mxu2 %v7453_v22  ;;  %v7590_v55 = vld [vmem:[%s11951_s5 + $0xad0] sm:$0xf]  ;;  %v4466_v22 = vpack.c.bf16 %v4465_v18, %v4465_v18  ;;  %v8354_v18 = vld [vmem:[%s11951_s5 + $0xaa4] sm:$0xf] }
 0x5c2   :  { %4560 = vmatpush.bf16.msrb.mxu0 %v7512_v43  ;;  %4573 = vmatpush.bf16.msra.mxu1 %v7516_v8  ;;  %v7666_v43 = vor.u32 %v8374_v52, %v7663_v63  ;;  %v3226_v8 = vpop.f32.mrf.mxu3  ;;  %v3239_v31 = vpop.f32.mrf.mxu2  ;;  %v4884_v52 = vunpack.c.l.b16 %v7681_v4  ;;  %v4885_v63 = vunpack.c.h.b16 %v7681_v4  ;;  %v7789_v4 = vld [vmem:[%s11951_s5 + $0xc20] sm:$0xf0] }
 0x5c3   :  { %v3243_v50 = vadd.f32 %v3226_v8, %v11278_v44  ;;  %v3244_v11 = vadd.f32 %v3239_v31, %v11280_v13  ;;  %v7582_v44 = vld [vmem:[%s11951_s5 + $0xac0] sm:$0xf]  ;;  %v8359_v13 = vld [vmem:[%s11951_s5 + $0xac4] sm:$0xf0]  ;;  %v8352_v8 = vld [vmem:[%s11951_s5 + $0xa94] sm:$0xf] }
 0x5c4   :  { %4440 = vmatpush.bf16.msrb.mxu3 %v7441_v56  ;;  %4453 = vmatpush.bf16.msrb.mxu2 %v7445_v14  ;;  %v7591_v56 = vor.u32 %v8361_v24, %v7590_v55  ;;  %v7595_v14 = vor.u32 %v8360_v54, %v7592_v5  ;;  %v7583_v3 = vor.u32 %v8359_v13, %v7582_v44  ;;  %v7631_v55 = vld [vmem:[%s11951_s5 + $0xb10] sm:$0xf0]  ;;  %v7558_v54 = vld [vmem:[%s11951_s5 + $0xa90] sm:$0xf]  ;;  %v4585_v5 = vrot.slane %v9782_v59, 1 }
 0x5c5   :  { %v11450_v36 = vadd.f32 %v3361_v28, %v3244_v11  ;;  %v8355_v28 = vld [vmem:[%s11951_s5 + $0xaa4] sm:$0xf0]  ;;  %v7571_v24 = vor.u32 %v8354_v18, %v7568_v60  ;;  %v7560_v31 = vld [vmem:[%s11951_s5 + $0xa98] sm:$0xf0]  ;;  %v4898_v47 = vpack.c.b16 %v4884_v52, %v4884_v52  ;;  %v4899_v34 = vpack.c.b16 %v4885_v63, %v4885_v63  ;;  %v7623_v13 = vld [vmem:[%s11951_s5 + $0xb00] sm:$0xf0] }
 0x5c6   :  { %4561 = vmatpush.bf16.msrb.mxu0 %v7504_v62  ;;  %4574 = vmatpush.bf16.msra.mxu1 %v7508_v45  ;;  %v11448_v62 = vadd.f32 %v3348_v38, %v3243_v50  ;;  %v3350_v27 = vpop.f32.mrf.mxu0  ;;  %v3363_v16 = vpop.f32.mrf.mxu1  ;;  %v7645_v45 = vld [vmem:[%s11951_s5 + $0xb28] sm:$0xf]  ;;  %v7566_v38 = vld [vmem:[%s11951_s5 + $0xaa0] sm:$0xf]  ;;  %v8364_v44 = vld [vmem:[%s11951_s5 + $0xafc] sm:$0xf]  ;;  %v7563_v49 = vor.u32 %v8352_v8, %v7560_v31 }
 0x5c7   :  { %v7646_v21 = vor.u32 %v8371_v15, %v7645_v45  ;;  %v4705_v45 = vrot.slane %v9755_v32, 3  ;;  %v4916_v15 = vsel %vm81_vm0, %v4898_v47, 0  ;;  %v4919_v26 = vsel %vm81_vm0, %v4899_v34, 0  ;;  %v8385_v18 = vld [vmem:[%s11951_s5 + $0xba4] sm:$0xf0] }
 0x5c8   :  { %4441 = vmatpush.bf16.msrb.mxu3 %v7433_v41  ;;  %4454 = vmatpush.bf16.msrb.mxu2 %v7437_v19  ;;  %v8357_v41 = vld [vmem:[%s11951_s5 + $0xab4] sm:$0xf0]  ;;  %v8356_v19 = vld [vmem:[%s11951_s5 + $0xab4] sm:$0xf]  ;;  %v8384_v60 = vld [vmem:[%s11951_s5 + $0xba4] sm:$0xf] }
 0x5c9   :  { %v7575_v46 = vor.u32 %v8357_v41, %v7574_v20  ;;  %v7579_v6 = vor.u32 %v8356_v19, %v7576_v42  ;;  %v8387_v20 = vld [vmem:[%s11951_s5 + $0xbb4] sm:$0xf0]  ;;  %v8386_v41 = vld [vmem:[%s11951_s5 + $0xbb4] sm:$0xf]  ;;  %v7726_v19 = vld [vmem:[%s11951_s5 + $0xbb8] sm:$0xf0] }
 0x5ca   :  { %4562 = vmatpush.bf16.msrb.mxu0 %v7496_v61  ;;  %4575 = vmatpush.bf16.msra.mxu1 %v7500_v33  ;;  %v3228_v25 = vpop.f32.mrf.mxu3  ;;  %v8369_v61 = vld [vmem:[%s11951_s5 + $0xb1c] sm:$0xf0]  ;;  %v8368_v33 = vld [vmem:[%s11951_s5 + $0xb1c] sm:$0xf]  ;;  %v7779_v63 = vld [vmem:[%s11951_s5 + $0xc08] sm:$0xf] }
 0x5cb   :  { %7478 = vmatmul.msk.bf16.vlgmr.msrb.gmra.mxu3 %vm1525_vm4, %v4345_v2  ;;  %7479 = vmatmul.msk.bf16.vlgmr.msrb.gmra.mxu2 %vm1525_vm4, %v4345_v2  ;;  %v7642_v2 = vor.u32 %v8368_v33, %v7639_v40  ;;  %v7787_v25 = vld [vmem:[%s11951_s5 + $0xc18] sm:$0xf]  ;;  %v8398_v40 = vld [vmem:[%s11951_s5 + $0xc1c] sm:$0xf] }
 0x5cc   :  { %4678 = vmatpush.bf16.msra.mxu3 %v4672_v58  ;;  %4691 = vmatpush.bf16.msra.mxu2 %v4675_v35  ;;  %v3241_v58 = vpop.f32.mrf.mxu2  ;;  %v7637_v35 = vld [vmem:[%s11951_s5 + $0xb18] sm:$0xf] }
 0x5cd   :  { %7541 = vmatmul.msk.bf16.vlgmr.msrb.gmra.mxu0 %vm1525_vm4, %v4466_v22  ;;  %7542 = vmatmul.msk.bf16.vlgmr.msra.gmra.mxu1 %vm1525_vm4, %v4466_v22  ;;  %v7638_v9 = vor.u32 %v8369_v61, %v7637_v35  ;;  %v7567_v22 = vor.u32 %v8355_v28, %v7566_v38  ;;  %v8399_v58 = vld [vmem:[%s11951_s5 + $0xc1c] sm:$0xf0]  ;;  %v7771_v34 = vld [vmem:[%s11951_s5 + $0xbf8] sm:$0xf] }
 0x5ce   :  { %4800 = vmatpush.bf16.msra.mxu0 %v4794_v12  ;;  %4813 = vmatpush.bf16.msrb.mxu1 %v4797_v17  ;;  %v7629_v12 = vld [vmem:[%s11951_s5 + $0xb08] sm:$0xf]  ;;  %v8367_v17 = vld [vmem:[%s11951_s5 + $0xb0c] sm:$0xf0]  ;;  %v7716_v38 = vld [vmem:[%s11951_s5 + $0xba0] sm:$0xf] }
 0x5d0   :  { %4679 = vmatpush.bf16.msra.mxu3 %v7599_v29  ;;  %4692 = vmatpush.bf16.msra.mxu2 %v7603_v0  ;;  %v7744_v29 = vld [vmem:[%s11951_s5 + $0xc28] sm:$0x33] }
 0x5d1   :  { %v8366_v0 = vld [vmem:[%s11951_s5 + $0xb0c] sm:$0xf]  ;;  %v5006_v7 = vunpack.c.l.b16 %v7744_v29  ;;  %v5007_v50 = vunpack.c.h.b16 %v7744_v29 }
 0x5d2   :  { %4801 = vmatpush.bf16.msra.mxu0 %v7662_v57  ;;  %4814 = vmatpush.bf16.msrb.mxu1 %v7666_v43  ;;  %v7630_v57 = vor.u32 %v8367_v17, %v7629_v12  ;;  %v8353_v43 = vld [vmem:[%s11951_s5 + $0xa94] sm:$0xf0]  ;;  %v7634_v11 = vor.u32 %v8366_v0, %v7631_v55  ;;  %v7792_v12 = vor.u32 %v8398_v40, %v7789_v4  ;;  %v8397_v55 = vld [vmem:[%s11951_s5 + $0xc0c] sm:$0xf0] }
 0x5d3   :  { %v7559_v10 = vor.u32 %v8353_v43, %v7558_v54  ;;  %v5020_v27 = vpack.c.b16 %v5006_v7, %v5006_v7  ;;  %v5021_v16 = vpack.c.b16 %v5007_v50, %v5007_v50  ;;  %v7717_v54 = vor.u32 %v8385_v18, %v7716_v38  ;;  %v7710_v43 = vld [vmem:[%s11951_s5 + $0xb98] sm:$0xf0]  ;;  %v7757_v38 = vld [vmem:[%s11951_s5 + $0xbe0] sm:$0xf0] }
 0x5d4   :  { %4680 = vmatpush.bf16.msra.mxu3 %v7591_v56  ;;  %4693 = vmatpush.bf16.msra.mxu2 %v7595_v14  ;;  %v4583_v56 = vrot.slane %v9755_v32, 2  ;;  %v8365_v14 = vld [vmem:[%s11951_s5 + $0xafc] sm:$0xf0]  ;;  %v7780_v7 = vor.u32 %v8397_v55, %v7779_v63 }
 0x5d5   :  { %v7622_v48 = vor.u32 %v8365_v14, %v7621_v23  ;;  %v5038_v61 = vsel %vm81_vm0, %v5020_v27, 0  ;;  %v5041_v33 = vsel %vm81_vm0, %v5021_v16, 0  ;;  %v8395_v23 = vld [vmem:[%s11951_s5 + $0xbfc] sm:$0xf0]  ;;  %v7773_v14 = vld [vmem:[%s11951_s5 + $0xc00] sm:$0xf0] }
 0x5d6   :  { %4802 = vmatpush.bf16.msra.mxu0 %v7654_v53  ;;  %4815 = vmatpush.bf16.msrb.mxu1 %v7658_v30  ;;  %v4707_v53 = vrot.slane %v9782_v59, 2  ;;  %v4587_v30 = vsel %vm1425_vm3, %v4583_v56, %v4585_v5  ;;  %v8394_v56 = vld [vmem:[%s11951_s5 + $0xbfc] sm:$0xf]  ;;  %v7772_v27 = vor.u32 %v8395_v23, %v7771_v34  ;;  %v4949_v34 = vrot.slane %v9755_v32, 5 }
 0x5d7   :  { %v4588_v35 = vpack.c.bf16 %v4587_v30, %v4587_v30  ;;  %v7702_v30 = vld [vmem:[%s11951_s5 + $0xb88] sm:$0xf0]  ;;  %v7776_v16 = vor.u32 %v8394_v56, %v7773_v14 }
 0x5d8   :  { %4681 = vmatpush.bf16.msra.mxu3 %v7583_v3  ;;  %4694 = vmatpush.bf16.msra.mxu2 %v7587_v51  ;;  %v7626_v3 = vor.u32 %v8364_v44, %v7623_v13  ;;  %v7724_v51 = vld [vmem:[%s11951_s5 + $0xbb0] sm:$0xf] }
 0x5da   :  { %4803 = vmatpush.bf16.msra.mxu0 %v7646_v21  ;;  %4816 = vmatpush.bf16.msrb.mxu1 %v7650_v1  ;;  %v3590_v42 = vpop.f32.mrf.mxu0  ;;  %v3603_v21 = vpop.f32.mrf.mxu1  ;;  %v4709_v1 = vsel %vm1425_vm3, %v4705_v45, %v4707_v53  ;;  %v8380_v53 = vld [vmem:[%s11951_s5 + $0xb84] sm:$0xf] }
 0x5db   :  { %v4710_v28 = vpack.c.bf16 %v4709_v1, %v4709_v1  ;;  %v8378_v1 = vld [vmem:[%s11951_s5 + $0xb74] sm:$0xf] }
 0x5dc   :  { %4682 = vmatpush.bf16.msra.mxu3 %v7575_v46  ;;  %4695 = vmatpush.bf16.msra.mxu2 %v7579_v6  ;;  %v7725_v46 = vor.u32 %v8387_v20, %v7724_v51  ;;  %v7729_v6 = vor.u32 %v8386_v41, %v7726_v19  ;;  %v7765_v51 = vld [vmem:[%s11951_s5 + $0xbf0] sm:$0xf0]  ;;  %v7705_v19 = vor.u32 %v8380_v53, %v7702_v30 }
 0x5dd   :  { %v7807_v20 = vld [vmem:[%s11951_s5 + $0xc90] sm:$0x33] }
 0x5de   :  { %4804 = vmatpush.bf16.msra.mxu0 %v7638_v9  ;;  %4817 = vmatpush.bf16.msrb.mxu1 %v7642_v2  ;;  %v7718_v9 = vld [vmem:[%s11951_s5 + $0xba8] sm:$0xf0]  ;;  %v7788_v2 = vor.u32 %v8399_v58, %v7787_v25  ;;  %v3469_v17 = vpop.f32.mrf.mxu3  ;;  %v3482_v52 = vpop.f32.mrf.mxu2  ;;  %v7694_v25 = vld [vmem:[%s11951_s5 + $0xb78] sm:$0xf0]  ;;  %v5128_v40 = vunpack.c.l.b16 %v7807_v20  ;;  %v5129_v4 = vunpack.c.h.b16 %v7807_v20 }
 0x5df   :  { %v3486_v29 = vadd.f32 %v3469_v17, %v11448_v62  ;;  %v3487_v0 = vadd.f32 %v3482_v52, %v11450_v36  ;;  %v7721_v5 = vor.u32 %v8384_v60, %v7718_v9  ;;  %v7708_v62 = vld [vmem:[%s11951_s5 + $0xb90] sm:$0xf]  ;;  %v8383_v36 = vld [vmem:[%s11951_s5 + $0xb94] sm:$0xf0]  ;;  %v7697_v18 = vor.u32 %v8378_v1, %v7694_v25  ;;  %v7684_v60 = vld [vmem:[%s11951_s5 + $0xb60] sm:$0xf] }
 0x5e0   :  { %4683 = vmatpush.bf16.msra.mxu3 %v7567_v22  ;;  %4696 = vmatpush.bf16.msra.mxu2 %v7571_v24  ;;  %v8396_v22 = vld [vmem:[%s11951_s5 + $0xc0c] sm:$0xf]  ;;  %v7781_v24 = vld [vmem:[%s11951_s5 + $0xc10] sm:$0xf0]  ;;  %v7709_v44 = vor.u32 %v8383_v36, %v7708_v62  ;;  %v4829_v9 = vrot.slane %v9782_v59, 3  ;;  %v5142_v55 = vpack.c.b16 %v5128_v40, %v5128_v40 }
 0x5e1   :  { %v11618_v8 = vadd.f32 %v3590_v42, %v3486_v29  ;;  %v11620_v31 = vadd.f32 %v3603_v21, %v3487_v0  ;;  %v7784_v50 = vor.u32 %v8396_v22, %v7781_v24  ;;  %v7692_v42 = vld [vmem:[%s11951_s5 + $0xb70] sm:$0xf]  ;;  %v8379_v21 = vld [vmem:[%s11951_s5 + $0xb74] sm:$0xf0]  ;;  %v8376_v17 = vld [vmem:[%s11951_s5 + $0xb64] sm:$0xf]  ;;  %v5143_v22 = vpack.c.b16 %v5129_v4, %v5129_v4 }
 0x5e2   :  { %4805 = vmatpush.bf16.msra.mxu0 %v7630_v57  ;;  %4818 = vmatpush.bf16.msrb.mxu1 %v7634_v11  ;;  %v8382_v57 = vld [vmem:[%s11951_s5 + $0xb94] sm:$0xf]  ;;  %v3592_v11 = vpop.f32.mrf.mxu0  ;;  %v3605_v47 = vpop.f32.mrf.mxu1  ;;  %v7686_v52 = vld [vmem:[%s11951_s5 + $0xb68] sm:$0xf0]  ;;  %v7747_v24 = vld [vmem:[%s11951_s5 + $0xbc8] sm:$0xf] }
 0x5e3   :  { %v7713_v13 = vor.u32 %v8382_v57, %v7710_v43  ;;  %v8388_v62 = vld [vmem:[%s11951_s5 + $0xbcc] sm:$0xf]  ;;  %v7749_v36 = vld [vmem:[%s11951_s5 + $0xbd0] sm:$0xf0]  ;;  %v7689_v43 = vor.u32 %v8376_v17, %v7686_v52  ;;  %v5160_v23 = vsel %vm81_vm0, %v5142_v55, 0  ;;  %v5163_v56 = vsel %vm81_vm0, %v5143_v22, 0 }
 0x5e4   :  { %4684 = vmatpush.bf16.msra.mxu3 %v7559_v10  ;;  %4697 = vmatpush.bf16.msra.mxu2 %v7563_v49  ;;  %v7700_v10 = vld [vmem:[%s11951_s5 + $0xb80] sm:$0xf]  ;;  %v8381_v49 = vld [vmem:[%s11951_s5 + $0xb84] sm:$0xf0]  ;;  %v7844_v1 = vld [vmem:[%s11951_s5 + $0xc78] sm:$0xf0] }
 0x5e5   :  { %v7701_v41 = vor.u32 %v8381_v49, %v7700_v10  ;;  %v7852_v10 = vld [vmem:[%s11951_s5 + $0xc88] sm:$0xf0]  ;;  %v8419_v55 = vld [vmem:[%s11951_s5 + $0xccc] sm:$0xf0] }
 0x5e6   :  { %4806 = vmatpush.bf16.msra.mxu0 %v7622_v48  ;;  %4819 = vmatpush.bf16.msrb.mxu1 %v7626_v3  ;;  %v3471_v45 = vpop.f32.mrf.mxu3  ;;  %v8393_v48 = vld [vmem:[%s11951_s5 + $0xbec] sm:$0xf0]  ;;  %v8392_v3 = vld [vmem:[%s11951_s5 + $0xbec] sm:$0xf] }
 0x5e7   :  { %7604 = vmatmul.msk.bf16.vlgmr.msra.gmra.mxu3 %vm1525_vm4, %v4588_v35  ;;  %7605 = vmatmul.msk.bf16.vlgmr.msra.gmra.mxu2 %vm1525_vm4, %v4588_v35  ;;  %v7768_v35 = vor.u32 %v8392_v3, %v7765_v51  ;;  %v7915_v3 = vld [vmem:[%s11951_s5 + $0xcf0] sm:$0xf0]  ;;  %v8418_v22 = vld [vmem:[%s11951_s5 + $0xccc] sm:$0xf] }
 0x5e8   :  { %4922 = vmatpush.bf16.msrb.mxu3 %v4916_v15  ;;  %4935 = vmatpush.bf16.msrb.mxu2 %v4919_v26  ;;  %v3484_v15 = vpop.f32.mrf.mxu2  ;;  %v7763_v26 = vld [vmem:[%s11951_s5 + $0xbe8] sm:$0xf] }
 0x5e9   :  { %7667 = vmatmul.msk.bf16.vlgmr.msra.gmra.mxu0 %vm1525_vm4, %v4710_v28  ;;  %7668 = vmatmul.msk.bf16.vlgmr.msrb.gmra.mxu1 %vm1525_vm4, %v4710_v28  ;;  %v7764_v58 = vor.u32 %v8393_v48, %v7763_v26  ;;  %v7693_v28 = vor.u32 %v8379_v21, %v7692_v42  ;;  %v8422_v48 = vld [vmem:[%s11951_s5 + $0xcec] sm:$0xf]  ;;  %v8409_v42 = vld [vmem:[%s11951_s5 + $0xc74] sm:$0xf0]  ;;  %v8408_v21 = vld [vmem:[%s11951_s5 + $0xc74] sm:$0xf] }
 0x5ea   :  { %5044 = vmatpush.bf16.msrb.mxu0 %v5038_v61  ;;  %5057 = vmatpush.bf16.msra.mxu1 %v5041_v33  ;;  %v7755_v61 = vld [vmem:[%s11951_s5 + $0xbd8] sm:$0xf]  ;;  %v8391_v33 = vld [vmem:[%s11951_s5 + $0xbdc] sm:$0xf0] }
 0x5ec   :  { %4923 = vmatpush.bf16.msrb.mxu3 %v7725_v46  ;;  %4936 = vmatpush.bf16.msrb.mxu2 %v7729_v6  ;;  %v7870_v46 = vld [vmem:[%s11951_s5 + $0xcf8] sm:$0x33] }
 0x5ed   :  { %v8390_v6 = vld [vmem:[%s11951_s5 + $0xbdc] sm:$0xf]  ;;  %v5250_v63 = vunpack.c.l.b16 %v7870_v46  ;;  %v5251_v29 = vunpack.c.h.b16 %v7870_v46  ;;  %v8421_v46 = vld [vmem:[%s11951_s5 + $0xcdc] sm:$0xf0] }
 0x5ee   :  { %5045 = vmatpush.bf16.msrb.mxu0 %v7788_v2  ;;  %5058 = vmatpush.bf16.msra.mxu1 %v7792_v12  ;;  %v7756_v2 = vor.u32 %v8391_v33, %v7755_v61  ;;  %v8377_v12 = vld [vmem:[%s11951_s5 + $0xb64] sm:$0xf0]  ;;  %v7760_v0 = vor.u32 %v8390_v6, %v7757_v38  ;;  %v7905_v33 = vld [vmem:[%s11951_s5 + $0xcd8] sm:$0xf]  ;;  %v8420_v6 = vld [vmem:[%s11951_s5 + $0xcdc] sm:$0xf] }
 0x5ef   :  { %v7685_v57 = vor.u32 %v8377_v12, %v7684_v60  ;;  %v5264_v11 = vpack.c.b16 %v5250_v63, %v5250_v63  ;;  %v5265_v47 = vpack.c.b16 %v5251_v29, %v5251_v29  ;;  %v7907_v38 = vld [vmem:[%s11951_s5 + $0xce0] sm:$0xf0]  ;;  %v7906_v17 = vor.u32 %v8421_v46, %v7905_v33 }
 0x5f0   :  { %4924 = vmatpush.bf16.msrb.mxu3 %v7717_v54  ;;  %4937 = vmatpush.bf16.msrb.mxu2 %v7721_v5  ;;  %v4827_v54 = vrot.slane %v9755_v32, 4  ;;  %v8389_v5 = vld [vmem:[%s11951_s5 + $0xbcc] sm:$0xf0]  ;;  %v8410_v32 = vld [vmem:[%s11951_s5 + $0xc84] sm:$0xf]  ;;  %v7910_v52 = vor.u32 %v8420_v6, %v7907_v38  ;;  %v5076_v6 = vpack.c.bf16 %v9839_v39, %v9839_v39  ;;  %v5198_v38 = vpack.c.bf16 %v9842_v37, %v9842_v37 }
 0x5f1   :  { %v7748_v14 = vor.u32 %v8389_v5, %v7747_v24  ;;  %v5282_v15 = vsel %vm81_vm0, %v5264_v11, 0  ;;  %v5285_v26 = vsel %vm81_vm0, %v5265_v47, 0  ;;  %v7855_v20 = vor.u32 %v8410_v32, %v7852_v10  ;;  %v8406_v60 = vld [vmem:[%s11951_s5 + $0xc64] sm:$0xf]  ;;  %v7899_v24 = vld [vmem:[%s11951_s5 + $0xcd0] sm:$0xf0] }
 0x5f2   :  { %5046 = vmatpush.bf16.msrb.mxu0 %v7780_v7  ;;  %5059 = vmatpush.bf16.msra.mxu1 %v7784_v50  ;;  %v4951_v7 = vrot.slane %v9782_v59, 4  ;;  %v4831_v50 = vsel %vm1425_vm3, %v4827_v54, %v4829_v9  ;;  %v8411_v59 = vld [vmem:[%s11951_s5 + $0xc84] sm:$0xf0]  ;;  %v7836_v9 = vld [vmem:[%s11951_s5 + $0xc68] sm:$0xf0] }
 0x5f3   :  { %v4832_v45 = vpack.c.bf16 %v4831_v50, %v4831_v50  ;;  %v7839_v5 = vor.u32 %v8406_v60, %v7836_v9  ;;  %v7902_v50 = vor.u32 %v8418_v22, %v7899_v24  ;;  %v8403_v32 = vld [vmem:[%s11951_s5 + $0xc44] sm:$0xf0]  ;;  %v8402_v10 = vld [vmem:[%s11951_s5 + $0xc44] sm:$0xf] }
 0x5f4   :  { %4925 = vmatpush.bf16.msrb.mxu3 %v7709_v44  ;;  %4938 = vmatpush.bf16.msrb.mxu2 %v7713_v13  ;;  %v7752_v44 = vor.u32 %v8388_v62, %v7749_v36  ;;  %v7850_v13 = vld [vmem:[%s11951_s5 + $0xc80] sm:$0xf]  ;;  %v4953_v30 = vsel %vm1425_vm3, %v4949_v34, %v4951_v7  ;;  %v7826_v62 = vld [vmem:[%s11951_s5 + $0xc50] sm:$0xf]  ;;  %v8405_v36 = vld [vmem:[%s11951_s5 + $0xc54] sm:$0xf0] }
 0x5f5   :  { %v7851_v51 = vor.u32 %v8411_v59, %v7850_v13  ;;  %v7889_v34 = vld [vmem:[%s11951_s5 + $0xcb8] sm:$0xf]  ;;  %v7818_v59 = vld [vmem:[%s11951_s5 + $0xc40] sm:$0xf] }
 0x5f6   :  { %5047 = vmatpush.bf16.msrb.mxu0 %v7772_v27  ;;  %5060 = vmatpush.bf16.msra.mxu1 %v7776_v16  ;;  %v3834_v49 = vpop.f32.mrf.mxu0  ;;  %v3847_v53 = vpop.f32.mrf.mxu1  ;;  %v7913_v27 = vld [vmem:[%s11951_s5 + $0xce8] sm:$0xf]  ;;  %v8423_v16 = vld [vmem:[%s11951_s5 + $0xcec] sm:$0xf0] }
 0x5f7   :  { %v7914_v25 = vor.u32 %v8423_v16, %v7913_v27  ;;  %v7881_v27 = vld [vmem:[%s11951_s5 + $0xca8] sm:$0xf]  ;;  %v8415_v16 = vld [vmem:[%s11951_s5 + $0xcac] sm:$0xf0] }
 0x5f8   :  { %4926 = vmatpush.bf16.msrb.mxu3 %v7701_v41  ;;  %4939 = vmatpush.bf16.msrb.mxu2 %v7705_v19  ;;  %v7842_v41 = vld [vmem:[%s11951_s5 + $0xc70] sm:$0xf]  ;;  %v4954_v19 = vpack.c.bf16 %v4953_v30, %v4953_v30 }
 0x5fa   :  { %5048 = vmatpush.bf16.msrb.mxu0 %v7764_v58  ;;  %5061 = vmatpush.bf16.msra.mxu1 %v7768_v35  ;;  %v7918_v58 = vor.u32 %v8422_v48, %v7915_v3  ;;  %v3712_v35 = vpop.f32.mrf.mxu3  ;;  %v3725_v61 = vpop.f32.mrf.mxu2  ;;  %v7810_v3 = vld [vmem:[%s11951_s5 + $0xc30] sm:$0xf] }
 0x5fb   :  { %v3729_v40 = vadd.f32 %v3712_v35, %v11618_v8  ;;  %v3730_v4 = vadd.f32 %v3725_v61, %v11620_v31  ;;  %v7834_v8 = vld [vmem:[%s11951_s5 + $0xc60] sm:$0xf]  ;;  %v8407_v31 = vld [vmem:[%s11951_s5 + $0xc64] sm:$0xf0] }
 0x5fc   :  { %4927 = vmatpush.bf16.msrb.mxu3 %v7693_v28  ;;  %4940 = vmatpush.bf16.msrb.mxu2 %v7697_v18  ;;  %v7843_v28 = vor.u32 %v8409_v42, %v7842_v41  ;;  %v7847_v18 = vor.u32 %v8408_v21, %v7844_v1  ;;  %v7835_v54 = vor.u32 %v8407_v31, %v7834_v8  ;;  %v7812_v41 = vld [vmem:[%s11951_s5 + $0xc38] sm:$0xf0]  ;;  %v7873_v21 = vld [vmem:[%s11951_s5 + $0xc98] sm:$0xf]  ;;  %v8413_v1 = vld [vmem:[%s11951_s5 + $0xc9c] sm:$0xf0] }
 0x5fd   :  { %v11790_v12 = vadd.f32 %v3847_v53, %v3730_v4  ;;  %v7874_v33 = vor.u32 %v8413_v1, %v7873_v21 }
 0x5fe   :  { %5049 = vmatpush.bf16.msrb.mxu0 %v7756_v2  ;;  %5062 = vmatpush.bf16.msra.mxu1 %v7760_v0  ;;  %v11788_v2 = vadd.f32 %v3834_v49, %v3729_v40  ;;  %v3836_v63 = vpop.f32.mrf.mxu0  ;;  %v3849_v29 = vpop.f32.mrf.mxu1  ;;  %v7897_v0 = vld [vmem:[%s11951_s5 + $0xcc8] sm:$0xf]  ;;  %v7820_v49 = vld [vmem:[%s11951_s5 + $0xc48] sm:$0xf0] }
 0x5ff   :  { %v7898_v7 = vor.u32 %v8419_v55, %v7897_v0  ;;  %v7823_v48 = vor.u32 %v8402_v10, %v7820_v49  ;;  %v8431_v10 = vld [vmem:[%s11953_s7 + $0x38] sm:$0xff] }
 0x600   :  { %4928 = vmatpush.bf16.msrb.mxu3 %v7685_v57  ;;  %4941 = vmatpush.bf16.msrb.mxu2 %v7689_v43  ;;  %v8404_v57 = vld [vmem:[%s11951_s5 + $0xc54] sm:$0xf]  ;;  %v7828_v43 = vld [vmem:[%s11951_s5 + $0xc58] sm:$0xf0] }
 0x601   :  { %v7831_v13 = vor.u32 %v8404_v57, %v7828_v43  ;;  %v8439_v49 = vld [vmem:[%s11953_s7 + $0x78] sm:$0xff] }
 0x602   :  { %5050 = vmatpush.bf16.msrb.mxu0 %v7748_v14  ;;  %5063 = vmatpush.bf16.msra.mxu1 %v7752_v44  ;;  %v3714_v11 = vpop.f32.mrf.mxu3  ;;  %v3727_v47 = vpop.f32.mrf.mxu2  ;;  %v7891_v14 = vld [vmem:[%s11951_s5 + $0xcc0] sm:$0xf0]  ;;  %v7827_v44 = vor.u32 %v8405_v36, %v7826_v62 }
 0x603   :  { %7730 = vmatmul.msk.bf16.vlgmr.msrb.gmra.mxu3 %vm1525_vm4, %v4832_v45  ;;  %7731 = vmatmul.msk.bf16.vlgmr.msrb.gmra.mxu2 %vm1525_vm4, %v4832_v45  ;;  %v8414_v45 = vld [vmem:[%s11951_s5 + $0xcac] sm:$0xf] }
 0x604   :  { %5166 = vmatpush.bf16.msra.mxu3 %v5160_v23  ;;  %5179 = vmatpush.bf16.msra.mxu2 %v5163_v56  ;;  %v8417_v23 = vld [vmem:[%s11951_s5 + $0xcbc] sm:$0xf0]  ;;  %v8416_v56 = vld [vmem:[%s11951_s5 + $0xcbc] sm:$0xf] }
 0x605   :  { %7793 = vmatmul.msk.bf16.vlgmr.msrb.gmra.mxu0 %vm1525_vm4, %v4954_v19  ;;  %7794 = vmatmul.msk.bf16.vlgmr.msra.gmra.mxu1 %vm1525_vm4, %v4954_v19  ;;  %v7890_v53 = vor.u32 %v8417_v23, %v7889_v34  ;;  %v7894_v30 = vor.u32 %v8416_v56, %v7891_v14  ;;  %v7882_v19 = vor.u32 %v8415_v16, %v7881_v27  ;;  %v8430_v27 = vld [vmem:[%s11953_s7 + $0x30] sm:$0xff] }
 0x606   :  { %5288 = vmatpush.bf16.msra.mxu0 %v5282_v15  ;;  %5301 = vmatpush.bf16.msrb.mxu1 %v5285_v26  ;;  %v7883_v15 = vld [vmem:[%s11951_s5 + $0xcb0] sm:$0xf0]  ;;  %v7819_v26 = vor.u32 %v8403_v32, %v7818_v59 }
 0x607   :  { %v7886_v42 = vor.u32 %v8414_v45, %v7883_v15  ;;  %v8438_v16 = vld [vmem:[%s11953_s7 + $0x70] sm:$0xff] }
 0x608   :  { %5167 = vmatpush.bf16.msra.mxu3 %v7851_v51  ;;  %5180 = vmatpush.bf16.msra.mxu2 %v7855_v20  ;;  %v8401_v51 = vld [vmem:[%s11951_s5 + $0xc34] sm:$0xf0]  ;;  %v8400_v20 = vld [vmem:[%s11951_s5 + $0xc34] sm:$0xf] }
 0x609   :  { %v7811_v35 = vor.u32 %v8401_v51, %v7810_v3  ;;  %v7815_v61 = vor.u32 %v8400_v20, %v7812_v41  ;;  %v8428_v20 = vld [vmem:[%s11953_s7 + $0x20] sm:$0xff] }
 0x60a   :  { %5289 = vmatpush.bf16.msra.mxu0 %v7914_v25  ;;  %5302 = vmatpush.bf16.msrb.mxu1 %v7918_v58  ;;  %v8412_v25 = vld [vmem:[%s11951_s5 + $0xc9c] sm:$0xf]  ;;  %v7875_v58 = vld [vmem:[%s11951_s5 + $0xca0] sm:$0xf0] }
 0x60b   :  { %v7878_v40 = vor.u32 %v8412_v25, %v7875_v58  ;;  %v8436_v41 = vld [vmem:[%s11953_s7 + $0x60] sm:$0xff]  ;;  %v8426_v25 = vld [vmem:[%s11953_s7 + $0x10] sm:$0xff] }
 0x60c   :  { %5168 = vmatpush.bf16.msra.mxu3 %v7843_v28  ;;  %5181 = vmatpush.bf16.msra.mxu2 %v7847_v18  ;;  %v8434_v58 = vld [vmem:[%s11953_s7 + $0x50] sm:$0xff] }
 0x60e   :  { %5290 = vmatpush.bf16.msra.mxu0 %v7906_v17  ;;  %5303 = vmatpush.bf16.msrb.mxu1 %v7910_v52 }
 0x610   :  { %5169 = vmatpush.bf16.msra.mxu3 %v7835_v54  ;;  %5182 = vmatpush.bf16.msra.mxu2 %v7839_v5 }
 0x612   :  { %5291 = vmatpush.bf16.msra.mxu0 %v7898_v7  ;;  %5304 = vmatpush.bf16.msrb.mxu1 %v7902_v50  ;;  %v4078_v4 = vpop.f32.mrf.mxu0  ;;  %v4091_v46 = vpop.f32.mrf.mxu1 }
 0x614   :  { %5170 = vmatpush.bf16.msra.mxu3 %v7827_v44  ;;  %5183 = vmatpush.bf16.msra.mxu2 %v7831_v13 }
 0x616   :  { %5292 = vmatpush.bf16.msra.mxu0 %v7890_v53  ;;  %5305 = vmatpush.bf16.msrb.mxu1 %v7894_v30  ;;  %v3956_v28 = vpop.f32.mrf.mxu3  ;;  %v3969_v18 = vpop.f32.mrf.mxu2 }
 0x617   :  { %v3973_v8 = vadd.f32 %v3956_v28, %v11788_v2  ;;  %v3974_v31 = vadd.f32 %v3969_v18, %v11790_v12 }
 0x618   :  { %5171 = vmatpush.bf16.msra.mxu3 %v7819_v26  ;;  %5184 = vmatpush.bf16.msra.mxu2 %v7823_v48  ;;  %v8429_v26 = vld [vmem:[%s11953_s7 + $0x28] sm:$0xff] }
 0x619   :  { %v4095_v39 = vadd.f32 %v4078_v4, %v3973_v8  ;;  %v4096_v60 = vadd.f32 %v4091_v46, %v3974_v31  ;;  %v8437_v48 = vld [vmem:[%s11953_s7 + $0x68] sm:$0xff]  ;;  %v8424_v4 = vld [vmem:[%s11953_s7] sm:$0xff] }
 0x61a   :  { %5293 = vmatpush.bf16.msra.mxu0 %v7882_v19  ;;  %5306 = vmatpush.bf16.msrb.mxu1 %v7886_v42  ;;  %v4080_v9 = vpop.f32.mrf.mxu0  ;;  %v4093_v17 = vpop.f32.mrf.mxu1  ;;  %v8427_v19 = vld [vmem:[%s11953_s7 + $0x18] sm:$0xff]  ;;  %v8432_v46 = vld [vmem:[%s11953_s7 + $0x40] sm:$0xff] }
 0x61b   :  { %v8435_v42 = vld [vmem:[%s11953_s7 + $0x58] sm:$0xff] }
 0x61c   :  { %5172 = vmatpush.bf16.msra.mxu3 %v7811_v35  ;;  %5185 = vmatpush.bf16.msra.mxu2 %v7815_v61 }
 0x61e   :  { %5294 = vmatpush.bf16.msra.mxu0 %v7874_v33  ;;  %5307 = vmatpush.bf16.msrb.mxu1 %v7878_v40  ;;  %v3958_v52 = vpop.f32.mrf.mxu3  ;;  %v3971_v63 = vpop.f32.mrf.mxu2  ;;  %v8425_v33 = vld [vmem:[%s11953_s7 + $0x8] sm:$0xff] }
 0x61f   :  { %7856 = vmatmul.msk.bf16.vlgmr.msra.gmra.mxu3 %vm1525_vm4, %v5076_v6  ;;  %7857 = vmatmul.msk.bf16.vlgmr.msra.gmra.mxu2 %vm1525_vm4, %v5076_v6  ;;  %v8433_v40 = vld [vmem:[%s11953_s7 + $0x48] sm:$0xff] }
 0x620   :  { %5459 = vmatpush.bf16.msrb.mxu3 %v8431_v10  ;;  %5472 = vmatpush.bf16.msrb.mxu2 %v8439_v49 }
 0x621   :  { %7919 = vmatmul.msk.bf16.vlgmr.msra.gmra.mxu0 %vm1525_vm4, %v5198_v38  ;;  %7920 = vmatmul.msk.bf16.vlgmr.msrb.gmra.mxu1 %vm1525_vm4, %v5198_v38 }
 0x624   :  { %5460 = vmatpush.bf16.msrb.mxu3 %v8430_v27  ;;  %5473 = vmatpush.bf16.msrb.mxu2 %v8438_v16 }
 0x628   :  { %5461 = vmatpush.bf16.msrb.mxu3 %v8429_v26  ;;  %5474 = vmatpush.bf16.msrb.mxu2 %v8437_v48 }
 0x62c   :  { %5462 = vmatpush.bf16.msrb.mxu3 %v8428_v20  ;;  %5475 = vmatpush.bf16.msrb.mxu2 %v8436_v41 }
 0x62e   :  { %v4322_v29 = vpop.f32.mrf.mxu0  ;;  %v4335_v0 = vpop.f32.mrf.mxu1 }
 0x630   :  { %5463 = vmatpush.bf16.msrb.mxu3 %v8427_v19  ;;  %5476 = vmatpush.bf16.msrb.mxu2 %v8435_v42 }
 0x632   :  { %v4200_v55 = vpop.f32.mrf.mxu3  ;;  %v4213_v37 = vpop.f32.mrf.mxu2 }
 0x633   :  { %v4217_v22 = vadd.f32 %v4200_v55, %v4095_v39  ;;  %v4218_v24 = vadd.f32 %v4213_v37, %v4096_v60 }
 0x634   :  { %5464 = vmatpush.bf16.msrb.mxu3 %v8426_v25  ;;  %5477 = vmatpush.bf16.msrb.mxu2 %v8434_v58 }
 0x635   :  { %v4339_v54 = vadd.f32 %v4322_v29, %v4217_v22  ;;  %v4340_v5 = vadd.f32 %v4335_v0, %v4218_v24  ;;  %v5315_v29 = vld [vmem:[%s11952_s6] sm:$0x3] }
 0x636   :  { %v4324_v62 = vpop.f32.mrf.mxu0  ;;  %v4337_v36 = vpop.f32.mrf.mxu1 }
 0x637   :  { %v5318_v62 = vperm.slane %v5315_v29, 1 }
 0x638   :  { %5465 = vmatpush.bf16.msrb.mxu3 %v8425_v33  ;;  %5478 = vmatpush.bf16.msrb.mxu2 %v8433_v40 }
 0x63a   :  { %v4202_v57 = vpop.f32.mrf.mxu3  ;;  %v4215_v2 = vpop.f32.mrf.mxu2 }
 0x63c   :  { %5466 = vmatpush.bf16.msrb.mxu3 %v8424_v4  ;;  %5479 = vmatpush.bf16.msrb.mxu2 %v8432_v46 }
 0x64a   :  { %v4564_v43 = vpop.f32.mrf.mxu0  ;;  %v4577_v12 = vpop.f32.mrf.mxu1 }
 0x64e   :  { %v4443_v7 = vpop.f32.mrf.mxu3  ;;  %v4456_v50 = vpop.f32.mrf.mxu2 }
 0x64f   :  { %v4460_v11 = vadd.f32 %v4443_v7, %v4339_v54  ;;  %v4461_v47 = vadd.f32 %v4456_v50, %v4340_v5  ;;  %v5317_v54 = vperm.slane %v5315_v29, 0 }
 0x651   :  { %v4581_v34 = vadd.f32 %v4564_v43, %v4460_v11  ;;  %v4582_v23 = vadd.f32 %v4577_v12, %v4461_v47 }
 0x652   :  { %v4566_v56 = vpop.f32.mrf.mxu0  ;;  %v4579_v14 = vpop.f32.mrf.mxu1 }
 0x653   :  { %v8446_v14 = vld [vmem:[%s11954_s8] ss:$0 sm:$0xff]  ;;  %s8478_s8 = smov [#allocation2]  }
 0x654   :  { %s5516_s21 = sshll.u32 %s8478_s8, 4  ;;  %s5517_s21 = int_to_ptr.vmem [resolvable:$true] %s5516_s21 }
 0x656   :  { %v4445_v44 = vpop.f32.mrf.mxu3  ;;  %v4458_v13 = vpop.f32.mrf.mxu2 }
 0x666   :  { %v4808_v59 = vpop.f32.mrf.mxu0  ;;  %v4821_v32 = vpop.f32.mrf.mxu1 }
 0x66a   :  { %v4686_v53 = vpop.f32.mrf.mxu3  ;;  %v4699_v30 = vpop.f32.mrf.mxu2 }
 0x66b   :  { %v4703_v8 = vadd.f32 %v4686_v53, %v4581_v34  ;;  %v4704_v31 = vadd.f32 %v4699_v30, %v4582_v23 }
 0x66d   :  { %v4825_v39 = vadd.f32 %v4808_v59, %v4703_v8  ;;  %v4826_v60 = vadd.f32 %v4821_v32, %v4704_v31 }
 0x66e   :  { %v4810_v45 = vpop.f32.mrf.mxu0  ;;  %v4823_v15 = vpop.f32.mrf.mxu1 }
 0x672   :  { %v4688_v3 = vpop.f32.mrf.mxu3  ;;  %v4701_v51 = vpop.f32.mrf.mxu2 }
 0x682   :  { %v5052_v21 = vpop.f32.mrf.mxu0  ;;  %v5065_v1 = vpop.f32.mrf.mxu1 }
 0x686   :  { %v4930_v35 = vpop.f32.mrf.mxu3  ;;  %v4943_v61 = vpop.f32.mrf.mxu2 }
 0x687   :  { %v4947_v9 = vadd.f32 %v4930_v35, %v4825_v39  ;;  %v4948_v17 = vadd.f32 %v4943_v61, %v4826_v60 }
 0x689   :  { %v5069_v0 = vadd.f32 %v5052_v21, %v4947_v9  ;;  %v5070_v55 = vadd.f32 %v5065_v1, %v4948_v17 }
 0x68a   :  { %v5054_v6 = vpop.f32.mrf.mxu0  ;;  %v5067_v38 = vpop.f32.mrf.mxu1 }
 0x68e   :  { %v4932_v28 = vpop.f32.mrf.mxu3  ;;  %v4945_v18 = vpop.f32.mrf.mxu2 }
 0x69e   :  { %v5296_v52 = vpop.f32.mrf.mxu0  ;;  %v5309_v63 = vpop.f32.mrf.mxu1 }
 0x6a2   :  { %v5174_v37 = vpop.f32.mrf.mxu3  ;;  %v5187_v22 = vpop.f32.mrf.mxu2 }
 0x6a3   :  { %v5191_v24 = vadd.f32 %v5174_v37, %v5069_v0  ;;  %v5192_v5 = vadd.f32 %v5187_v22, %v5070_v55 }
 0x6a5   :  { %v5313_v36 = vadd.f32 %v5296_v52, %v5191_v24  ;;  %v5314_v57 = vadd.f32 %v5309_v63, %v5192_v5 }
 0x6a6   :  { %v5298_v2 = vpop.f32.mrf.mxu0  ;;  %v5311_v43 = vpop.f32.mrf.mxu1 }
 0x6a7   :  { %v5321_v12 = vadd.f32 %v5317_v54, %v5313_v36  ;;  %v5322_v7 = vadd.f32 %v5318_v62, %v5314_v57 }
 0x6a9   :  { %v5323_v50 = vmax.f32 %v5321_v12, 0.0  ;;  %v5324_v11 = vmax.f32 %v5322_v7, 0.0 }
 0x6aa   :  { %v5176_v47 = vpop.f32.mrf.mxu3  ;;  %v5189_v34 = vpop.f32.mrf.mxu2 }
 0x6ab   :  { %v5325_v23 = vpack.c.bf16 %v5323_v50, %v5323_v50  ;;  %v5326_v56 = vpack.c.bf16 %v5324_v11, %v5324_v11 }
 0x6ad   :  { %5467 = vmatmul.bf16.vlgmr.msrb.gmra.mxu3 %v5325_v23  ;;  %5480 = vmatmul.bf16.vlgmr.msrb.gmra.mxu2 %v5326_v56 }
 0x730   :  { %v5468_v44 = vpop.f32.mrf.mxu3  ;;  %v5481_v13 = vpop.f32.mrf.mxu2 }
 0x731   :  { %v5469_v59 = vadd.f32 %v8446_v14, %v5468_v44 }
 0x733   :  { %v5482_v32 = vadd.f32 %v5481_v13, %v5469_v59 }
 0x735   :  { %v5486_v10 = vsel %vm5485_vm5, %v5482_v32, -inf }
 0x736   :  { %5487 = vmax.xlane.f32.xlu0 %v5486_v10 }
 0x738   :  { %v5470_v49 = vpop.f32.mrf.mxu3  ;;  %v5483_v53 = vpop.f32.mrf.mxu2 }
 0x7a9   :  { %v5488_v30 = vpop.xlane.xlu0 %5487 }
 0x7aa   :  { %v5489_v27 = vsub.f32 %v5482_v32, %v5488_v30 }
 0x7ac   :  { %v5490_v16 = vmul.f32 1.442695, %v5489_v27 }
 0x7ae   :  { %8447 = vpow2.f32 %v5490_v16 }
 0x7b4   :  { %v8448_v45 = vpop.eup %8447 }
 0x7b5   :  { %v5492_v15 = vsel %vm5485_vm5, %v8448_v45, 0.0 }
 0x7b6   :  { %5493 = vadd.xlane.f32.xlu1 %v5492_v15 }
 0x829   :  { %v5494_v26 = vpop.xlane.xlu1 %5493 }
 0x82a   :  { %8449 = vrcp.f32 %v5494_v26  ;;  %v5506_v20 = vand.u32 2147483648, %v5494_v26  ;;  %v5504_v19 = vand.u32 2147483647, %v5494_v26  ;;  %vm5500_vm7 = vweird.f32 %v5494_v26 }
 0x82c   :  { %v5507_v21 = vor.u32 1.1754944e-38, %v5506_v20  ;;  %vm5505_vm9 = vcmp.eq.f32.partialorder %v5504_v19, 8.507059e+37 }
 0x830   :  { %v8450_v48 = vpop.eup %8449 }
 0x831   :  { %v5496_v3 = vmul.f32 %v8450_v48, %v5494_v26  ;;  %vm5501_vm6 = vweird.f32 %v8450_v48 }
 0x832   :  { %vm5502_vm8 = vmor %vm5500_vm7, %vm5501_vm6 }
 0x833   :  { %v5497_v51 = vsub.f32 1.0, %v5496_v3 }
 0x835   :  { %v5498_v41 = vmul.f32 %v8450_v48, %v5497_v51 }
 0x837   :  { %v5499_v42 = vadd.f32 %v8450_v48, %v5498_v41 }
 0x839   :  { %v5503_v1 = vsel %vm5502_vm8, %v8450_v48, %v5499_v42 }
 0x83a   :  { %v5508_v25 = vsel %vm5505_vm9, %v5507_v21, %v5503_v1 }
 0x83b   :  { %v5509_v58 = vmul.f32 %v8448_v45, %v5508_v25 }
 0x83d   :  { %5510 = vst.msk [vmem:[#allocation2] sm:$0x3] %vm5485_vm5, %v5509_v58 }
 0x83e   :  { %5521 = dma.vmem_to_hbm [thread:$0]  %s5517_s21, 32, %s5519_s23, [#allocation3]  }
 0x83f   :  { %8475 = dma.done.wait [#allocation3], 32  }
 0x840   :  { %8476 = vsyncadd [#allocation3], 4294967264 }
 0x841   :  { %5526 = vsyncpa [#allocation3], 1 }

</bundles_post_ra>
